<compile_context>
chip_gen: v5e
topology: v5e:2x2
jax: 0.10.0
libtpu: 0.0.40
codegen_flags: <defaults>
</compile_context>

<pallas_src>
import functools

import jax
import jax.numpy as jnp
from jax import lax
from jax.experimental import pallas as pl
from jax.experimental.pallas import tpu as pltpu


def _round_up(v, m):
    return (v + m - 1) // m * m


def sconv3d_forward(x, weight, gamma, beta, *, ks=3, eps=1e-5):
    """x: (N, inc, D, H, W) f32; weight: (inc, outc, ks, ks, ks) f32 (ConvTranspose layout).
    Returns (N, outc, D+ks-1, H+ks-1, W+ks-1) f32."""
    N, inc, D, H, W = x.shape
    outc = weight.shape[1]
    pad = ks - 1
    Do, Ho, Wo = D + pad, H + pad, W + pad
    Dp, Hp, Wp = D + 2 * pad, H + 2 * pad, W + 2 * pad

    incp = _round_up(inc, 8)                    # per-tap K chunk (lane dim of x blocks)
    Ktot = ks * ks * ks * incp                  # packed contraction depth (27 taps)
    Kpad = _round_up(Ktot, 16)                  # bf16 sublane-aligned weight rows
    HoWp = Ho * Wp                              # rows of one output plane (padded width)
    HpWps = _round_up(Hp * Wp + ks - 1, 16)     # flattened padded input plane + wrap slack

    # ---- host glue: channels-last, spatial zero-pad, flatten plane (all via jnp.pad) ----
    x_cl = jnp.transpose(x, (0, 2, 3, 4, 1))                              # (N, D, H, W, inc)
    xp = jnp.pad(x_cl, ((0, 0), (pad, pad), (pad, pad), (pad, pad), (0, incp - inc)))
    xf = jnp.pad(xp.reshape(N, Dp, Hp * Wp, incp),
                 ((0, 0), (0, 0), (0, HpWps - Hp * Wp), (0, 0)))
    xf = xf.astype(jnp.bfloat16)                # bf16 MXU operand; accumulation stays f32

    # flipped ConvTranspose weight packed to (Kpad, outc); K index = tap*incp + ic with
    # tap = (kd*ks + kh)*ks + kw -> matches the in-kernel panel assembly order.
    wf = jnp.transpose(weight[:, :, ::-1, ::-1, ::-1], (2, 3, 4, 0, 1))   # (ks,ks,ks,inc,outc)
    wk = jnp.pad(wf, ((0, 0), (0, 0), (0, 0), (0, incp - inc), (0, 0)))
    wk = jnp.pad(wk.reshape(Ktot, outc), ((0, Kpad - Ktot), (0, 0))).astype(jnp.bfloat16)

    # ---- Pallas kernel 1: transposed conv, one output depth plane per grid step ----
    # All 27 taps are packed into K -> a single MXU dot per plane; BN statistics fused.
    def conv_kernel(*refs):
        x_refs = refs[:ks]                      # ks padded depth slabs, (HpWps, incp) bf16
        w_ref, y_ref, st_ref = refs[ks], refs[ks + 1], refs[ks + 2]

        pieces = []
        for kd in range(ks):
            for kh in range(ks):
                for kw in range(ks):
                    # contiguous flat window == shifted (Ho, Wp) plane for this in-plane
                    # tap; wrapped reads land in zero padding, so they contribute nothing.
                    pieces.append(x_refs[kd][pl.ds(kh * Wp + kw, HoWp), :])
        if Kpad > Ktot:
            pieces.append(jnp.zeros((HoWp, Kpad - Ktot), jnp.bfloat16))
        panel = jnp.concatenate(pieces, axis=1)                      # (HoWp, Kpad) bf16

        y = jnp.dot(panel, w_ref[...], preferred_element_type=jnp.float32)  # (HoWp, outc) f32

        # per-plane sum / sum-of-squares over valid voxels only (mask padded-width cols)
        row = lax.broadcasted_iota(jnp.int32, (HoWp, 1), 0)
        yv = jnp.where((row % Wp) < Wo, y, 0.0)
        st_ref[0:1, :] = jnp.sum(yv, axis=0, keepdims=True)
        st_ref[1:2, :] = jnp.sum(yv * yv, axis=0, keepdims=True)
        st_ref[2:, :] = jnp.zeros((8 - 2, outc), jnp.float32)

        y_ref[...] = y                          # un-padded (outc-wide) intermediate

    def _x_index_map(kd):
        def imap(n, d):
            return (n, d + kd, 0, 0)
        return imap

    x_specs = [pl.BlockSpec((None, None, HpWps, incp), _x_index_map(kd)) for kd in range(ks)]

    y, stats = pl.pallas_call(
        conv_kernel,
        out_shape=(jax.ShapeDtypeStruct((N, Do, HoWp, outc), jnp.float32),
                   jax.ShapeDtypeStruct((N, Do, 8, outc), jnp.float32)),
        grid_spec=pltpu.PrefetchScalarGridSpec(
            num_scalar_prefetch=0,
            grid=(N, Do),
            in_specs=x_specs + [pl.BlockSpec((Kpad, outc), lambda n, d: (0, 0))],
            out_specs=[pl.BlockSpec((None, None, HoWp, outc), lambda n, d: (n, d, 0, 0)),
                       pl.BlockSpec((None, None, 8, outc), lambda n, d: (n, d, 0, 0))]),
        compiler_params=pltpu.CompilerParams(
            dimension_semantics=("parallel", "parallel"),
            vmem_limit_bytes=32 * 1024 * 1024),
    )(*([xf] * ks), wk)

    # ---- host glue: BN scale/shift from the tiny fused statistics (single-pass stats) ----
    M = N * Do * Ho * Wo
    tot = jnp.sum(stats[:, :, :2, :], axis=(0, 1))                   # (2, outc), tiny
    mean = tot[0] / M
    var = jnp.maximum(tot[1] / M - mean * mean, 0.0)                 # biased var (PyTorch BN)
    scale = gamma / jnp.sqrt(var + eps)
    shift = beta - mean * scale

    # ---- Pallas kernel 2: fused BatchNorm + ReLU on the lane-dense flattened tensor ----
    planes = N * Do
    HoWpC = HoWp * outc                                              # lane-dense row width
    scale_row = jnp.tile(scale, HoWp).reshape(1, HoWpC).astype(jnp.float32)
    shift_row = jnp.tile(shift, HoWp).reshape(1, HoWpC).astype(jnp.float32)

    pb = max(1, min(planes, (4 << 20) // (HoWpC * 4)))               # ~4 MB blocks
    if pb < planes and pb % 8 != 0:
        pb = min(planes, max(8, (pb // 8) * 8))

    def bn_relu_kernel(y_ref, sc_ref, sh_ref, o_ref):
        o_ref[...] = jnp.maximum(y_ref[...] * sc_ref[...] + sh_ref[...], 0.0)

    out = pl.pallas_call(
        bn_relu_kernel,
        out_shape=jax.ShapeDtypeStruct((planes, HoWpC), jnp.float32),
        grid_spec=pltpu.PrefetchScalarGridSpec(
            num_scalar_prefetch=0,
            grid=(pl.cdiv(planes, pb),),
            in_specs=[pl.BlockSpec((pb, HoWpC), lambda i: (i, 0)),
                      pl.BlockSpec((1, HoWpC), lambda i: (0, 0)),
                      pl.BlockSpec((1, HoWpC), lambda i: (0, 0))],
            out_specs=pl.BlockSpec((pb, HoWpC), lambda i: (i, 0))),
        compiler_params=pltpu.CompilerParams(
            dimension_semantics=("parallel",),
            vmem_limit_bytes=32 * 1024 * 1024),
    )(y.reshape(planes, HoWpC), scale_row, shift_row)

    # ---- host glue: drop padded-width columns (small tensor), back to NCDHW ----
    out = out.reshape(N, Do, Ho, Wp, outc)[:, :, :, :Wo, :]
    return jnp.transpose(out, (0, 4, 1, 2, 3))


# ---------------- reference (pure JAX, f32) ----------------

def _reference(x, weight, gamma, beta, *, ks=3, eps=1e-5):
    pad = ks - 1
    xp = jnp.pad(x, ((0, 0), (0, 0), (pad, pad), (pad, pad), (pad, pad)))
    Wf = weight[:, :, ::-1, ::-1, ::-1]
    rhs = jnp.transpose(Wf, (1, 0, 2, 3, 4))                  # OIDHW
    y = lax.conv_general_dilated(xp, rhs, (1, 1, 1), 'VALID',
                                 dimension_numbers=('NCDHW', 'OIDHW', 'NCDHW'))
    mean = jnp.mean(y, axis=(0, 2, 3, 4), keepdims=True)
    var = jnp.mean((y - mean) ** 2, axis=(0, 2, 3, 4), keepdims=True)
    yn = (y - mean) / jnp.sqrt(var + eps)
    yn = yn * gamma[None, :, None, None, None] + beta[None, :, None, None, None]
    return jnp.maximum(yn, 0.0)


if __name__ == "__main__":
    N, inc, outc, S, ks = 2, 4, 8, 8, 3
    key = jax.random.PRNGKey(0)
    kx, kw = jax.random.split(key)
    x = jax.random.normal(kx, (N, inc, S, S, S), dtype=jnp.float32)
    weight = 0.1 * jax.random.normal(kw, (inc, outc, ks, ks, ks), dtype=jnp.float32)
    gamma = jnp.ones((outc,), jnp.float32)    # BatchNorm defaults at __init__
    beta = jnp.zeros((outc,), jnp.float32)

    fwd = jax.jit(functools.partial(sconv3d_forward, ks=ks))
    out = jax.block_until_ready(fwd(x, weight, gamma, beta))

    ref = _reference(x, weight, gamma, beta, ks=ks)
    assert out.shape == (N, outc, S + ks - 1, S + ks - 1, S + ks - 1), out.shape
    # bf16 MXU operands with f32 accumulation -> compare against the f32 reference
    # at a bf16-appropriate tolerance.
    err = float(jnp.max(jnp.abs(out - ref)))
    assert jnp.allclose(out, ref, rtol=2e-2, atol=2e-2), err

    print("KERNEL_OK")
</pallas_src>

<mosaic_0001>
module attributes {stable_mosaic.version = 11 : i64} {
  func.func @conv_kernel(%arg0: i32, %arg1: i32, %arg2: memref<1x1x160x8xbf16, #tpu.memory_space<vmem>>, %arg3: memref<1x1x160x8xbf16, #tpu.memory_space<vmem>>, %arg4: memref<1x1x160x8xbf16, #tpu.memory_space<vmem>>, %arg5: memref<224x8xbf16, #tpu.memory_space<vmem>>, %arg6: memref<1x1x120x8xf32, #tpu.memory_space<vmem>>, %arg7: memref<1x1x8x8xf32, #tpu.memory_space<vmem>>) attributes {dimension_semantics = [#tpu.dimension_semantics<parallel>, #tpu.dimension_semantics<parallel>], iteration_bounds = array<i64: 2, 10>, scalar_prefetch = 0 : i64, scratch_operands = 0 : i64, tpu.core_type = #tpu.core_type<tc>, window_params = [{transform_indices = @transform_0, window_bounds = array<i64: 1, 1, 160, 8>}, {transform_indices = @transform_1, window_bounds = array<i64: 1, 1, 160, 8>}, {transform_indices = @transform_2, window_bounds = array<i64: 1, 1, 160, 8>}, {pipeline_mode = #tpu.pipeline_mode<synchronous>, transform_indices = @transform_3, window_bounds = array<i64: 224, 8>}, {transform_indices = @transform_4, window_bounds = array<i64: 1, 1, 120, 8>}, {transform_indices = @transform_5, window_bounds = array<i64: 1, 1, 8, 8>}]} {
    %c0 = arith.constant 0 : index
    %c0_0 = arith.constant 0 : index
    %c0_1 = arith.constant 0 : index
    %c0_2 = arith.constant 0 : index
    %0 = vector.load %arg2[%c0, %c0_0, %c0_1, %c0_2] : memref<1x1x160x8xbf16, #tpu.memory_space<vmem>>, vector<1x1x120x8xbf16>
    %1 = vector.shape_cast %0 : vector<1x1x120x8xbf16> to vector<120x8xbf16>
    %c0_3 = arith.constant 0 : index
    %c0_4 = arith.constant 0 : index
    %c1 = arith.constant 1 : index
    %c0_5 = arith.constant 0 : index
    %2 = vector.load %arg2[%c0_3, %c0_4, %c1, %c0_5] : memref<1x1x160x8xbf16, #tpu.memory_space<vmem>>, vector<1x1x120x8xbf16>
    %3 = vector.shape_cast %2 : vector<1x1x120x8xbf16> to vector<120x8xbf16>
    %c0_6 = arith.constant 0 : index
    %c0_7 = arith.constant 0 : index
    %c2 = arith.constant 2 : index
    %c0_8 = arith.constant 0 : index
    %4 = vector.load %arg2[%c0_6, %c0_7, %c2, %c0_8] : memref<1x1x160x8xbf16, #tpu.memory_space<vmem>>, vector<1x1x120x8xbf16>
    %5 = vector.shape_cast %4 : vector<1x1x120x8xbf16> to vector<120x8xbf16>
    %c0_9 = arith.constant 0 : index
    %c0_10 = arith.constant 0 : index
    %c12 = arith.constant 12 : index
    %c0_11 = arith.constant 0 : index
    %6 = vector.load %arg2[%c0_9, %c0_10, %c12, %c0_11] : memref<1x1x160x8xbf16, #tpu.memory_space<vmem>>, vector<1x1x120x8xbf16>
    %7 = vector.shape_cast %6 : vector<1x1x120x8xbf16> to vector<120x8xbf16>
    %c0_12 = arith.constant 0 : index
    %c0_13 = arith.constant 0 : index
    %c13 = arith.constant 13 : index
    %c0_14 = arith.constant 0 : index
    %8 = vector.load %arg2[%c0_12, %c0_13, %c13, %c0_14] : memref<1x1x160x8xbf16, #tpu.memory_space<vmem>>, vector<1x1x120x8xbf16>
    %9 = vector.shape_cast %8 : vector<1x1x120x8xbf16> to vector<120x8xbf16>
    %c0_15 = arith.constant 0 : index
    %c0_16 = arith.constant 0 : index
    %c14 = arith.constant 14 : index
    %c0_17 = arith.constant 0 : index
    %10 = vector.load %arg2[%c0_15, %c0_16, %c14, %c0_17] : memref<1x1x160x8xbf16, #tpu.memory_space<vmem>>, vector<1x1x120x8xbf16>
    %11 = vector.shape_cast %10 : vector<1x1x120x8xbf16> to vector<120x8xbf16>
    %c0_18 = arith.constant 0 : index
    %c0_19 = arith.constant 0 : index
    %c24 = arith.constant 24 : index
    %c0_20 = arith.constant 0 : index
    %12 = vector.load %arg2[%c0_18, %c0_19, %c24, %c0_20] : memref<1x1x160x8xbf16, #tpu.memory_space<vmem>>, vector<1x1x120x8xbf16>
    %13 = vector.shape_cast %12 : vector<1x1x120x8xbf16> to vector<120x8xbf16>
    %c0_21 = arith.constant 0 : index
    %c0_22 = arith.constant 0 : index
    %c25 = arith.constant 25 : index
    %c0_23 = arith.constant 0 : index
    %14 = vector.load %arg2[%c0_21, %c0_22, %c25, %c0_23] : memref<1x1x160x8xbf16, #tpu.memory_space<vmem>>, vector<1x1x120x8xbf16>
    %15 = vector.shape_cast %14 : vector<1x1x120x8xbf16> to vector<120x8xbf16>
    %c0_24 = arith.constant 0 : index
    %c0_25 = arith.constant 0 : index
    %c26 = arith.constant 26 : index
    %c0_26 = arith.constant 0 : index
    %16 = vector.load %arg2[%c0_24, %c0_25, %c26, %c0_26] : memref<1x1x160x8xbf16, #tpu.memory_space<vmem>>, vector<1x1x120x8xbf16>
    %17 = vector.shape_cast %16 : vector<1x1x120x8xbf16> to vector<120x8xbf16>
    %c0_27 = arith.constant 0 : index
    %c0_28 = arith.constant 0 : index
    %c0_29 = arith.constant 0 : index
    %c0_30 = arith.constant 0 : index
    %18 = vector.load %arg3[%c0_27, %c0_28, %c0_29, %c0_30] : memref<1x1x160x8xbf16, #tpu.memory_space<vmem>>, vector<1x1x120x8xbf16>
    %19 = vector.shape_cast %18 : vector<1x1x120x8xbf16> to vector<120x8xbf16>
    %c0_31 = arith.constant 0 : index
    %c0_32 = arith.constant 0 : index
    %c1_33 = arith.constant 1 : index
    %c0_34 = arith.constant 0 : index
    %20 = vector.load %arg3[%c0_31, %c0_32, %c1_33, %c0_34] : memref<1x1x160x8xbf16, #tpu.memory_space<vmem>>, vector<1x1x120x8xbf16>
    %21 = vector.shape_cast %20 : vector<1x1x120x8xbf16> to vector<120x8xbf16>
    %c0_35 = arith.constant 0 : index
    %c0_36 = arith.constant 0 : index
    %c2_37 = arith.constant 2 : index
    %c0_38 = arith.constant 0 : index
    %22 = vector.load %arg3[%c0_35, %c0_36, %c2_37, %c0_38] : memref<1x1x160x8xbf16, #tpu.memory_space<vmem>>, vector<1x1x120x8xbf16>
    %23 = vector.shape_cast %22 : vector<1x1x120x8xbf16> to vector<120x8xbf16>
    %c0_39 = arith.constant 0 : index
    %c0_40 = arith.constant 0 : index
    %c12_41 = arith.constant 12 : index
    %c0_42 = arith.constant 0 : index
    %24 = vector.load %arg3[%c0_39, %c0_40, %c12_41, %c0_42] : memref<1x1x160x8xbf16, #tpu.memory_space<vmem>>, vector<1x1x120x8xbf16>
    %25 = vector.shape_cast %24 : vector<1x1x120x8xbf16> to vector<120x8xbf16>
    %c0_43 = arith.constant 0 : index
    %c0_44 = arith.constant 0 : index
    %c13_45 = arith.constant 13 : index
    %c0_46 = arith.constant 0 : index
    %26 = vector.load %arg3[%c0_43, %c0_44, %c13_45, %c0_46] : memref<1x1x160x8xbf16, #tpu.memory_space<vmem>>, vector<1x1x120x8xbf16>
    %27 = vector.shape_cast %26 : vector<1x1x120x8xbf16> to vector<120x8xbf16>
    %c0_47 = arith.constant 0 : index
    %c0_48 = arith.constant 0 : index
    %c14_49 = arith.constant 14 : index
    %c0_50 = arith.constant 0 : index
    %28 = vector.load %arg3[%c0_47, %c0_48, %c14_49, %c0_50] : memref<1x1x160x8xbf16, #tpu.memory_space<vmem>>, vector<1x1x120x8xbf16>
    %29 = vector.shape_cast %28 : vector<1x1x120x8xbf16> to vector<120x8xbf16>
    %c0_51 = arith.constant 0 : index
    %c0_52 = arith.constant 0 : index
    %c24_53 = arith.constant 24 : index
    %c0_54 = arith.constant 0 : index
    %30 = vector.load %arg3[%c0_51, %c0_52, %c24_53, %c0_54] : memref<1x1x160x8xbf16, #tpu.memory_space<vmem>>, vector<1x1x120x8xbf16>
    %31 = vector.shape_cast %30 : vector<1x1x120x8xbf16> to vector<120x8xbf16>
    %c0_55 = arith.constant 0 : index
    %c0_56 = arith.constant 0 : index
    %c25_57 = arith.constant 25 : index
    %c0_58 = arith.constant 0 : index
    %32 = vector.load %arg3[%c0_55, %c0_56, %c25_57, %c0_58] : memref<1x1x160x8xbf16, #tpu.memory_space<vmem>>, vector<1x1x120x8xbf16>
    %33 = vector.shape_cast %32 : vector<1x1x120x8xbf16> to vector<120x8xbf16>
    %c0_59 = arith.constant 0 : index
    %c0_60 = arith.constant 0 : index
    %c26_61 = arith.constant 26 : index
    %c0_62 = arith.constant 0 : index
    %34 = vector.load %arg3[%c0_59, %c0_60, %c26_61, %c0_62] : memref<1x1x160x8xbf16, #tpu.memory_space<vmem>>, vector<1x1x120x8xbf16>
    %35 = vector.shape_cast %34 : vector<1x1x120x8xbf16> to vector<120x8xbf16>
    %c0_63 = arith.constant 0 : index
    %c0_64 = arith.constant 0 : index
    %c0_65 = arith.constant 0 : index
    %c0_66 = arith.constant 0 : index
    %36 = vector.load %arg4[%c0_63, %c0_64, %c0_65, %c0_66] : memref<1x1x160x8xbf16, #tpu.memory_space<vmem>>, vector<1x1x120x8xbf16>
    %37 = vector.shape_cast %36 : vector<1x1x120x8xbf16> to vector<120x8xbf16>
    %c0_67 = arith.constant 0 : index
    %c0_68 = arith.constant 0 : index
    %c1_69 = arith.constant 1 : index
    %c0_70 = arith.constant 0 : index
    %38 = vector.load %arg4[%c0_67, %c0_68, %c1_69, %c0_70] : memref<1x1x160x8xbf16, #tpu.memory_space<vmem>>, vector<1x1x120x8xbf16>
    %39 = vector.shape_cast %38 : vector<1x1x120x8xbf16> to vector<120x8xbf16>
    %c0_71 = arith.constant 0 : index
    %c0_72 = arith.constant 0 : index
    %c2_73 = arith.constant 2 : index
    %c0_74 = arith.constant 0 : index
    %40 = vector.load %arg4[%c0_71, %c0_72, %c2_73, %c0_74] : memref<1x1x160x8xbf16, #tpu.memory_space<vmem>>, vector<1x1x120x8xbf16>
    %41 = vector.shape_cast %40 : vector<1x1x120x8xbf16> to vector<120x8xbf16>
    %c0_75 = arith.constant 0 : index
    %c0_76 = arith.constant 0 : index
    %c12_77 = arith.constant 12 : index
    %c0_78 = arith.constant 0 : index
    %42 = vector.load %arg4[%c0_75, %c0_76, %c12_77, %c0_78] : memref<1x1x160x8xbf16, #tpu.memory_space<vmem>>, vector<1x1x120x8xbf16>
    %43 = vector.shape_cast %42 : vector<1x1x120x8xbf16> to vector<120x8xbf16>
    %c0_79 = arith.constant 0 : index
    %c0_80 = arith.constant 0 : index
    %c13_81 = arith.constant 13 : index
    %c0_82 = arith.constant 0 : index
    %44 = vector.load %arg4[%c0_79, %c0_80, %c13_81, %c0_82] : memref<1x1x160x8xbf16, #tpu.memory_space<vmem>>, vector<1x1x120x8xbf16>
    %45 = vector.shape_cast %44 : vector<1x1x120x8xbf16> to vector<120x8xbf16>
    %c0_83 = arith.constant 0 : index
    %c0_84 = arith.constant 0 : index
    %c14_85 = arith.constant 14 : index
    %c0_86 = arith.constant 0 : index
    %46 = vector.load %arg4[%c0_83, %c0_84, %c14_85, %c0_86] : memref<1x1x160x8xbf16, #tpu.memory_space<vmem>>, vector<1x1x120x8xbf16>
    %47 = vector.shape_cast %46 : vector<1x1x120x8xbf16> to vector<120x8xbf16>
    %c0_87 = arith.constant 0 : index
    %c0_88 = arith.constant 0 : index
    %c24_89 = arith.constant 24 : index
    %c0_90 = arith.constant 0 : index
    %48 = vector.load %arg4[%c0_87, %c0_88, %c24_89, %c0_90] : memref<1x1x160x8xbf16, #tpu.memory_space<vmem>>, vector<1x1x120x8xbf16>
    %49 = vector.shape_cast %48 : vector<1x1x120x8xbf16> to vector<120x8xbf16>
    %c0_91 = arith.constant 0 : index
    %c0_92 = arith.constant 0 : index
    %c25_93 = arith.constant 25 : index
    %c0_94 = arith.constant 0 : index
    %50 = vector.load %arg4[%c0_91, %c0_92, %c25_93, %c0_94] : memref<1x1x160x8xbf16, #tpu.memory_space<vmem>>, vector<1x1x120x8xbf16>
    %51 = vector.shape_cast %50 : vector<1x1x120x8xbf16> to vector<120x8xbf16>
    %c0_95 = arith.constant 0 : index
    %c0_96 = arith.constant 0 : index
    %c26_97 = arith.constant 26 : index
    %c0_98 = arith.constant 0 : index
    %52 = vector.load %arg4[%c0_95, %c0_96, %c26_97, %c0_98] : memref<1x1x160x8xbf16, #tpu.memory_space<vmem>>, vector<1x1x120x8xbf16>
    %53 = vector.shape_cast %52 : vector<1x1x120x8xbf16> to vector<120x8xbf16>
    %cst = arith.constant 0.000000e+00 : bf16
    %54 = vector.broadcast %cst : bf16 to vector<120x8xbf16>
    %55 = tpu.concatenate %1, %3, %5, %7, %9, %11, %13, %15, %17, %19, %21, %23, %25, %27, %29, %31 in 1 : vector<120x8xbf16>, vector<120x8xbf16>, vector<120x8xbf16>, vector<120x8xbf16>, vector<120x8xbf16>, vector<120x8xbf16>, vector<120x8xbf16>, vector<120x8xbf16>, vector<120x8xbf16>, vector<120x8xbf16>, vector<120x8xbf16>, vector<120x8xbf16>, vector<120x8xbf16>, vector<120x8xbf16>, vector<120x8xbf16>, vector<120x8xbf16> -> vector<120x128xbf16>
    %56 = tpu.concatenate %33, %35, %37, %39, %41, %43, %45, %47, %49, %51, %53, %54 in 1 : vector<120x8xbf16>, vector<120x8xbf16>, vector<120x8xbf16>, vector<120x8xbf16>, vector<120x8xbf16>, vector<120x8xbf16>, vector<120x8xbf16>, vector<120x8xbf16>, vector<120x8xbf16>, vector<120x8xbf16>, vector<120x8xbf16>, vector<120x8xbf16> -> vector<120x96xbf16>
    %57 = tpu.concatenate %55, %56 in 1 : vector<120x128xbf16>, vector<120x96xbf16> -> vector<120x224xbf16>
    %c0_99 = arith.constant 0 : index
    %c0_100 = arith.constant 0 : index
    %58 = vector.load %arg5[%c0_99, %c0_100] : memref<224x8xbf16, #tpu.memory_space<vmem>>, vector<224x8xbf16>
    %cst_101 = arith.constant dense<0.000000e+00> : vector<120x8xf32>
    %59 = tpu.matmul %57, %58, %cst_101 {dimension_numbers = #tpu.dot_dimension_numbers<[1], [0], [0], [1], [0, 0, 1, 1], [], []>} : vector<120x224xbf16>, vector<224x8xbf16>, vector<120x8xf32> -> vector<120x8xf32>
    %60 = tpu.iota {dimensions = array<i32: 0>} : vector<120x1xi32>
    %c12_i32 = arith.constant 12 : i32
    %c0_i32 = arith.constant 0 : i32
    %61 = arith.cmpi eq, %c12_i32, %c0_i32 : i32
    %c1_i32 = arith.constant 1 : i32
    %62 = arith.select %61, %c1_i32, %c12_i32 : i32
    %63 = vector.broadcast %62 : i32 to vector<120x1xi32>
    %64 = arith.remsi %60, %63 : vector<120x1xi32>
    %c0_i32_102 = arith.constant 0 : i32
    %65 = vector.broadcast %c0_i32_102 : i32 to vector<120x1xi32>
    %66 = arith.cmpi ne, %64, %65 : vector<120x1xi32>
    %c0_i32_103 = arith.constant 0 : i32
    %67 = vector.broadcast %c0_i32_103 : i32 to vector<120x1xi32>
    %68 = arith.cmpi slt, %64, %67 : vector<120x1xi32>
    %c0_i32_104 = arith.constant 0 : i32
    %69 = arith.cmpi slt, %62, %c0_i32_104 : i32
    %70 = vector.broadcast %69 : i1 to vector<120x1xi1>
    %71 = vector.broadcast %70 : vector<120x1xi1> to vector<120x1xi1>
    %72 = arith.xori %68, %71 : vector<120x1xi1>
    %73 = arith.andi %72, %66 : vector<120x1xi1>
    %74 = vector.broadcast %62 : i32 to vector<120x1xi32>
    %75 = arith.addi %64, %74 : vector<120x1xi32>
    %76 = arith.select %73, %75, %64 : vector<120x1xi1>, vector<120x1xi32>
    %c10_i32 = arith.constant 10 : i32
    %77 = vector.broadcast %c10_i32 : i32 to vector<120x1xi32>
    %78 = arith.cmpi slt, %76, %77 : vector<120x1xi32>
    %cst_105 = arith.constant 0.000000e+00 : f32
    %79 = vector.shape_cast %78 : vector<120x1xi1> to vector<120x1xi1>
    %80 = vector.broadcast %79 : vector<120x1xi1> to vector<120x8xi1>
    %81 = vector.broadcast %cst_105 : f32 to vector<120x8xf32>
    %82 = arith.select %80, %59, %81 : vector<120x8xi1>, vector<120x8xf32>
    %cst_106 = arith.constant dense<0.000000e+00> : vector<8xf32>
    %83 = vector.multi_reduction <add>, %82, %cst_106 [0] : vector<120x8xf32> to vector<8xf32>
    %84 = vector.shape_cast %83 : vector<8xf32> to vector<1x8xf32>
    %c0_107 = arith.constant 0 : index
    %c0_108 = arith.constant 0 : index
    %c0_109 = arith.constant 0 : index
    %c0_110 = arith.constant 0 : index
    %85 = vector.load %arg7[%c0_107, %c0_108, %c0_109, %c0_110] : memref<1x1x8x8xf32, #tpu.memory_space<vmem>>, vector<1x1x1x8xf32>
    %86 = vector.shape_cast %85 : vector<1x1x1x8xf32> to vector<1x8xf32>
    %87 = vector.shape_cast %84 : vector<1x8xf32> to vector<1x1x1x8xf32>
    tpu.vector_store %arg7[%c0_107, %c0_108, %c0_109, %c0_110], %87 {strides = array<i32>} : memref<1x1x8x8xf32, #tpu.memory_space<vmem>>, vector<1x1x1x8xf32>,
    %88 = arith.mulf %82, %82 : vector<120x8xf32>
    %cst_111 = arith.constant dense<0.000000e+00> : vector<8xf32>
    %89 = vector.multi_reduction <add>, %88, %cst_111 [0] : vector<120x8xf32> to vector<8xf32>
    %90 = vector.shape_cast %89 : vector<8xf32> to vector<1x8xf32>
    %c0_112 = arith.constant 0 : index
    %c0_113 = arith.constant 0 : index
    %c1_114 = arith.constant 1 : index
    %c0_115 = arith.constant 0 : index
    %91 = vector.load %arg7[%c0_112, %c0_113, %c1_114, %c0_115] : memref<1x1x8x8xf32, #tpu.memory_space<vmem>>, vector<1x1x1x8xf32>
    %92 = vector.shape_cast %91 : vector<1x1x1x8xf32> to vector<1x8xf32>
    %93 = vector.shape_cast %90 : vector<1x8xf32> to vector<1x1x1x8xf32>
    tpu.vector_store %arg7[%c0_112, %c0_113, %c1_114, %c0_115], %93 {strides = array<i32>} : memref<1x1x8x8xf32, #tpu.memory_space<vmem>>, vector<1x1x1x8xf32>,
    %cst_116 = arith.constant 0.000000e+00 : f32
    %94 = vector.broadcast %cst_116 : f32 to vector<6x8xf32>
    %c0_117 = arith.constant 0 : index
    %c0_118 = arith.constant 0 : index
    %c2_119 = arith.constant 2 : index
    %c0_120 = arith.constant 0 : index
    %95 = vector.load %arg7[%c0_117, %c0_118, %c2_119, %c0_120] : memref<1x1x8x8xf32, #tpu.memory_space<vmem>>, vector<1x1x6x8xf32>
    %96 = vector.shape_cast %95 : vector<1x1x6x8xf32> to vector<6x8xf32>
    %97 = vector.shape_cast %94 : vector<6x8xf32> to vector<1x1x6x8xf32>
    tpu.vector_store %arg7[%c0_117, %c0_118, %c2_119, %c0_120], %97 {strides = array<i32>} : memref<1x1x8x8xf32, #tpu.memory_space<vmem>>, vector<1x1x6x8xf32>,
    %c0_121 = arith.constant 0 : index
    %c0_122 = arith.constant 0 : index
    %c0_123 = arith.constant 0 : index
    %c0_124 = arith.constant 0 : index
    %98 = vector.load %arg6[%c0_121, %c0_122, %c0_123, %c0_124] : memref<1x1x120x8xf32, #tpu.memory_space<vmem>>, vector<1x1x120x8xf32>
    %99 = vector.shape_cast %98 : vector<1x1x120x8xf32> to vector<120x8xf32>
    %100 = vector.shape_cast %59 : vector<120x8xf32> to vector<1x1x120x8xf32>
    tpu.vector_store %arg6[%c0_121, %c0_122, %c0_123, %c0_124], %100 {strides = array<i32>} : memref<1x1x120x8xf32, #tpu.memory_space<vmem>>, vector<1x1x120x8xf32>,
    return
  }
  func.func @transform_0(%arg0: i32, %arg1: i32) -> (i32, i32, i32, i32) {
    %c0_i32 = arith.constant 0 : i32
    %0 = arith.addi %arg1, %c0_i32 : i32
    %c0_i32_0 = arith.constant 0 : i32
    %c0_i32_1 = arith.constant 0 : i32
    %c0_i32_2 = arith.constant 0 : i32
    return %arg0, %0, %c0_i32_0, %c0_i32_1 : i32, i32, i32, i32
  }
  func.func @transform_1(%arg0: i32, %arg1: i32) -> (i32, i32, i32, i32) {
    %c1_i32 = arith.constant 1 : i32
    %0 = arith.addi %arg1, %c1_i32 : i32
    %c0_i32 = arith.constant 0 : i32
    %c0_i32_0 = arith.constant 0 : i32
    %c0_i32_1 = arith.constant 0 : i32
    return %arg0, %0, %c0_i32, %c0_i32_0 : i32, i32, i32, i32
  }
  func.func @transform_2(%arg0: i32, %arg1: i32) -> (i32, i32, i32, i32) {
    %c2_i32 = arith.constant 2 : i32
    %0 = arith.addi %arg1, %c2_i32 : i32
    %c0_i32 = arith.constant 0 : i32
    %c0_i32_0 = arith.constant 0 : i32
    %c0_i32_1 = arith.constant 0 : i32
    return %arg0, %0, %c0_i32, %c0_i32_0 : i32, i32, i32, i32
  }
  func.func @transform_3(%arg0: i32, %arg1: i32) -> (i32, i32) {
    %c0_i32 = arith.constant 0 : i32
    %c0_i32_0 = arith.constant 0 : i32
    %c0_i32_1 = arith.constant 0 : i32
    return %c0_i32, %c0_i32_0 : i32, i32
  }
  func.func @transform_4(%arg0: i32, %arg1: i32) -> (i32, i32, i32, i32) {
    %c0_i32 = arith.constant 0 : i32
    %c0_i32_0 = arith.constant 0 : i32
    %c0_i32_1 = arith.constant 0 : i32
    return %arg0, %arg1, %c0_i32, %c0_i32_0 : i32, i32, i32, i32
  }
  func.func @transform_5(%arg0: i32, %arg1: i32) -> (i32, i32, i32, i32) {
    %c0_i32 = arith.constant 0 : i32
    %c0_i32_0 = arith.constant 0 : i32
    %c0_i32_1 = arith.constant 0 : i32
    return %arg0, %arg1, %c0_i32, %c0_i32_0 : i32, i32, i32, i32
  }
}

module attributes {stable_mosaic.version = 11 : i64} {
  func.func @bn_relu_kernel(%arg0: i32, %arg1: memref<20x960xf32, #tpu.memory_space<vmem>>, %arg2: memref<1x960xf32, #tpu.memory_space<vmem>>, %arg3: memref<1x960xf32, #tpu.memory_space<vmem>>, %arg4: memref<20x960xf32, #tpu.memory_space<vmem>>) attributes {dimension_semantics = [#tpu.dimension_semantics<parallel>], iteration_bounds = array<i64: 1>, scalar_prefetch = 0 : i64, scratch_operands = 0 : i64, tpu.core_type = #tpu.core_type<tc>, window_params = [{transform_indices = @transform_0, window_bounds = array<i64: 20, 960>}, {pipeline_mode = #tpu.pipeline_mode<synchronous>, transform_indices = @transform_1, window_bounds = array<i64: 1, 960>}, {pipeline_mode = #tpu.pipeline_mode<synchronous>, transform_indices = @transform_2, window_bounds = array<i64: 1, 960>}, {transform_indices = @transform_3, window_bounds = array<i64: 20, 960>}]} {
    %c0 = arith.constant 0 : index
    %c0_0 = arith.constant 0 : index
    %0 = vector.load %arg1[%c0, %c0_0] : memref<20x960xf32, #tpu.memory_space<vmem>>, vector<20x960xf32>
    %c0_1 = arith.constant 0 : index
    %c0_2 = arith.constant 0 : index
    %1 = vector.load %arg2[%c0_1, %c0_2] : memref<1x960xf32, #tpu.memory_space<vmem>>, vector<1x960xf32>
    %2 = vector.broadcast %1 : vector<1x960xf32> to vector<20x960xf32>
    %3 = arith.mulf %0, %2 : vector<20x960xf32>
    %c0_3 = arith.constant 0 : index
    %c0_4 = arith.constant 0 : index
    %4 = vector.load %arg3[%c0_3, %c0_4] : memref<1x960xf32, #tpu.memory_space<vmem>>, vector<1x960xf32>
    %5 = vector.broadcast %4 : vector<1x960xf32> to vector<20x960xf32>
    %6 = arith.addf %3, %5 : vector<20x960xf32>
    %cst = arith.constant 0.000000e+00 : f32
    %7 = vector.broadcast %cst : f32 to vector<20x960xf32>
    %8 = arith.maximumf %6, %7 : vector<20x960xf32>
    %c0_5 = arith.constant 0 : index
    %c0_6 = arith.constant 0 : index
    %9 = vector.load %arg4[%c0_5, %c0_6] : memref<20x960xf32, #tpu.memory_space<vmem>>, vector<20x960xf32>
    tpu.vector_store %arg4[%c0_5, %c0_6], %8 {strides = array<i32>} : memref<20x960xf32, #tpu.memory_space<vmem>>, vector<20x960xf32>,
    return
  }
  func.func @transform_0(%arg0: i32) -> (i32, i32) {
    %c0_i32 = arith.constant 0 : i32
    %c0_i32_0 = arith.constant 0 : i32
    return %arg0, %c0_i32 : i32, i32
  }
  func.func @transform_1(%arg0: i32) -> (i32, i32) {
    %c0_i32 = arith.constant 0 : i32
    %c0_i32_0 = arith.constant 0 : i32
    %c0_i32_1 = arith.constant 0 : i32
    return %c0_i32, %c0_i32_0 : i32, i32
  }
  func.func @transform_2(%arg0: i32) -> (i32, i32) {
    %c0_i32 = arith.constant 0 : i32
    %c0_i32_0 = arith.constant 0 : i32
    %c0_i32_1 = arith.constant 0 : i32
    return %c0_i32, %c0_i32_0 : i32, i32
  }
  func.func @transform_3(%arg0: i32) -> (i32, i32) {
    %c0_i32 = arith.constant 0 : i32
    %c0_i32_0 = arith.constant 0 : i32
    return %arg0, %c0_i32 : i32, i32
  }
}

</mosaic_0001>

<bundles_post_ra>
// kernel: tile.18
= control target key start
LH: loop header
LB: loop body
LE: loop exit
PB: predicated region body
PF: predicated region fallthrough
CT: control target
= control target key end

     0   :  { %s106_s0 = inlined_call_operand.vmem [shape: f32[8], index: 0, kind: input, shape index: {}]   ;;  %s107_s1 = inlined_call_operand.vmem [shape: f32[120,8], index: 1, kind: output, shape index: {}]  }
   0x1   :  { %v4_v0 = vld [vmem:[%s106_s0] ss:$0 sm:$0xff] }
   0x2   :  { %5 = vst [vmem:[%s107_s1] sm:$0xff] %v4_v0 }
   0x3   :  { %34 = vst [vmem:[%s107_s1 + $0x8] sm:$0xff] %v4_v0 }
   0x4   :  { %35 = vst [vmem:[%s107_s1 + $0x10] sm:$0xff] %v4_v0 }
   0x5   :  { %36 = vst [vmem:[%s107_s1 + $0x18] sm:$0xff] %v4_v0 }
   0x6   :  { %37 = vst [vmem:[%s107_s1 + $0x20] sm:$0xff] %v4_v0 }
   0x7   :  { %38 = vst [vmem:[%s107_s1 + $0x28] sm:$0xff] %v4_v0 }
   0x8   :  { %39 = vst [vmem:[%s107_s1 + $0x30] sm:$0xff] %v4_v0 }
   0x9   :  { %40 = vst [vmem:[%s107_s1 + $0x38] sm:$0xff] %v4_v0 }
   0xa   :  { %41 = vst [vmem:[%s107_s1 + $0x40] sm:$0xff] %v4_v0 }
   0xb   :  { %42 = vst [vmem:[%s107_s1 + $0x48] sm:$0xff] %v4_v0 }
   0xc   :  { %43 = vst [vmem:[%s107_s1 + $0x50] sm:$0xff] %v4_v0 }
   0xd   :  { %44 = vst [vmem:[%s107_s1 + $0x58] sm:$0xff] %v4_v0 }
   0xe   :  { %45 = vst [vmem:[%s107_s1 + $0x60] sm:$0xff] %v4_v0 }
   0xf   :  { %46 = vst [vmem:[%s107_s1 + $0x68] sm:$0xff] %v4_v0 }
  0x10   :  { %47 = vst [vmem:[%s107_s1 + $0x70] sm:$0xff] %v4_v0 }

// kernel: tile.19
= control target key start
LH: loop header
LB: loop body
LE: loop exit
PB: predicated region body
PF: predicated region fallthrough
CT: control target
= control target key end

     0   :  { %vm6_vm0 = vcmask 1043458   ;;  %vm10_vm1 = vcmask 1045508   ;;  %s20_s6 = smov 3  ;;  %s23_s7 = smov 12  ;;  %vm34_vm2 = vcmask 1046534   ;;  %vm14_vm3 = vcmask 1047558   ;;  %s775_s0 = inlined_call_operand.vmem [shape: f32[120,8], index: 0, kind: input, shape index: {}]   ;;  %s776_s1 = inlined_call_operand.vmem [shape: f32[1,960], index: 1, kind: output, shape index: {}]  }
   0x1   :  { %v407_v0 = vld [vmem:[%s775_s0 + $0x69] sm:$0x40]   ;;  %s28_s14 = smov 48  ;;  %s64_s17 = smov 3  ;;  %v415_v7 = vld [vmem:[%s775_s0 + $0x67] sm:$0x40]  }
   0x2   :  { %v404_v1 = vld [vmem:[%s775_s0 + $0xf] ss:$16 sm:%s20_s6]   ;;  %v412_v6 = vld [vmem:[%s775_s0 + $0xd] ss:$16 sm:%s64_s17]   ;;  %s67_s20 = smov 12  ;;  %s72_s21 = smov 48 }
   0x3   :  { %v405_v2 = vld [vmem:[%s775_s0 + $0xf] ss:$16 sm:%s23_s7]   ;;  %v413_v9 = vld [vmem:[%s775_s0 + $0xd] ss:$16 sm:%s67_s20]   ;;  %s42_s28 = smov 3  ;;  %s486_s29 = smov 120  }
   0x4   :  { %v26_v3 = vsel %vm6_vm0, %v405_v2, %v404_v1  ;;  %v406_v4 = vld [vmem:[%s775_s0 + $0xf] ss:$16 sm:%s28_s14]   ;;  %v414_v10 = vld [vmem:[%s775_s0 + $0xd] ss:$16 sm:%s72_s21]   ;;  %v70_v11 = vsel %vm6_vm0, %v413_v9, %v412_v6  ;;  %s45_s3 = smov 12  ;;  %s50_s4 = smov 48 }
   0x5   :  { %v31_v5 = vsel %vm10_vm1, %v406_v4, %v26_v3  ;;  %v408_v12 = vld [vmem:[%s775_s0 + $0xe] ss:$16 sm:%s42_s28]   ;;  %v75_v13 = vsel %vm10_vm1, %v414_v10, %v70_v11  ;;  %s86_s9 = smov 3  ;;  %s89_s14 = smov 12  ;;  %v419_v27 = vld [vmem:[%s775_s0 + $0x66] sm:$0x40]  }
   0x6   :  { %v35_v8 = vsel %vm34_vm2, %v407_v0, %v31_v5  ;;  %v409_v14 = vld [vmem:[%s775_s0 + $0xe] ss:$16 sm:%s45_s3]   ;;  %v79_v16 = vsel %vm34_vm2, %v415_v7, %v75_v13  ;;  %v416_v19 = vld [vmem:[%s775_s0 + $0xc] ss:$16 sm:%s86_s9]   ;;  %s94_s15 = smov 48  ;;  %s487_s16 = smov 104  }
   0x7   :  { %36 = vrot.lane.b32.xlu0 %v35_v8, %s486_s29  ;;  %v410_v15 = vld [vmem:[%s775_s0 + $0xe] ss:$16 sm:%s50_s4]   ;;  %v48_v17 = vsel %vm6_vm0, %v409_v14, %v408_v12  ;;  %80 = vrot.lane.b32.xlu1 %v79_v16, %s487_s16  ;;  %s152_s19 = smov 3  ;;  %s155_s24 = smov 12  ;;  %vm16_vm4 = vcmask 64512   ;;  %vm38_vm5 = vcmask 1048512  }
   0x8   :  { %v411_v18 = vld [vmem:[%s775_s0 + $0x68] sm:$0x40]   ;;  %v53_v20 = vsel %vm10_vm1, %v410_v15, %v48_v17  ;;  %v417_v21 = vld [vmem:[%s775_s0 + $0xc] ss:$16 sm:%s89_s14]   ;;  %s160_s25 = smov 48  ;;  %s174_s30 = smov 3 }
   0x9   :  { %v92_v22 = vsel %vm6_vm0, %v417_v21, %v416_v19  ;;  %v418_v23 = vld [vmem:[%s775_s0 + $0xc] ss:$16 sm:%s94_s15]   ;;  %v428_v24 = vld [vmem:[%s775_s0 + $0x9] ss:$16 sm:%s152_s19]   ;;  %v57_v25 = vsel %vm34_vm2, %v411_v18, %v53_v20  ;;  %s177_s4 = smov 12  ;;  %s182_s9 = smov 48 }
   0xa   :  { %v97_v26 = vsel %vm10_vm1, %v418_v23, %v92_v22  ;;  %v429_v28 = vld [vmem:[%s775_s0 + $0x9] ss:$16 sm:%s155_s24]   ;;  %v432_v31 = vld [vmem:[%s775_s0 + $0x8] ss:$16 sm:%s174_s30]   ;;  %s488_s10 = smov 112   ;;  %s219_s11 = smov 3 }
   0xb   :  { %v430_v29 = vld [vmem:[%s775_s0 + $0x9] ss:$16 sm:%s160_s25]   ;;  %v158_v30 = vsel %vm6_vm0, %v429_v28, %v428_v24  ;;  %v433_v32 = vld [vmem:[%s775_s0 + $0x8] ss:$16 sm:%s177_s4]   ;;  %v101_v33 = vsel %vm34_vm2, %v419_v27, %v97_v26  ;;  %s222_s12 = smov 12  ;;  %s227_s17 = smov 48 }
   0xc   :  { %v163_v34 = vsel %vm10_vm1, %v430_v29, %v158_v30  ;;  %v431_v35 = vld [vmem:[%s775_s0 + $0x63] sm:$0x40]   ;;  %v180_v36 = vsel %vm6_vm0, %v433_v32, %v432_v31  ;;  %v434_v37 = vld [vmem:[%s775_s0 + $0x8] ss:$16 sm:%s182_s9]   ;;  %s489_s18 = smov 96   ;;  %s242_s23 = smov 3 }
   0xd   :  { %v435_v38 = vld [vmem:[%s775_s0 + $0x62] sm:$0x40]   ;;  %v440_v39 = vld [vmem:[%s775_s0 + $0x6] ss:$16 sm:%s219_s11]   ;;  %s245_s26 = smov 12  ;;  %s108_s27 = smov 3  ;;  %v167_v42 = vsel %vm34_vm2, %v431_v35, %v163_v34  ;;  %v185_v43 = vsel %vm10_vm1, %v434_v37, %v180_v36 }
   0xe   :  { %v441_v40 = vld [vmem:[%s775_s0 + $0x6] ss:$16 sm:%s222_s12]   ;;  %v423_v41 = vld [vmem:[%s775_s0 + $0x65] sm:$0x40]   ;;  %s111_s5 = smov 12  ;;  %s116_s6 = smov 48  ;;  %v189_v52 = vsel %vm34_vm2, %v435_v38, %v185_v43 }
   0xf   :  { %58 = vrot.lane.b32.xlu0 %v57_v25, %s488_s10  ;;  %102 = vrot.lane.b32.xlu1 %v101_v33, %s489_s18  ;;  %v442_v44 = vld [vmem:[%s775_s0 + $0x6] ss:$16 sm:%s227_s17]   ;;  %s232_s7 = smov 192  ;;  %v225_v48 = vsel %vm6_vm0, %v441_v40, %v440_v39  ;;  %s250_s16 = smov 48  ;;  %vm60_vm6 = vcmask 982912   ;;  %vm82_vm7 = vcmask 917312  }
  0x10   :  { %v420_v45 = vld [vmem:[%s775_s0 + $0xb] ss:$16 sm:%s108_s27]   ;;  %v444_v49 = vld [vmem:[%s775_s0 + $0x5] ss:$16 sm:%s242_s23]   ;;  %s490_s17 = smov 72   ;;  %s255_s18 = smov 192  ;;  %v230_v56 = vsel %vm10_vm1, %v442_v44, %v225_v48 }
  0x11   :  { %v421_v46 = vld [vmem:[%s775_s0 + $0xb] ss:$16 sm:%s111_s5]   ;;  %v445_v50 = vld [vmem:[%s775_s0 + $0x5] ss:$16 sm:%s245_s26]   ;;  %s288_s21 = smov 3  ;;  %s291_s22 = smov 12 }
  0x12   :  { %v422_v47 = vld [vmem:[%s775_s0 + $0xb] ss:$16 sm:%s116_s6]   ;;  %v114_v51 = vsel %vm6_vm0, %v421_v46, %v420_v45  ;;  %v443_v54 = vld [vmem:[%s775_s0 + $0x6] ss:$16 sm:%s232_s7]   ;;  %v248_v57 = vsel %vm6_vm0, %v445_v50, %v444_v49  ;;  %s491_s25 = smov 88   ;;  %s296_s26 = smov 48 }
  0x13   :  { %v119_v53 = vsel %vm10_vm1, %v422_v47, %v114_v51  ;;  %v446_v58 = vld [vmem:[%s775_s0 + $0x5] ss:$16 sm:%s250_s16]   ;;  %s311_s27 = smov 3  ;;  %s492_s28 = smov 64   ;;  %v427_v60 = vld [vmem:[%s775_s0 + $0x64] sm:$0x40]   ;;  %v235_v63 = vsel %vm14_vm3, %v443_v54, %v230_v56 }
  0x14   :  { %v123_v55 = vsel %vm34_vm2, %v423_v41, %v119_v53  ;;  %v447_v59 = vld [vmem:[%s775_s0 + $0x5] ss:$16 sm:%s255_s18]   ;;  %s314_s2 = smov 12  ;;  %s130_s3 = smov 3  ;;  %v452_v61 = vld [vmem:[%s775_s0 + $0x3] ss:$16 sm:%s288_s21]   ;;  %v253_v0 = vsel %vm10_vm1, %v446_v58, %v248_v57 }
  0x15   :  { %124 = vrot.lane.b32.xlu2 %v123_v55, %s491_s25  ;;  %v453_v62 = vld [vmem:[%s775_s0 + $0x3] ss:$16 sm:%s291_s22]   ;;  %s133_s10 = smov 12  ;;  %s138_s11 = smov 48  ;;  %v258_v12 = vsel %vm14_vm3, %v447_v59, %v253_v0  ;;  %vm104_vm8 = vcmask 851712   ;;  %vm126_vm9 = vcmask 786112  }
  0x16   :  { %v454_v1 = vld [vmem:[%s775_s0 + $0x3] ss:$16 sm:%s296_s26]   ;;  %s301_s14 = smov 192  ;;  %v456_v2 = vld [vmem:[%s775_s0 + $0x2] ss:$16 sm:%s311_s27]   ;;  %s196_s21 = smov 3  ;;  %v294_v8 = vsel %vm6_vm0, %v453_v62, %v452_v61 }
  0x17   :  { %168 = vrot.lane.b32.xlu0 %v167_v42, %s490_s17  ;;  %190 = vrot.lane.b32.xlu1 %v189_v52, %s492_s28  ;;  %v424_v3 = vld [vmem:[%s775_s0 + $0xa] ss:$16 sm:%s130_s3]   ;;  %s199_s26 = smov 12  ;;  %s204_s27 = smov 48  ;;  %v299_v17 = vsel %vm10_vm1, %v454_v1, %v294_v8  ;;  %vm148_vm10 = vcmask 720512   ;;  %vm170_vm11 = vcmask 654912  }
  0x18   :  { %v425_v4 = vld [vmem:[%s775_s0 + $0xa] ss:$16 sm:%s133_s10]   ;;  %v436_v7 = vld [vmem:[%s775_s0 + $0x7] ss:$16 sm:%s196_s21]   ;;  %s319_s30 = smov 48  ;;  %s493_s4 = smov 48  }
  0x19   :  { %v136_v5 = vsel %vm6_vm0, %v425_v4, %v424_v3  ;;  %v426_v6 = vld [vmem:[%s775_s0 + $0xa] ss:$16 sm:%s138_s11]   ;;  %v457_v9 = vld [vmem:[%s775_s0 + $0x2] ss:$16 sm:%s314_s2]   ;;  %s209_s9 = smov 192  ;;  %s324_s12 = smov 192 }
  0x1a   :  { %v141_v10 = vsel %vm10_vm1, %v426_v6, %v136_v5  ;;  %v437_v11 = vld [vmem:[%s775_s0 + $0x7] ss:$16 sm:%s199_s26]   ;;  %v455_v14 = vld [vmem:[%s775_s0 + $0x3] ss:$16 sm:%s301_s14]   ;;  %v317_v18 = vsel %vm6_vm0, %v457_v9, %v456_v2  ;;  %s494_s13 = smov 80   ;;  %s495_s14 = smov 40  }
  0x1b   :  { %v145_v13 = vsel %vm34_vm2, %v427_v60, %v141_v10  ;;  %v202_v15 = vsel %vm6_vm0, %v437_v11, %v436_v7  ;;  %v438_v16 = vld [vmem:[%s775_s0 + $0x7] ss:$16 sm:%s204_s27]   ;;  %v458_v19 = vld [vmem:[%s775_s0 + $0x2] ss:$16 sm:%s319_s30]   ;;  %s265_s15 = smov 3  ;;  %s268_s16 = smov 12  ;;  %v304_v22 = vsel %vm14_vm3, %v455_v14, %v299_v17 }
  0x1c   :  { %v207_v20 = vsel %vm10_vm1, %v438_v16, %v202_v15  ;;  %v439_v21 = vld [vmem:[%s775_s0 + $0x7] ss:$16 sm:%s209_s9]   ;;  %v322_v23 = vsel %vm10_vm1, %v458_v19, %v317_v18  ;;  %v459_v24 = vld [vmem:[%s775_s0 + $0x2] ss:$16 sm:%s324_s12]   ;;  %s273_s25 = smov 48  ;;  %s496_s26 = smov 24  }
  0x1d   :  { %146 = vrot.lane.b32.xlu2 %v145_v13, %s494_s13  ;;  %v448_v25 = vld [vmem:[%s775_s0 + $0x4] ss:$16 sm:%s265_s15]   ;;  %v212_v27 = vsel %vm14_vm3, %v439_v21, %v207_v20  ;;  %v327_v28 = vsel %vm14_vm3, %v459_v24, %v322_v23  ;;  %s278_s29 = smov 192  ;;  %s497_s30 = smov 56   ;;  %vm192_vm12 = vcmask 589312   ;;  %vm215_vm13 = vcmask 523712  }
  0x1e   :  { %v449_v26 = vld [vmem:[%s775_s0 + $0x4] ss:$16 sm:%s268_s16]   ;;  %s498_s2 = smov 16   ;;  %s334_s3 = smov 3  ;;  %vm238_vm14 = vcmask 458112   ;;  %vm261_vm15 = vcmask 392512  }
  0x1f   :  { %236 = vrot.lane.b32.xlu0 %v235_v63, %s493_s4  ;;  %259 = vrot.lane.b32.xlu1 %v258_v12, %s495_s14  ;;  %v271_v29 = vsel %vm6_vm0, %v449_v26, %v448_v25  ;;  %v450_v30 = vld [vmem:[%s775_s0 + $0x4] ss:$16 sm:%s273_s25]   ;;  %s337_s4 = smov 12  ;;  %s342_s11 = smov 48  ;;  %vm330_vm2 = vcmask 195712  }
  0x20   :  { %v276_v31 = vsel %vm10_vm1, %v450_v30, %v271_v29  ;;  %v451_v32 = vld [vmem:[%s775_s0 + $0x4] ss:$16 sm:%s278_s29]   ;;  %v460_v33 = vld [vmem:[%s775_s0 + $0x1] ss:$16 sm:%s334_s3]   ;;  %s347_s14 = smov 192  ;;  %s499_s15 = smov 32  }
  0x21   :  { %v461_v34 = vld [vmem:[%s775_s0 + $0x1] ss:$16 sm:%s337_s4]   ;;  %v281_v35 = vsel %vm14_vm3, %v451_v32, %v276_v31  ;;  %s500_s18 = smov 8   ;;  %s8_s19 = smov 48 }
  0x22   :  { %v340_v36 = vsel %vm6_vm0, %v461_v34, %v460_v33  ;;  %v462_v37 = vld [vmem:[%s775_s0 + $0x1] ss:$16 sm:%s342_s11]   ;;  %s12_s20 = smov 192  ;;  %s2_s21 = smov 3  ;;  %v9_v41 = vld [vmem:[%s775_s0] ss:$16 sm:%s8_s19]  }
  0x23   :  { %v345_v38 = vsel %vm10_vm1, %v462_v37, %v340_v36  ;;  %v463_v39 = vld [vmem:[%s775_s0 + $0x1] ss:$16 sm:%s347_s14]   ;;  %s4_s22 = smov 12  ;;  %v13_v42 = vld [vmem:[%s775_s0] ss:$16 sm:%s12_s20]  }
  0x24   :  { %v350_v40 = vsel %vm14_vm3, %v463_v39, %v345_v38  ;;  %v3_v43 = vld [vmem:[%s775_s0] ss:$16 sm:%s2_s21]  }
  0x25   :  { %213 = vrot.lane.b32.xlu2 %v212_v27, %s497_s30  ;;  %v5_v44 = vld [vmem:[%s775_s0] ss:$16 sm:%s4_s22]  }
  0x26   :  { %v7_v45 = vsel %vm6_vm0, %v5_v44, %v3_v43  ;;  %vm284_vm0 = vcmask 326912  }
  0x27   :  { %305 = vrot.lane.b32.xlu0 %v304_v22, %s496_s26  ;;  %328 = vrot.lane.b32.xlu1 %v327_v28, %s498_s2  ;;  %v11_v46 = vsel %vm10_vm1, %v9_v41, %v7_v45  ;;  %vm307_vm1 = vcmask 261312  }
  0x28   :  { %v15_v47 = vsel %vm14_vm3, %v13_v42, %v11_v46  ;;  %vm353_vm3 = vcmask 130112  }
  0x29   :  { %17 = vst.msk [vmem:[#allocation0] ss:$8 sm:$0xf] %vm16_vm4, %v15_v47  }
  0x2a   :  { %18 = vst.msk [vmem:[#allocation0] ss:$8 sm:$0xf0] %vm16_vm4, %v15_v47  }
  0x2d   :  { %282 = vrot.lane.b32.xlu2 %v281_v35, %s499_s15 }
  0x35   :  { %351 = vrot.lane.b32.xlu2 %v350_v40, %s500_s18 }
  0x6f   :  { %v125_v48 = vpop.permute.xlu2 %124  }
  0x77   :  { %v147_v50 = vpop.permute.xlu2 %146  }
  0x79   :  { %v37_v49 = vpop.permute.xlu0 %36   ;;  %v81_v51 = vpop.permute.xlu1 %80  }
  0x7a   :  { %39 = vst.msk [vmem:[#allocation0] ss:$8 sm:$0xf] %vm38_vm5, %v37_v49  }
  0x7b   :  { %40 = vst.msk [vmem:[#allocation0] ss:$8 sm:$0x70] %vm38_vm5, %v37_v49  }
  0x7f   :  { %v214_v53 = vpop.permute.xlu2 %213  }
  0x81   :  { %v59_v52 = vpop.permute.xlu0 %58   ;;  %v103_v54 = vpop.permute.xlu1 %102  }
  0x82   :  { %61 = vst.msk [vmem:[#allocation0] ss:$8 sm:$0xf] %vm60_vm6, %v59_v52  }
  0x83   :  { %62 = vst.msk [vmem:[#allocation0] ss:$8 sm:$0x70] %vm60_vm6, %v59_v52  }
  0x84   :  { %83 = vst.msk [vmem:[#allocation0] ss:$8 sm:$0xf] %vm82_vm7, %v81_v51  }
  0x85   :  { %84 = vst.msk [vmem:[#allocation0] ss:$8 sm:$0x70] %vm82_vm7, %v81_v51  }
  0x86   :  { %105 = vst.msk [vmem:[#allocation0] ss:$8 sm:$0xf] %vm104_vm8, %v103_v54  }
  0x87   :  { %106 = vst.msk [vmem:[#allocation0] ss:$8 sm:$0x70] %vm104_vm8, %v103_v54   ;;  %v283_v56 = vpop.permute.xlu2 %282  }
  0x88   :  { %127 = vst.msk [vmem:[#allocation0] ss:$8 sm:$0xf] %vm126_vm9, %v125_v48  }
  0x89   :  { %128 = vst.msk [vmem:[#allocation0] ss:$8 sm:$0x70] %vm126_vm9, %v125_v48   ;;  %v169_v55 = vpop.permute.xlu0 %168   ;;  %v191_v57 = vpop.permute.xlu1 %190  }
  0x8a   :  { %149 = vst.msk [vmem:[#allocation0] ss:$8 sm:$0xf] %vm148_vm10, %v147_v50  }
  0x8b   :  { %150 = vst.msk [vmem:[#allocation0] ss:$8 sm:$0x70] %vm148_vm10, %v147_v50  }
  0x8c   :  { %171 = vst.msk [vmem:[#allocation0] ss:$8 sm:$0xf] %vm170_vm11, %v169_v55  }
  0x8d   :  { %172 = vst.msk [vmem:[#allocation0] ss:$8 sm:$0x70] %vm170_vm11, %v169_v55  }
  0x8e   :  { %193 = vst.msk [vmem:[#allocation0] ss:$8 sm:$0xf] %vm192_vm12, %v191_v57  }
  0x8f   :  { %194 = vst.msk [vmem:[#allocation0] ss:$8 sm:$0x70] %vm192_vm12, %v191_v57   ;;  %v352_v59 = vpop.permute.xlu2 %351  }
  0x90   :  { %216 = vst.msk [vmem:[#allocation0] ss:$8 sm:$0xf] %vm215_vm13, %v214_v53  }
  0x91   :  { %217 = vst.msk [vmem:[#allocation0] ss:$8 sm:$0xf0] %vm215_vm13, %v214_v53   ;;  %v237_v58 = vpop.permute.xlu0 %236   ;;  %v260_v60 = vpop.permute.xlu1 %259  }
  0x92   :  { %239 = vst.msk [vmem:[#allocation0] ss:$8 sm:$0xf] %vm238_vm14, %v237_v58  }
  0x93   :  { %240 = vst.msk [vmem:[#allocation0] ss:$8 sm:$0xf0] %vm238_vm14, %v237_v58  }
  0x94   :  { %262 = vst.msk [vmem:[#allocation0] ss:$8 sm:$0xf] %vm261_vm15, %v260_v60  }
  0x95   :  { %263 = vst.msk [vmem:[#allocation0] ss:$8 sm:$0xf0] %vm261_vm15, %v260_v60  }
  0x96   :  { %285 = vst.msk [vmem:[#allocation0] ss:$8 sm:$0xf] %vm284_vm0, %v283_v56  }
  0x97   :  { %286 = vst.msk [vmem:[#allocation0] ss:$8 sm:$0xf0] %vm284_vm0, %v283_v56  }
  0x99   :  { %v306_v61 = vpop.permute.xlu0 %305   ;;  %v329_v62 = vpop.permute.xlu1 %328  }
  0x9a   :  { %308 = vst.msk [vmem:[#allocation0] ss:$8 sm:$0xf] %vm307_vm1, %v306_v61  }
  0x9b   :  { %309 = vst.msk [vmem:[#allocation0] ss:$8 sm:$0xf0] %vm307_vm1, %v306_v61  }
  0x9c   :  { %331 = vst.msk [vmem:[#allocation0] ss:$8 sm:$0xf] %vm330_vm2, %v329_v62  }
  0x9d   :  { %332 = vst.msk [vmem:[#allocation0] ss:$8 sm:$0xf0] %vm330_vm2, %v329_v62  }
  0x9e   :  { %354 = vst.msk [vmem:[#allocation0] ss:$8 sm:$0xf] %vm353_vm3, %v352_v59  }
  0x9f   :  { %355 = vst.msk [vmem:[#allocation0] ss:$8 sm:$0xf0] %vm353_vm3, %v352_v59  }
  0xa5   :  { %v358_v63 = vld [vmem:[#allocation0] sm:$0x1]  ;;  %v363_v0 = vld [vmem:[#allocation0 + $0x8] sm:$0x1]  ;;  %v369_v1 = vld [vmem:[#allocation0 + $0x10] sm:$0x1] }
  0xa6   :  { %361 = vst [vmem:[%s776_s1] sm:$0x1] %v358_v63  ;;  %v375_v2 = vld [vmem:[#allocation0 + $0x18] sm:$0x1]  ;;  %v381_v3 = vld [vmem:[#allocation0 + $0x20] sm:$0x1] }
  0xa7   :  { %464 = vst [vmem:[%s776_s1 + $0x1] sm:$0x1] %v363_v0  ;;  %v387_v4 = vld [vmem:[#allocation0 + $0x28] sm:$0x1]  ;;  %v393_v5 = vld [vmem:[#allocation0 + $0x30] sm:$0x1] }
  0xa8   :  { %465 = vst [vmem:[%s776_s1 + $0x2] sm:$0x1] %v369_v1  ;;  %v399_v6 = vld [vmem:[#allocation0 + $0x38] sm:$0x1] }
  0xa9   :  { %466 = vst [vmem:[%s776_s1 + $0x3] sm:$0x1] %v375_v2 }
  0xaa   :  { %467 = vst [vmem:[%s776_s1 + $0x4] sm:$0x1] %v381_v3 }
  0xab   :  { %468 = vst [vmem:[%s776_s1 + $0x5] sm:$0x1] %v387_v4 }
  0xac   :  { %469 = vst [vmem:[%s776_s1 + $0x6] sm:$0x1] %v393_v5 }
  0xad   :  { %470 = vst [vmem:[%s776_s1 + $0x7] sm:$0x1] %v399_v6 }

// kernel: sconv3d_forward.3
= control target key start
LH: loop header
LB: loop body
LE: loop exit
PB: predicated region body
PF: predicated region fallthrough
CT: control target
= control target key end

     0   :  { %vm153_vm0 = vcmask 523264   ;;  %vm170_vm1 = vcmask 519168   ;;  %s428_s0 = inlined_call_operand.vmem [shape: f32[20,960], index: 0, kind: input, shape index: {}]   ;;  %s429_s1 = inlined_call_operand.vmem [shape: f32[1,960], index: 1, kind: input, shape index: {}]   ;;  %s430_s2 = inlined_call_operand.vmem [shape: f32[1,960], index: 2, kind: input, shape index: {}]   ;;  %s431_s3 = inlined_call_operand.vmem [shape: f32[20,960], index: 3, kind: output, shape index: {}]  }
   0x1   :  { %v14_v0 = vld [vmem:[%s428_s0] sm:$0xff]  ;;  %v15_v5 = vld [vmem:[%s428_s0 + $0x8] sm:$0xff]  ;;  %v16_v8 = vld [vmem:[%s428_s0 + $0x10] sm:$0xff] }
   0x2   :  { %v38_v1 = vld [vmem:[%s429_s1] sm:$0xff]  ;;  %v17_v11 = vld [vmem:[%s428_s0 + $0x18] sm:$0xff]  ;;  %v19_v19 = vld [vmem:[%s428_s0 + $0x28] sm:$0xff] }
   0x3   :  { %v80_v2 = vld [vmem:[%s430_s2] sm:$0xff]  ;;  %v205_v3 = vperm.slane %v38_v1, 0  ;;  %v212_v6 = vperm.slane %v38_v1, 1  ;;  %v219_v9 = vperm.slane %v38_v1, 2  ;;  %v226_v12 = vperm.slane %v38_v1, 3  ;;  %v20_v24 = vld [vmem:[%s428_s0 + $0x30] sm:$0xff] }
   0x4   :  { %v207_v4 = vperm.slane %v80_v2, 0  ;;  %v214_v7 = vperm.slane %v80_v2, 1  ;;  %v221_v10 = vperm.slane %v80_v2, 2  ;;  %v228_v13 = vperm.slane %v80_v2, 3  ;;  %v18_v14 = vld [vmem:[%s428_s0 + $0x20] sm:$0xff]  ;;  %v21_v38 = vld [vmem:[%s428_s0 + $0x38] sm:$0xff] }
   0x5   :  { %v56_v15 = vmul.f32 %v205_v3, %v14_v0  ;;  %v57_v16 = vmul.f32 %v212_v6, %v15_v5  ;;  %v235_v17 = vperm.slane %v38_v1, 4  ;;  %v237_v18 = vperm.slane %v80_v2, 4  ;;  %v22_v33 = vld [vmem:[%s428_s0 + $0x40] sm:$0xff]  ;;  %v23_v39 = vld [vmem:[%s428_s0 + $0x48] sm:$0xff]  ;;  %v24_v40 = vld [vmem:[%s428_s0 + $0x50] sm:$0xff] }
   0x6   :  { %v58_v20 = vmul.f32 %v219_v9, %v16_v8  ;;  %v59_v21 = vmul.f32 %v226_v12, %v17_v11  ;;  %v244_v22 = vperm.slane %v38_v1, 5  ;;  %v246_v23 = vperm.slane %v80_v2, 5  ;;  %v25_v45 = vld [vmem:[%s428_s0 + $0x58] sm:$0xff]  ;;  %v26_v46 = vld [vmem:[%s428_s0 + $0x60] sm:$0xff]  ;;  %v27_v51 = vld [vmem:[%s428_s0 + $0x68] sm:$0xff] }
   0x7   :  { %v98_v25 = vadd.f32 %v207_v4, %v56_v15  ;;  %v99_v26 = vadd.f32 %v214_v7, %v57_v16  ;;  %v60_v27 = vmul.f32 %v235_v17, %v18_v14  ;;  %v254_v28 = vperm.slane %v38_v1, 6  ;;  %v28_v56 = vld [vmem:[%s428_s0 + $0x70] sm:$0xff]  ;;  %v31_v5 = vld [vmem:[%s428_s0 + $0x88] sm:$0xf] }
   0x8   :  { %v100_v29 = vadd.f32 %v221_v10, %v58_v20  ;;  %v101_v30 = vadd.f32 %v228_v13, %v59_v21  ;;  %v61_v31 = vmul.f32 %v244_v22, %v19_v19  ;;  %v259_v32 = vperm.slane %v80_v2, 6  ;;  %v32_v16 = vld [vmem:[%s428_s0 + $0x90] sm:$0xf]  ;;  %v33_v19 = vld [vmem:[%s428_s0 + $0x98] sm:$0xf] }
   0x9   :  { %v122_v34 = vmax.f32 %v98_v25, 0.0  ;;  %v123_v35 = vmax.f32 %v99_v26, 0.0  ;;  %v102_v36 = vadd.f32 %v237_v18, %v60_v27  ;;  %v62_v37 = vmul.f32 %v254_v28, %v20_v24  ;;  %v34_v25 = vld [vmem:[%s428_s0 + $0xa0] sm:$0xf] }
   0xa   :  { %v124_v41 = vmax.f32 %v100_v29, 0.0  ;;  %v125_v42 = vmax.f32 %v101_v30, 0.0  ;;  %v103_v43 = vadd.f32 %v246_v23, %v61_v31  ;;  %v276_v44 = vperm.slane %v38_v1, 7  ;;  %v29_v1 = vld [vmem:[%s428_s0 + $0x78] sm:$0xff]  ;;  %v35_v30 = vld [vmem:[%s428_s0 + $0xa8] sm:$0xf] }
   0xb   :  { %146 = vst [vmem:[%s431_s3] sm:$0xff] %v122_v34  ;;  %v126_v47 = vmax.f32 %v102_v36, 0.0  ;;  %v104_v48 = vadd.f32 %v259_v32, %v62_v37  ;;  %v288_v49 = vperm.slane %v80_v2, 7  ;;  %v64_v50 = vmul.f32 %v205_v3, %v22_v33  ;;  %v30_v2 = vld [vmem:[%s428_s0 + $0x80] sm:$0xf]  ;;  %v36_v36 = vld [vmem:[%s428_s0 + $0xb0] sm:$0xf] }
   0xc   :  { %147 = vst [vmem:[%s431_s3 + $0x8] sm:$0xff] %v123_v35  ;;  %v127_v52 = vmax.f32 %v103_v43, 0.0  ;;  %v63_v53 = vmul.f32 %v276_v44, %v21_v38  ;;  %v65_v54 = vmul.f32 %v212_v6, %v23_v39  ;;  %v66_v55 = vmul.f32 %v219_v9, %v24_v40 }
   0xd   :  { %148 = vst [vmem:[%s431_s3 + $0x10] sm:$0xff] %v124_v41  ;;  %v128_v57 = vmax.f32 %v104_v48, 0.0  ;;  %v106_v58 = vadd.f32 %v207_v4, %v64_v50  ;;  %v67_v59 = vmul.f32 %v226_v12, %v25_v45  ;;  %v68_v60 = vmul.f32 %v235_v17, %v26_v46 }
   0xe   :  { %149 = vst [vmem:[%s431_s3 + $0x18] sm:$0xff] %v125_v42  ;;  %v105_v61 = vadd.f32 %v288_v49, %v63_v53  ;;  %v107_v62 = vadd.f32 %v214_v7, %v65_v54  ;;  %v108_v63 = vadd.f32 %v221_v10, %v66_v55  ;;  %v69_v0 = vmul.f32 %v244_v22, %v27_v51  ;;  %v37_v42 = vld [vmem:[%s428_s0 + $0xb8] sm:$0xf] }
   0xf   :  { %150 = vst [vmem:[%s431_s3 + $0x20] sm:$0xff] %v126_v47  ;;  %v130_v8 = vmax.f32 %v106_v58, 0.0  ;;  %v109_v11 = vadd.f32 %v228_v13, %v67_v59  ;;  %v110_v14 = vadd.f32 %v237_v18, %v68_v60  ;;  %v70_v15 = vmul.f32 %v254_v28, %v28_v56 }
  0x10   :  { %151 = vst [vmem:[%s431_s3 + $0x28] sm:$0xff] %v127_v52  ;;  %v129_v20 = vmax.f32 %v105_v61, 0.0  ;;  %v131_v21 = vmax.f32 %v107_v62, 0.0  ;;  %v111_v24 = vadd.f32 %v246_v23, %v69_v0  ;;  %v132_v26 = vmax.f32 %v108_v63, 0.0 }
  0x11   :  { %152 = vst [vmem:[%s431_s3 + $0x30] sm:$0xff] %v128_v57  ;;  %v112_v27 = vadd.f32 %v259_v32, %v70_v15  ;;  %v71_v29 = vmul.f32 %v276_v44, %v29_v1  ;;  %v133_v31 = vmax.f32 %v109_v11, 0.0  ;;  %v72_v33 = vmul.f32 %v205_v3, %v30_v2 }
  0x12   :  { %154 = vst.msk [vmem:[%s431_s3 + $0x38] sm:$0xff] %vm153_vm0, %v129_v20  ;;  %v73_v34 = vmul.f32 %v212_v6, %v31_v5  ;;  %v74_v35 = vmul.f32 %v219_v9, %v32_v16  ;;  %v134_v37 = vmax.f32 %v110_v14, 0.0  ;;  %v75_v39 = vmul.f32 %v226_v12, %v33_v19 }
  0x13   :  { %155 = vst [vmem:[%s431_s3 + $0x40] sm:$0xff] %v130_v8  ;;  %v113_v38 = vadd.f32 %v288_v49, %v71_v29  ;;  %v76_v40 = vmul.f32 %v235_v17, %v34_v25  ;;  %v135_v3 = vmax.f32 %v111_v24, 0.0  ;;  %v114_v6 = vadd.f32 %v207_v4, %v72_v33 }
  0x14   :  { %156 = vst [vmem:[%s431_s3 + $0x48] sm:$0xff] %v131_v21  ;;  %v115_v9 = vadd.f32 %v214_v7, %v73_v34  ;;  %v77_v41 = vmul.f32 %v244_v22, %v35_v30  ;;  %v136_v12 = vmax.f32 %v112_v27, 0.0  ;;  %v116_v17 = vadd.f32 %v221_v10, %v74_v35 }
  0x15   :  { %157 = vst [vmem:[%s431_s3 + $0x50] sm:$0xff] %v132_v26  ;;  %v78_v43 = vmul.f32 %v254_v28, %v36_v36  ;;  %v137_v4 = vmax.f32 %v113_v38, 0.0  ;;  %v117_v7 = vadd.f32 %v228_v13, %v75_v39  ;;  %v138_v22 = vmax.f32 %v114_v6, 0.0 }
  0x16   :  { %158 = vst [vmem:[%s431_s3 + $0x58] sm:$0xff] %v133_v31  ;;  %v118_v45 = vadd.f32 %v237_v18, %v76_v40  ;;  %v79_v46 = vmul.f32 %v276_v44, %v37_v42  ;;  %v139_v10 = vmax.f32 %v115_v9, 0.0  ;;  %v119_v28 = vadd.f32 %v246_v23, %v77_v41 }
  0x17   :  { %159 = vst [vmem:[%s431_s3 + $0x60] sm:$0xff] %v134_v37  ;;  %v140_v13 = vmax.f32 %v116_v17, 0.0  ;;  %v120_v47 = vadd.f32 %v259_v32, %v78_v43  ;;  %v141_v18 = vmax.f32 %v117_v7, 0.0 }
  0x18   :  { %160 = vst [vmem:[%s431_s3 + $0x68] sm:$0xff] %v135_v3  ;;  %v121_v44 = vadd.f32 %v288_v49, %v79_v46  ;;  %v142_v23 = vmax.f32 %v118_v45, 0.0  ;;  %v143_v48 = vmax.f32 %v119_v28, 0.0 }
  0x19   :  { %161 = vst [vmem:[%s431_s3 + $0x70] sm:$0xff] %v136_v12  ;;  %v144_v32 = vmax.f32 %v120_v47, 0.0 }
  0x1a   :  { %162 = vst.msk [vmem:[%s431_s3 + $0x78] sm:$0xff] %vm153_vm0, %v137_v4  ;;  %v145_v49 = vmax.f32 %v121_v44, 0.0 }
  0x1b   :  { %163 = vst [vmem:[%s431_s3 + $0x80] sm:$0xf] %v138_v22 }
  0x1c   :  { %164 = vst [vmem:[%s431_s3 + $0x88] sm:$0xf] %v139_v10 }
  0x1d   :  { %165 = vst [vmem:[%s431_s3 + $0x90] sm:$0xf] %v140_v13 }
  0x1e   :  { %166 = vst [vmem:[%s431_s3 + $0x98] sm:$0xf] %v141_v18 }
  0x1f   :  { %167 = vst [vmem:[%s431_s3 + $0xa0] sm:$0xf] %v142_v23 }
  0x20   :  { %168 = vst [vmem:[%s431_s3 + $0xa8] sm:$0xf] %v143_v48 }
  0x21   :  { %169 = vst [vmem:[%s431_s3 + $0xb0] sm:$0xf] %v144_v32 }
  0x22   :  { %171 = vst.msk [vmem:[%s431_s3 + $0xb8] sm:$0xf] %vm170_vm1, %v145_v49 }

// kernel: sconv3d_forward.2
= control target key start
LH: loop header
LB: loop body
LE: loop exit
PB: predicated region body
PF: predicated region fallthrough
CT: control target
= control target key end

     0   :  { %s3896_s18 = smov 0   ;;  %s3898_s19 = smov 0   ;;  %s6389_s0 = inlined_call_operand.vmem [shape: bf16[2,12,160,8], index: 0, kind: input, shape index: {}, may-alias: {0,1,2}]   ;;  %s6390_s1 = inlined_call_operand.vmem [shape: bf16[2,12,160,8], index: 1, kind: input, shape index: {}, may-alias: {0,1,2}]   ;;  %s6391_s2 = inlined_call_operand.vmem [shape: bf16[2,12,160,8], index: 2, kind: input, shape index: {}, may-alias: {0,1,2}]   ;;  %s6392_s3 = inlined_call_operand.vmem [shape: bf16[224,8], index: 3, kind: input, shape index: {}]   ;;  %s6393_s4 = inlined_call_operand.vmem [shape: f32[2,10,120,8], index: 4, kind: output, shape index: {0}]   ;;  %s6394_s5 = inlined_call_operand.vmem [shape: f32[2,10,8,8], index: 5, kind: output, shape index: {1}]  }
   0x1   :  { %s3900_s20 = smov 0   ;;  %s3902_s21 = smov 0  }
   0x2   :  { %s3904_s22 = smov 0  }
   0x3 LB: > { %s25_s23 = sadd.s32 1, %s3839_s20  ;;  %s28_s24 = sadd.s32 1, %s3843_s21  ;;  %s3847_s22 = sphi %s3904_s22, %s16_s22   ;;  %s3843_s21 = sphi %s3902_s21, %s6623_s21   ;;  %s3839_s20 = sphi %s3900_s20, %s6622_s20   ;;  %s3835_s19 = sphi %s3898_s19, %s6621_s19   ;;  %s3831_s18 = sphi %s3896_s18, %s6620_s18  }
   0x4   : > { %p26_p0 = scmp.ge.s32.totalorder %s25_s23, 10  ;;  %p3410_p1 = scmp.ge.s32.totalorder %s3847_s22, 1 }
   0x5   : > { %p252_p2 = scmp.lt.s32.totalorder %s3847_s22, 21 }
   0x6   : > { %s6625_s23 = smov (%p26_p0, %s25_s23), 0  ;;  %s6627_s24 = smov (!%p26_p0, %s28_s24), %s3843_s21 }
   0x7   : > { %p253_p3 = pnand %p3410_p1, %p252_p2  ;;  %p30_p4 = scmp.ge.s32.totalorder %s6627_s24, 2 }
   0x9   : > { %s6629_s24 = smov (%p30_p4, %s6627_s24), 0  ;;  %256 = sbr.rel (%p253_p3) target bundleno = 840 (0x348), region = 36 }
   0xe   : > { %p316_p5 = scmp.lt.s32.totalorder %s3835_s19, 1  ;;  %p318_p6 = scmp.lt.s32.totalorder %s3831_s18, 11  ;;  %vm567_vm0 = vcmask 1046528   ;;  %vm484_vm1 = vsmask.f32 7424  ;;  %vm613_vm2 = vcmask 1045504  }
   0xf   : > { %s3849_s8 = smov 16   ;;  %s3850_s9 = smov 8   ;;  %vm648_vm3 = vsmask.f32 5376  ;;  %vm6431_vm4 = vcmask 1044480   ;;  %vm1240_vm5 = vcmask 64512  }
  0x10   : > { %s6631_s19 = smov (!%p316_p5, %s3835_s19), 1  ;;  %s3851_s10 = smov 24   ;;  %vm1258_vm6 = vcmask 130048   ;;  %vm1275_vm7 = vcmask 195584   ;;  %vm1292_vm8 = vcmask 261120   ;;  %vm1309_vm9 = vcmask 326656  }
  0x11   : > { %s319_s25 = scalar_select %p318_p6, %s3831_s18, 11  ;;  %vm1326_vm10 = vcmask 392192   ;;  %vm1343_vm11 = vcmask 457728   ;;  %vm1360_vm12 = vcmask 523264   ;;  %vm6408_vm13 = vcmask 588800  }
  0x12   : > { %s3933_s26 = smul.u32 240, %s6631_s19  ;;  %s3852_s11 = smov 32   ;;  %vm1602_vm14 = vsmask.f32 256  ;;  %vm1767_vm15 = vsmask.f32 6400 }
  0x13   : > { %s3735_s27 = smul.u32 20, %s319_s25  ;;  %s3853_s12 = smov 40  }
  0x14   : > { %s3854_s13 = smov 48   ;;  %s3855_s14 = smov 56  }
  0x15   : > { %s322_s28 = sadd.s32 %s3933_s26, %s3735_s27  ;;  %s325_s15 = sadd.s32 1, %s3831_s18 }
  0x16   : > { %s3411_s29 = sshll.u32 %s322_s28, 2  ;;  %s3856_s16 = smov 64  }
  0x17   : > { %s3939_s7 = scalar_lea.vmem %s6389_s0, %s3411_s29  ;;  %p328_p7 = scmp.lt.s32.totalorder %s325_s15, 11 }
  0x18   : > { %v3628_v0 = vld [vmem:[%s3939_s7] sm:$0xf0]  ;;  %v3943_v1 = vld [vmem:[%s3939_s7 + $0x8] sm:$0xff]   ;;  %v3629_v2 = vld [vmem:[%s3939_s7] sm:$0xe]  ;;  %s3857_s6 = smov 72  }
  0x19   : > { %v3630_v3 = vor.u32 %v3629_v2, %v3628_v0  ;;  %v569_v4 = vrot.slane %v3943_v1, 1  ;;  %v3948_v5 = vld [vmem:[%s3939_s7 + $0x10] sm:$0xff]   ;;  %v3951_v6 = vld [vmem:[%s3939_s7 + $0x18] sm:$0xff]   ;;  %v3497_v7 = vld [vmem:[%s3939_s7] sm:$0xff]   ;;  %v493_v8 = vshll.u32 %v3943_v1, 16  ;;  %v497_v31 = vshrl.u32 %v3943_v1, 16 }
  0x1a   : > { %v501_v9 = vshll.u32 %v3948_v5, 16  ;;  %v505_v10 = vshrl.u32 %v3948_v5, 16  ;;  %v509_v11 = vshll.u32 %v3951_v6, 16  ;;  %v3959_v12 = vld [vmem:[%s3939_s7 + $0x20] sm:$0xff]   ;;  %v3962_v13 = vld [vmem:[%s3939_s7 + $0x28] sm:$0xff]   ;;  %v486_v15 = vshrl.u32 %v3497_v7, 16 }
  0x1b   : > { %v568_v14 = vrot.slane %v3630_v3, 1  ;;  %v488_v16 = vshll.u32 %v3497_v7, 16  ;;  %v517_v19 = vshll.u32 %v3959_v12, 16  ;;  %v521_v20 = vshrl.u32 %v3959_v12, 16  ;;  %v3973_v28 = vld [vmem:[%s3939_s7 + $0x38] sm:$0xff]   ;;  %v3979_v35 = vld [vmem:[%s3939_s7 + $0x30] sm:$0xff]  }
  0x1c   : > { %v503_v17 = vrot.slane %v501_v9, 1  ;;  %v511_v18 = vrot.slane %v509_v11, 1  ;;  %v495_v23 = vrot.slane %v493_v8, 1  ;;  %v525_v24 = vshll.u32 %v3962_v13, 16  ;;  %v380_v32 = vld [vmem:[%s3939_s7 + $0x3c] sm:$0x1] }
  0x1d   : > { %v570_v21 = vsel %vm567_vm0, %v568_v14, %v569_v4  ;;  %v490_v22 = vrot.slane %v488_v16, 1  ;;  %v519_v26 = vrot.slane %v517_v19, 1  ;;  %v513_v27 = vshrl.u32 %v3951_v6, 16  ;;  %v4043_v19 = vld [vmem:[%s3939_s7 + $0x24] sm:$0xff]   ;;  %s6633_s15 = smov (!%p328_p7, %s325_s15), 11  ;;  %p349_p9 = scmp.lt.s32.totalorder %s3831_s18, 9 }
  0x1e   : > { %583 = vrot.lane.b32.xlu2 %v570_v21, %s3849_s8  ;;  %v507_v25 = vor.u32 %v505_v10, %v503_v17  ;;  %v527_v30 = vrot.slane %v525_v24, 1  ;;  %v3984_v37 = vunpack.c.l.b16 %v3973_v28  ;;  %v482_v39 = vunpack.c.l.b16 %v380_v32  ;;  %v4026_v10 = vld [vmem:[%s3939_s7 + $0x14] sm:$0xff]   ;;  %v384_v21 = vld [vmem:[%s3939_s7 + $0x40] sm:$0x3]  ;;  %s3737_s17 = smul.u32 20, %s6633_s15  ;;  %s3858_s15 = smov 80  }
  0x1f   : > { %v491_v29 = vor.u32 %v490_v22, %v486_v15  ;;  %v523_v34 = vor.u32 %v521_v20, %v519_v26  ;;  %v515_v38 = vor.u32 %v513_v27, %v511_v18  ;;  %v499_v41 = vor.u32 %v497_v31, %v495_v23  ;;  %v4046_v20 = vld [vmem:[%s3939_s7 + $0x2c] sm:$0xff]  }
  0x20   : > { %v512_v33 = vsel %vm484_vm1, %v507_v25, %v511_v18  ;;  %v529_v42 = vshrl.u32 %v3962_v13, 16  ;;  %v533_v43 = vshll.u32 %v3979_v35, 16  ;;  %v3991_v44 = vpack.c.b16 %v482_v39, %v3984_v37  ;;  %s332_s25 = sadd.s32 %s3737_s17, %s3933_s26  ;;  %s3859_s17 = smov 88  }
  0x21   : > { %552 = vrot.lane.b32.xlu1 %v512_v33, %s3850_s9  ;;  %v496_v36 = vsel %vm484_vm1, %v491_v29, %v495_v23  ;;  %v528_v40 = vsel %vm484_vm1, %v523_v34, %v527_v30  ;;  %v520_v45 = vsel %vm484_vm1, %v515_v38, %v519_v26  ;;  %v504_v47 = vsel %vm484_vm1, %v499_v41, %v503_v17  ;;  %v4052_v23 = vld [vmem:[%s3939_s7 + $0x1c] sm:$0xff]   ;;  %s3412_s27 = sshll.u32 %s332_s25, 2  ;;  %s3860_s25 = smov 96  }
  0x22   : > { %548 = vrot.lane.b32.xlu0 %v496_v36, %s3850_s9  ;;  %v541_v46 = vshll.u32 %v3991_v44, 16  ;;  %v531_v48 = vor.u32 %v529_v42, %v527_v30  ;;  %v535_v49 = vrot.slane %v533_v43, 1  ;;  %v537_v50 = vshrl.u32 %v3979_v35, 16  ;;  %s4292_s30 = scalar_lea.vmem %s6390_s1, %s3412_s27  ;;  %s336_s27 = sadd.s32 2, %s3831_s18 }
  0x23   : > { %v545_v52 = vshrl.u32 %v3991_v44, 16  ;;  %v573_v57 = vrot.slane %v3951_v6, 1  ;;  %v575_v58 = vrot.slane %v3959_v12, 1  ;;  %v571_v59 = vrot.slane %v3948_v5, 1  ;;  %v382_v6 = vld [vmem:[%s3939_s7 + $0x4] sm:$0xc] }
  0x24   : > { %v543_v51 = vrot.slane %v541_v46, 1  ;;  %v536_v53 = vsel %vm484_vm1, %v531_v48, %v535_v49  ;;  %v539_v54 = vor.u32 %v537_v50, %v535_v49  ;;  %v3506_v61 = vunpack.c.l.b16 %v3948_v5  ;;  %p4531_p8 = scmp.lt.s32.totalorder %s336_s27, 11  ;;  %s6637_s18 = smov (!%p349_p9, %s3831_s18), 9 }
  0x25   : > { %v576_v60 = vsel %vm567_vm0, %v573_v57, %v575_v58  ;;  %v574_v62 = vsel %vm567_vm0, %v571_v59, %v573_v57  ;;  %v572_v63 = vsel %vm567_vm0, %v569_v4, %v571_v59  ;;  %v579_v0 = vrot.slane %v3979_v35, 1 }
  0x26   : > { %556 = vrot.lane.b32.xlu2 %v528_v40, %s3850_s9  ;;  %v547_v55 = vor.u32 %v545_v52, %v543_v51  ;;  %v544_v56 = vsel %vm484_vm1, %v539_v54, %v543_v51  ;;  %v581_v2 = vrot.slane %v3991_v44, 1  ;;  %v3503_v3 = vunpack.c.h.b16 %v3943_v1  ;;  %s6635_s27 = smov (!%p4531_p8, %s336_s27), 11 }
  0x27   : > { %v577_v7 = vrot.slane %v3962_v13, 1  ;;  %v3502_v8 = vunpack.c.l.b16 %v3943_v1  ;;  %v602_v9 = vunpack.c.l.b16 %v382_v6  ;;  %v617_v16 = vrot.slane %v4026_v10, 2  ;;  %s3738_s29 = smul.u32 20, %s6635_s27 }
  0x28   : > { %v582_v4 = vsel %vm567_vm0, %v579_v0, %v581_v2  ;;  %v4030_v11 = vpack.c.b16 %v3506_v61, %v3503_v3  ;;  %v621_v24 = vrot.slane %v4043_v19, 2  ;;  %v623_v25 = vrot.slane %v4046_v20, 2 }
  0x29   : > { %554 = vrot.lane.b32.xlu1 %v520_v45, %s3850_s9  ;;  %v580_v12 = vsel %vm567_vm0, %v577_v7, %v579_v0  ;;  %v605_v13 = vpack.c.b16 %v3502_v8, %v602_v9  ;;  %v578_v14 = vsel %vm567_vm0, %v575_v58, %v577_v7  ;;  %v3523_v26 = vunpack.c.h.b16 %v3979_v35  ;;  %v385_v0 = vld [vmem:[%s3939_s7 + $0x40] sm:$0x7] }
  0x2a   : > { %550 = vrot.lane.b32.xlu0 %v504_v47, %s3850_s9  ;;  %v615_v15 = vrot.slane %v4030_v11, 2  ;;  %v4058_v27 = vunpack.c.h.b16 %v3973_v28  ;;  %v604_v29 = vunpack.c.l.b16 %v384_v21  ;;  %v619_v30 = vrot.slane %v4052_v23, 2 }
  0x2b   : > { %v614_v17 = vrot.slane %v605_v13, 2  ;;  %v624_v31 = vsel %vm613_vm2, %v621_v24, %v623_v25  ;;  %v4065_v32 = vpack.c.b16 %v3984_v37, %v3523_v26  ;;  %v667_v34 = vshrl.u32 %v4026_v10, 16 }
  0x2c   : > { %v618_v18 = vsel %vm613_vm2, %v615_v15, %v617_v16  ;;  %v612_v33 = vpack.c.b16 %v604_v29, %v4058_v27  ;;  %v670_v36 = vshll.u32 %v4026_v10, 16  ;;  %v676_v28 = vshrl.u32 %v4052_v23, 16 }
  0x2d   : > { %v616_v22 = vsel %vm613_vm2, %v614_v17, %v615_v15  ;;  %v679_v38 = vshll.u32 %v4052_v23, 16  ;;  %v622_v39 = vsel %vm613_vm2, %v619_v30, %v621_v24  ;;  %v620_v40 = vsel %vm613_vm2, %v617_v16, %v619_v30  ;;  %v386_v16 = vld [vmem:[%s3939_s7 + $0x4] sm:$0x8] }
  0x2e   : > { %558 = vrot.lane.b32.xlu2 %v536_v53, %s3850_s9  ;;  %v627_v41 = vrot.slane %v612_v33, 2  ;;  %v625_v42 = vrot.slane %v4065_v32, 2  ;;  %v669_v43 = vrot.slane %v667_v34, 2  ;;  %v672_v44 = vrot.slane %v670_v36, 3 }
  0x2f   : > { %v678_v45 = vrot.slane %v676_v28, 2  ;;  %v681_v46 = vrot.slane %v679_v38, 3  ;;  %v658_v47 = vshrl.u32 %v4030_v11, 16  ;;  %v661_v48 = vshll.u32 %v4030_v11, 16 }
  0x30   : > { %v650_v49 = vshrl.u32 %v605_v13, 16  ;;  %v653_v50 = vshll.u32 %v605_v13, 16  ;;  %v628_v51 = vsel %vm613_vm2, %v625_v42, %v627_v41  ;;  %v673_v52 = vor.u32 %v672_v44, %v669_v43 }
  0x31   : > { %562 = vrot.lane.b32.xlu1 %v547_v55, %s3850_s9  ;;  %v682_v53 = vor.u32 %v681_v46, %v678_v45  ;;  %v660_v54 = vrot.slane %v658_v47, 2  ;;  %v663_v55 = vrot.slane %v661_v48, 3  ;;  %v694_v58 = vshrl.u32 %v4046_v20, 16 }
  0x32   : > { %560 = vrot.lane.b32.xlu0 %v544_v56, %s3850_s9  ;;  %v652_v56 = vrot.slane %v650_v49, 2  ;;  %v655_v57 = vrot.slane %v653_v50, 3  ;;  %v626_v59 = vsel %vm613_vm2, %v623_v25, %v625_v42  ;;  %v685_v9 = vshrl.u32 %v4043_v19, 16 }
  0x33   : > { %v664_v3 = vor.u32 %v663_v55, %v660_v54  ;;  %v696_v7 = vrot.slane %v694_v58, 2  ;;  %v646_v15 = vunpack.c.l.b16 %v385_v0  ;;  %v737_v26 = vunpack.c.l.b16 %v386_v16 }
  0x34   : > { %v656_v6 = vor.u32 %v655_v57, %v652_v56  ;;  %v687_v21 = vrot.slane %v685_v9, 2  ;;  %v741_v44 = vrot.slane %v4030_v11, 3  ;;  %v745_v50 = vrot.slane %v4052_v23, 3 }
  0x35   : > { %v674_v17 = vsel %vm648_vm3, %v664_v3, %v673_v52  ;;  %v647_v29 = vpack.c.b16 %v646_v15, %v4058_v27  ;;  %v738_v33 = vpack.c.b16 %v3502_v8, %v737_v26  ;;  %v751_v56 = vrot.slane %v4065_v32, 3 }
  0x36   : > { %589 = vrot.lane.b32.xlu2 %v576_v60, %s3849_s8  ;;  %v697_v60 = vshll.u32 %v4046_v20, 16  ;;  %v749_v0 = vrot.slane %v4046_v20, 3 }
  0x37   : > { %v740_v43 = vrot.slane %v738_v33, 3  ;;  %v753_v57 = vrot.slane %v647_v29, 3 }
  0x39   : > { %587 = vrot.lane.b32.xlu1 %v574_v62, %s3849_s8  ;;  %v703_v62 = vshrl.u32 %v4065_v32, 16  ;;  %v742_v1 = vsel %vm6431_vm4, %v740_v43, %v741_v44 }
  0x3a   : > { %585 = vrot.lane.b32.xlu0 %v572_v63, %s3849_s8  ;;  %v706_v63 = vshll.u32 %v4065_v32, 16 }
  0x3b   : > { %v705_v13 = vrot.slane %v703_v62, 2 }
  0x3e   : > { %595 = vrot.lane.b32.xlu2 %v582_v4, %s3849_s8  ;;  %v688_v4 = vshll.u32 %v4043_v19, 16 }
  0x41   : > { %593 = vrot.lane.b32.xlu1 %v580_v12, %s3849_s8  ;;  %v699_v12 = vrot.slane %v697_v60, 3 }
  0x42   : > { %591 = vrot.lane.b32.xlu0 %v578_v14, %s3849_s8  ;;  %v708_v14 = vrot.slane %v706_v63, 3 }
  0x43   : > { %v700_v24 = vor.u32 %v699_v12, %v696_v7 }
  0x44   : > { %v709_v25 = vor.u32 %v708_v14, %v705_v13  ;;  %v3611_v13 = vld [vmem:[%s3939_s7 + $0x40] sm:$0xff]  }
  0x45   : > { %v3531_v14 = vunpack.c.h.b16 %v3611_v13  ;;  %v3530_v16 = vunpack.c.l.b16 %v3611_v13 }
  0x46   : > { %631 = vrot.lane.b32.xlu2 %v618_v18, %s3851_s10  ;;  %v665_v18 = vsel %vm648_vm3, %v656_v6, %v664_v3  ;;  %v752_v3 = vsel %vm6431_vm4, %v749_v0, %v751_v56 }
  0x49   : > { %629 = vrot.lane.b32.xlu1 %v616_v22, %s3851_s10  ;;  %v690_v22 = vrot.slane %v688_v4, 3 }
  0x4a   : > { %597 = vrot.lane.b32.xlu0 %v581_v2, %s3849_s8  ;;  %v683_v2 = vsel %vm648_vm3, %v673_v52, %v682_v53  ;;  %v743_v52 = vrot.slane %v4026_v10, 3 }
  0x4b   : > { %v691_v30 = vor.u32 %v690_v22, %v687_v21  ;;  %v801_v21 = vrot.slane %v679_v38, 1  ;;  %v796_v38 = vrot.slane %v661_v48, 1  ;;  %v810_v48 = vrot.slane %v706_v63, 1 }
  0x4c   : > { %v746_v54 = vsel %vm6431_vm4, %v743_v52, %v745_v50  ;;  %v744_v55 = vsel %vm6431_vm4, %v741_v44, %v743_v52 }
  0x4d   : > { %v692_v42 = vsel %vm648_vm3, %v682_v53, %v691_v30  ;;  %v803_v26 = vor.u32 %v801_v21, %v676_v28 }
  0x4e   : > { %637 = vrot.lane.b32.xlu2 %v624_v31, %s3851_s10  ;;  %v710_v31 = vsel %vm648_vm3, %v700_v24, %v709_v25 }
  0x51   : > { %635 = vrot.lane.b32.xlu1 %v622_v39, %s3851_s10  ;;  %v712_v39 = vshrl.u32 %v647_v29, 16 }
  0x52   : > { %633 = vrot.lane.b32.xlu0 %v620_v40, %s3851_s10  ;;  %v715_v40 = vshll.u32 %v647_v29, 16  ;;  %v804_v29 = vrot.slane %v688_v4, 1  ;;  %v797_v4 = vor.u32 %v796_v38, %v658_v47  ;;  %v812_v47 = vor.u32 %v810_v48, %v703_v62 }
  0x53   : > { %v714_v45 = vrot.slane %v712_v39, 2 }
  0x54   : > { %v717_v46 = vrot.slane %v715_v40, 3  ;;  %v805_v28 = vsel %vm484_vm1, %v803_v26, %v804_v29  ;;  %v390_v40 = vld [vmem:[%s3939_s7 + $0xc] sm:$0xe]  ;;  %v806_v62 = vor.u32 %v804_v29, %v685_v9 }
  0x55   : > { %v846_v43 = vunpack.c.l.b16 %v390_v40  ;;  %v3533_v40 = vld [vmem:[%s4292_s30] sm:$0xff]  }
  0x56   : > { %643 = vrot.lane.b32.xlu2 %v627_v41, %s3851_s10  ;;  %v701_v41 = vsel %vm648_vm3, %v691_v30, %v700_v24  ;;  %v718_v8 = vor.u32 %v717_v46, %v714_v45  ;;  %v4182_v24 = vpack.c.b16 %v3530_v16, %v4058_v27  ;;  %v389_v27 = vld [vmem:[%s3939_s7 + $0x48] sm:$0x1] }
  0x58   : > { %v719_v49 = vsel %vm648_vm3, %v709_v25, %v718_v8  ;;  %v798_v25 = vrot.slane %v670_v36, 1  ;;  %v814_v33 = vshll.u32 %v4182_v24, 16 }
  0x59   : > { %641 = vrot.lane.b32.xlu1 %v628_v51, %s3851_s10  ;;  %v747_v51 = vrot.slane %v4043_v19, 3 }
  0x5a   : > { %639 = vrot.lane.b32.xlu0 %v626_v59, %s3851_s10  ;;  %v800_v36 = vor.u32 %v798_v25, %v667_v34  ;;  %v816_v63 = vrot.slane %v814_v33, 1 }
  0x5b   : > { %v748_v53 = vsel %vm6431_vm4, %v745_v50, %v747_v51  ;;  %v750_v6 = vsel %vm6431_vm4, %v747_v51, %v749_v0 }
  0x5c   : > { %v802_v34 = vsel %vm484_vm1, %v800_v36, %v801_v21 }
  0x5e   : > { %724 = vrot.lane.b32.xlu2 %v683_v2, %s3852_s11  ;;  %v754_v2 = vsel %vm6431_vm4, %v751_v56, %v753_v57 }
  0x61   : > { %722 = vrot.lane.b32.xlu1 %v674_v17, %s3852_s11  ;;  %v776_v17 = vpack.c.b16 %v3531_v14, %v3531_v14 }
  0x62   : > { %720 = vrot.lane.b32.xlu0 %v665_v18, %s3852_s11 }
  0x66   : > { %730 = vrot.lane.b32.xlu2 %v710_v31, %s3852_s11 }
  0x69   : > { %728 = vrot.lane.b32.xlu1 %v701_v41, %s3852_s11  ;;  %v794_v41 = vunpack.c.l.b16 %v389_v27 }
  0x6a   : > { %726 = vrot.lane.b32.xlu0 %v692_v42, %s3852_s11  ;;  %v807_v42 = vrot.slane %v697_v60, 1  ;;  %v817_v60 = vsel %vm484_vm1, %v812_v47, %v816_v63 }
  0x6b   : > { %v4222_v45 = vpack.c.b16 %v794_v41, %v3531_v14  ;;  %v851_v14 = vrot.slane %v4052_v23, 1 }
  0x6c   : > { %v809_v46 = vor.u32 %v807_v42, %v694_v58  ;;  %v808_v58 = vsel %vm484_vm1, %v806_v62, %v807_v42  ;;  %v4313_v42 = vld [vmem:[%s4292_s30 + $0x20] sm:$0xff]   ;;  %v939_v62 = vshll.u32 %v3533_v40, 16 }
  0x6d   : > { %v822_v50 = vshll.u32 %v4222_v45, 16  ;;  %v861_v26 = vrot.slane %v4222_v45, 1 }
  0x6e   : > { %755 = vrot.lane.b32.xlu2 %v742_v1, %s3853_s12  ;;  %v811_v51 = vsel %vm484_vm1, %v809_v46, %v810_v48  ;;  %v4299_v48 = vld [vmem:[%s4292_s30 + $0x8] sm:$0xff]  }
  0x6f   : > { %v824_v5 = vrot.slane %v822_v50, 1  ;;  %v944_v50 = vshll.u32 %v4299_v48, 16 }
  0x71   : > { %734 = vrot.lane.b32.xlu1 %v718_v8, %s3852_s11  ;;  %v847_v8 = vpack.c.b16 %v3506_v61, %v846_v43  ;;  %v826_v61 = vshrl.u32 %v4222_v45, 16  ;;  %v4326_v43 = vld [vmem:[%s4292_s30 + $0x10] sm:$0xff]  }
  0x72   : > { %732 = vrot.lane.b32.xlu0 %v719_v49, %s3852_s11  ;;  %v952_v46 = vshll.u32 %v4326_v43, 16 }
  0x73   : > { %v848_v52 = vrot.slane %v847_v8, 1 }
  0x76   : > { %761 = vrot.lane.b32.xlu2 %v748_v53, %s3853_s12  ;;  %v849_v53 = vrot.slane %v4026_v10, 1 }
  0x78   : > { %v4146_v59 = vpop.permute.xlu2 %583  ;;  %v850_v56 = vsel %vm567_vm0, %v848_v52, %v849_v53  ;;  %v956_v52 = vshrl.u32 %v4326_v43, 16 }
  0x79   : > { %759 = vrot.lane.b32.xlu1 %v746_v54, %s3853_s12  ;;  %v818_v54 = vshrl.u32 %v4182_v24, 16 }
  0x7a   : > { %757 = vrot.lane.b32.xlu0 %v744_v55, %s3853_s12 }
  0x7e   : > { %767 = vrot.lane.b32.xlu2 %v754_v2, %s3853_s12 }
  0x80   : > { %v4155_v7 = vpop.permute.xlu2 %556 }
  0x81   : > { %765 = vrot.lane.b32.xlu1 %v752_v3, %s3853_s12  ;;  %v853_v3 = vrot.slane %v4043_v19, 1 }
  0x82   : > { %763 = vrot.lane.b32.xlu0 %v750_v6, %s3853_s12  ;;  %v855_v6 = vrot.slane %v4046_v20, 1 }
  0x86   : > { %779 = vrot.lane.b32.xlu2 %v4026_v10, %s3854_s13  ;;  %v828_v10 = vor.u32 %v826_v61, %v824_v5  ;;  %v941_v61 = vrot.slane %v939_v62, 1 }
  0x88   : > { %v4161_v12 = vpop.permute.xlu2 %558 }
  0x89   : > { %777 = vrot.lane.b32.xlu1 %v4030_v11, %s3854_s13  ;;  %v799_v11 = vsel %vm484_vm1, %v797_v4, %v798_v25  ;;  %v859_v25 = vrot.slane %v4182_v24, 1 }
  0x8a   : > { %769 = vrot.lane.b32.xlu0 %v753_v57, %s3853_s12  ;;  %v820_v57 = vor.u32 %v818_v54, %v816_v63  ;;  %v4323_v63 = vld [vmem:[%s4292_s30 + $0x18] sm:$0xff]  }
  0x8b   : > { %v862_v27 = vsel %vm567_vm0, %v859_v25, %v861_v26 }
  0x8c   : > { %v825_v2 = vsel %vm484_vm1, %v820_v57, %v824_v5  ;;  %v937_v5 = vshrl.u32 %v3533_v40, 16  ;;  %v4352_v57 = vld [vmem:[%s4292_s30 + $0x28] sm:$0xff]  }
  0x8e   : > { %785 = vrot.lane.b32.xlu2 %v4046_v20, %s3854_s13  ;;  %v852_v20 = vsel %vm567_vm0, %v849_v53, %v851_v14  ;;  %v960_v53 = vshll.u32 %v4323_v63, 16 }
  0x90   : > { %v4169_v15 = vpop.permute.xlu2 %589 }
  0x91   : > { %783 = vrot.lane.b32.xlu1 %v4043_v19, %s3854_s13  ;;  %v854_v19 = vsel %vm567_vm0, %v851_v14, %v853_v3  ;;  %v962_v14 = vrot.slane %v960_v53, 1  ;;  %v964_v53 = vshrl.u32 %v4323_v63, 16 }
  0x92   : > { %781 = vrot.lane.b32.xlu0 %v4052_v23, %s3854_s13  ;;  %v857_v23 = vrot.slane %v4065_v32, 1 }
  0x93   : > { %v4175_v18 = vpop.permute.xlu1 %552 }
  0x94   : > { %v4179_v22 = vpop.permute.xlu0 %548 }
  0x96   : > { %791 = vrot.lane.b32.xlu2 %v776_v17, %s3854_s13  ;;  %v856_v17 = vsel %vm567_vm0, %v853_v3, %v855_v6  ;;  %v976_v3 = vshll.u32 %v4352_v57, 16 }
  0x98   : > { %v4193_v30 = vpop.permute.xlu2 %595 }
  0x99   : > { %789 = vrot.lane.b32.xlu1 %v4182_v24, %s3854_s13  ;;  %v860_v24 = vsel %vm567_vm0, %v857_v23, %v859_v25 }
  0x9a   : > { %787 = vrot.lane.b32.xlu0 %v4065_v32, %s3854_s13 }
  0x9b   : > { %v4202_v31 = vpop.permute.xlu1 %554 }
  0x9c   : > { %v4210_v39 = vpop.permute.xlu0 %550 }
  0x9e   : > { %833 = vrot.lane.b32.xlu2 %v805_v28, %s3855_s14  ;;  %v858_v28 = vsel %vm567_vm0, %v855_v6, %v857_v23  ;;  %v978_v23 = vrot.slane %v976_v3, 1 }
  0xa0   : > { %v4220_v44 = vpop.permute.xlu2 %631 }
  0xa1   : > { %831 = vrot.lane.b32.xlu1 %v802_v34, %s3855_s14 }
  0xa2   : > { %829 = vrot.lane.b32.xlu0 %v799_v11, %s3855_s14  ;;  %v4316_v11 = vld [vmem:[%s4292_s30 + $0x38] sm:$0xff]  }
  0xa3   : > { %v4228_v1 = vpop.permute.xlu1 %562  ;;  %v4329_v45 = vunpack.c.l.b16 %v4316_v11 }
  0xa4   : > { %v4235_v49 = vpop.permute.xlu0 %560 }
  0xa5   : > { %v916_v8 = vpack.c.b16 %v4329_v45, %v4329_v45 }
  0xa6   : > { %839 = vrot.lane.b32.xlu2 %v817_v60, %s3855_s14 }
  0xa8   : > { %v4243_v9 = vpop.permute.xlu2 %637 }
  0xa9   : > { %837 = vrot.lane.b32.xlu1 %v811_v51, %s3855_s14 }
  0xaa   : > { %835 = vrot.lane.b32.xlu0 %v808_v58, %s3855_s14  ;;  %v954_v58 = vrot.slane %v952_v46, 1 }
  0xab   : > { %v4248_v55 = vpop.permute.xlu1 %587 }
  0xac   : > { %v4252_v0 = vpop.permute.xlu0 %585  ;;  %v958_v6 = vor.u32 %v956_v52, %v954_v58 }
  0xae   : > { %863 = vrot.lane.b32.xlu2 %v850_v56, %s3856_s16  ;;  %v4349_v56 = vld [vmem:[%s4292_s30 + $0x30] sm:$0xff]  }
  0xb0   : > { %v4258_v13 = vpop.permute.xlu2 %643 }
  0xb1   : > { %843 = vrot.lane.b32.xlu1 %v828_v10, %s3855_s14  ;;  %v946_v10 = vrot.slane %v944_v50, 1  ;;  %v972_v50 = vshrl.u32 %v4313_v42, 16 }
  0xb2   : > { %841 = vrot.lane.b32.xlu0 %v825_v2, %s3855_s14  ;;  %v948_v2 = vshrl.u32 %v4299_v48, 16 }
  0xb3   : > { %v4263_v16 = vpop.permute.xlu1 %593 }
  0xb4   : > { %v4266_v21 = vpop.permute.xlu0 %591  ;;  %v950_v25 = vor.u32 %v948_v2, %v946_v10 }
  0xb6   : > { %869 = vrot.lane.b32.xlu2 %v856_v17, %s3856_s16  ;;  %v955_v52 = vsel %vm484_vm1, %v950_v25, %v954_v58  ;;  %v966_v25 = vor.u32 %v964_v53, %v962_v14 }
  0xb8   : > { %v4273_v29 = vpop.permute.xlu2 %724 }
  0xb9   : > { %6432 = vst [vmem:[#allocation2_spill] sm:$0xff] %v4273_v29  ;;  %867 = vrot.lane.b32.xlu1 %v854_v19, %s3856_s16  ;;  %v942_v19 = vor.u32 %v941_v61, %v937_v5 }
  0xba   : > { %865 = vrot.lane.b32.xlu0 %v852_v20, %s3856_s16  ;;  %v968_v20 = vshll.u32 %v4313_v42, 16 }
  0xbb   : > { %v4279_v38 = vpop.permute.xlu1 %629  ;;  %v947_v5 = vsel %vm484_vm1, %v942_v19, %v946_v10 }
  0xbc   : > { %v4282_v36 = vpop.permute.xlu0 %597 }
  0xbe   : > { %875 = vrot.lane.b32.xlu2 %v862_v27, %s3856_s16  ;;  %v980_v27 = vshrl.u32 %v4352_v57, 16 }
  0xc0   : > { %v4287_v4 = vpop.permute.xlu2 %730  ;;  %v982_v61 = vor.u32 %v980_v27, %v978_v23 }
  0xc1   : > { %873 = vrot.lane.b32.xlu1 %v860_v24, %s3856_s16 }
  0xc2   : > { %871 = vrot.lane.b32.xlu0 %v858_v28, %s3856_s16  ;;  %v963_v28 = vsel %vm484_vm1, %v958_v6, %v962_v14  ;;  %v3651_v6 = vld [vmem:[%s4292_s30] sm:$0xf0] }
  0xc3   : > { %v4296_v32 = vpop.permute.xlu1 %635 }
  0xc4   : > { %v4301_v33 = vpop.permute.xlu0 %633 }
  0xc6   : > { %919 = vrot.lane.b32.xlu2 %v4299_v48, %s3857_s6 }
  0xc8   : > { %v4306_v41 = vpop.permute.xlu2 %755 }
  0xc9   : > { %6433 = vst [vmem:[#allocation3_spill] sm:$0xff] %v4306_v41  ;;  %917 = vrot.lane.b32.xlu1 %v3533_v40, %s3857_s6  ;;  %v984_v40 = vshll.u32 %v4349_v56, 16 }
  0xca   : > { %877 = vrot.lane.b32.xlu0 %v861_v26, %s3856_s16  ;;  %v406_v26 = vld [vmem:[%s4292_s30 + $0x3c] sm:$0x1] }
  0xcb   : > { %v4310_v34 = vpop.permute.xlu1 %641  ;;  %v934_v62 = vunpack.c.l.b16 %v406_v26  ;;  %v986_v2 = vrot.slane %v984_v40, 1 }
  0xcc   : > { %v4318_v47 = vpop.permute.xlu0 %639 }
  0xcd   : > { %v987_v58 = vsel %vm484_vm1, %v982_v61, %v986_v2 }
  0xce   : > { %925 = vrot.lane.b32.xlu2 %v4313_v42, %s3857_s6 }
  0xd0   : > { %v4332_v60 = vpop.permute.xlu2 %761 }
  0xd1   : > { %6434 = vst [vmem:[#allocation4_spill] sm:$0xff] %v4332_v60  ;;  %923 = vrot.lane.b32.xlu1 %v4323_v63, %s3857_s6  ;;  %v3652_v60 = vld [vmem:[%s4292_s30] sm:$0xe] }
  0xd2   : > { %921 = vrot.lane.b32.xlu0 %v4326_v43, %s3857_s6  ;;  %v3653_v10 = vor.u32 %v3652_v60, %v3651_v6 }
  0xd3   : > { %v4341_v51 = vpop.permute.xlu1 %722 }
  0xd4   : > { %v4345_v54 = vpop.permute.xlu0 %720 }
  0xd6   : > { %931 = vrot.lane.b32.xlu2 %v916_v8, %s3857_s6  ;;  %v970_v8 = vrot.slane %v968_v20, 1  ;;  %v4382_v20 = vpack.c.b16 %v934_v62, %v4329_v45 }
  0xd8   : > { %v4356_v17 = vpop.permute.xlu2 %767  ;;  %v974_v26 = vor.u32 %v972_v50, %v970_v8  ;;  %v992_v27 = vshll.u32 %v4382_v20, 16  ;;  %v971_v62 = vsel %vm484_vm1, %v966_v25, %v970_v8  ;;  %v988_v50 = vshrl.u32 %v4349_v56, 16 }
  0xd9   : > { %929 = vrot.lane.b32.xlu1 %v4349_v56, %s3857_s6  ;;  %v996_v14 = vshrl.u32 %v4382_v20, 16  ;;  %v1025_v25 = vrot.slane %v4313_v42, 1 }
  0xda   : > { %927 = vrot.lane.b32.xlu0 %v4352_v57, %s3857_s6  ;;  %v979_v40 = vsel %vm484_vm1, %v974_v26, %v978_v23  ;;  %v994_v60 = vrot.slane %v992_v27, 1  ;;  %v990_v61 = vor.u32 %v988_v50, %v986_v2  ;;  %v1021_v2 = vrot.slane %v4326_v43, 1 }
  0xdb   : > { %v4365_v24 = vpop.permute.xlu1 %728 }
  0xdc   : > { %v4369_v46 = vpop.permute.xlu0 %726  ;;  %v998_v6 = vor.u32 %v996_v14, %v994_v60  ;;  %v995_v26 = vsel %vm484_vm1, %v990_v61, %v994_v60  ;;  %v1029_v60 = vrot.slane %v4349_v56, 1  ;;  %v1031_v14 = vrot.slane %v4382_v20, 1 }
  0xdd   : > { %6435 = vst [vmem:[#allocation5_spill] sm:$0xff] %v4369_v46 }
  0xde   : > { %1003 = vrot.lane.b32.xlu2 %v963_v28, %s3858_s15  ;;  %v1032_v20 = vsel %vm567_vm0, %v1029_v60, %v1031_v14 }
  0xe0   : > { %v4376_v3 = vpop.permute.xlu2 %779 }
  0xe1   : > { %1001 = vrot.lane.b32.xlu1 %v955_v52, %s3858_s15  ;;  %v1018_v52 = vrot.slane %v3653_v10, 1 }
  0xe2   : > { %999 = vrot.lane.b32.xlu0 %v947_v5, %s3858_s15  ;;  %v1019_v5 = vrot.slane %v4299_v48, 1 }
  0xe3   : > { %v4385_v28 = vpop.permute.xlu1 %734 }
  0xe4   : > { %6436 = vst [vmem:[#allocation6_spill] sm:$0xff] %v4385_v28  ;;  %v4388_v19 = vpop.permute.xlu0 %732  ;;  %v1020_v23 = vsel %vm567_vm0, %v1018_v52, %v1019_v5  ;;  %v3539_v52 = vunpack.c.h.b16 %v4299_v48  ;;  %v1022_v50 = vsel %vm567_vm0, %v1019_v5, %v1021_v2 }
  0xe6   : > { %1009 = vrot.lane.b32.xlu2 %v987_v58, %s3858_s15  ;;  %v1023_v58 = vrot.slane %v4323_v63, 1  ;;  %v6395_v63 = vunpack.c.l.b16 %v4326_v43 }
  0xe8   : > { %v4396_v28 = vpop.permute.xlu2 %785  ;;  %v1024_v42 = vsel %vm567_vm0, %v1021_v2, %v1023_v58  ;;  %v4442_v2 = vld [vmem:[%s4292_s30 + $0x14] sm:$0xff]  }
  0xe9   : > { %6437 = vst [vmem:[#allocation7_spill] sm:$0xff] %v4396_v28  ;;  %1007 = vrot.lane.b32.xlu1 %v979_v40, %s3858_s15  ;;  %v1026_v40 = vsel %vm567_vm0, %v1023_v58, %v1025_v25 }
  0xea   : > { %1005 = vrot.lane.b32.xlu0 %v971_v62, %s3858_s15 }
  0xeb   : > { %v4401_v53 = vpop.permute.xlu1 %759 }
  0xec   : > { %6438 = vst [vmem:[#allocation8_spill] sm:$0xff] %v4401_v53  ;;  %v4404_v8 = vpop.permute.xlu0 %757 }
  0xee   : > { %1033 = vrot.lane.b32.xlu2 %v1020_v23, %s3859_s17  ;;  %v408_v23 = vld [vmem:[%s4292_s30 + $0x4] sm:$0xc] }
  0xef   : > { %v1052_v58 = vunpack.c.l.b16 %v408_v23 }
  0xf0   : > { %v4410_v10 = vpop.permute.xlu2 %791 }
  0xf1   : > { %6439 = vst [vmem:[#allocation9_spill] sm:$0xff] %v4410_v10  ;;  %1013 = vrot.lane.b32.xlu1 %v998_v6, %s3858_s15  ;;  %v1027_v6 = vrot.slane %v4352_v57, 1 }
  0xf2   : > { %1011 = vrot.lane.b32.xlu0 %v995_v26, %s3858_s15  ;;  %v6396_v26 = vunpack.c.l.b16 %v4299_v48 }
  0xf3   : > { %v4415_v27 = vpop.permute.xlu1 %765  ;;  %v1030_v57 = vsel %vm567_vm0, %v1027_v6, %v1029_v60 }
  0xf4   : > { %6440 = vst [vmem:[#allocation10_spill] sm:$0xff] %v4415_v27  ;;  %v4418_v62 = vpop.permute.xlu0 %763 }
  0xf5   : > { %6441 = vst [vmem:[#allocation11_spill] sm:$0xff] %v4418_v62 }
  0xf6   : > { %1039 = vrot.lane.b32.xlu2 %v1026_v40, %s3859_s17  ;;  %v4436_v40 = vpack.c.b16 %v6395_v63, %v3539_v52  ;;  %v1028_v52 = vsel %vm567_vm0, %v1025_v25, %v1027_v6  ;;  %v1066_v63 = vrot.slane %v4442_v2, 2  ;;  %v4467_v25 = vld [vmem:[%s4292_s30 + $0x2c] sm:$0xff]   ;;  %vm6409_vm0 = vcmask 654336  }
  0xf7   : > { %6448 = vst [vmem:[#allocation18_spill] sm:$0xff] %v4467_v25  ;;  %v1072_v53 = vrot.slane %v4467_v25, 2 }
  0xf8   : > { %v4428_v61 = vpop.permute.xlu2 %833  ;;  %v1064_v23 = vrot.slane %v4436_v40, 2 }
  0xf9   : > { %6442 = vst [vmem:[#allocation12_spill] sm:$0xff] %v4428_v61  ;;  %1037 = vrot.lane.b32.xlu1 %v1024_v42, %s3859_s17 }
  0xfa   : > { %1035 = vrot.lane.b32.xlu0 %v1022_v50, %s3859_s17  ;;  %v4450_v50 = vpack.c.b16 %v6396_v26, %v1052_v58  ;;  %v1067_v58 = vsel %vm613_vm2, %v1064_v23, %v1066_v63  ;;  %v4464_v26 = vld [vmem:[%s4292_s30 + $0x24] sm:$0xff]  }
  0xfb   : > { %v4438_v5 = vpop.permute.xlu1 %777  ;;  %6447 = vst [vmem:[#allocation17_spill] sm:$0xff] %v4464_v26 }
  0xfc   : > { %6443 = vst [vmem:[#allocation13_spill] sm:$0xff] %v4438_v5  ;;  %v4444_v42 = vpop.permute.xlu0 %769  ;;  %v1063_v60 = vrot.slane %v4450_v50, 2  ;;  %v3559_v5 = vunpack.c.h.b16 %v4349_v56  ;;  %v6455_v56 = vshll.u32 %v4442_v2, 16 }
  0xfd   : > { %6444 = vst [vmem:[#allocation14_spill] sm:$0xff] %v4444_v42 }
  0xfe   : > { %1045 = vrot.lane.b32.xlu2 %v1032_v20, %s3859_s17  ;;  %v1065_v10 = vsel %vm613_vm2, %v1063_v60, %v1064_v23  ;;  %v4498_v28 = vpack.c.b16 %v4329_v45, %v3559_v5 }
 0x100   : > { %v4455_v61 = vpop.permute.xlu2 %839  ;;  %6453 = vst [vmem:[#allocation23_spill] sm:$0xff] %v4498_v28 }
 0x101   : > { %6445 = vst [vmem:[#allocation15_spill] sm:$0xff] %v4455_v61  ;;  %1043 = vrot.lane.b32.xlu1 %v1030_v57, %s3859_s17  ;;  %v4474_v57 = vld [vmem:[%s4292_s30 + $0x1c] sm:$0xff]  }
 0x102   : > { %1041 = vrot.lane.b32.xlu0 %v1028_v52, %s3859_s17  ;;  %6450 = vst [vmem:[#allocation20_spill] sm:$0xff] %v4474_v57  ;;  %v1070_v52 = vrot.slane %v4464_v26, 2  ;;  %v6456_v45 = vshrl.u32 %v4474_v57, 16  ;;  %v6457_v5 = vshll.u32 %v4474_v57, 16 }
 0x103   : > { %v4460_v20 = vpop.permute.xlu1 %783 }
 0x104   : > { %6446 = vst [vmem:[#allocation16_spill] sm:$0xff] %v4460_v20  ;;  %v4469_v6 = vpop.permute.xlu0 %781  ;;  %v410_v20 = vld [vmem:[%s4292_s30 + $0x40] sm:$0x3]  ;;  %v1073_v46 = vsel %vm613_vm2, %v1070_v52, %v1072_v53 }
 0x105   : > { %6449 = vst [vmem:[#allocation19_spill] sm:$0xff] %v4469_v6  ;;  %v1068_v6 = vrot.slane %v4474_v57, 2  ;;  %v1054_v23 = vunpack.c.l.b16 %v410_v20 }
 0x106   : > { %1080 = vrot.lane.b32.xlu2 %v1067_v58, %s3860_s25  ;;  %v4486_v58 = vunpack.c.h.b16 %v4316_v11 }
 0x107   : > { %v1071_v11 = vsel %vm613_vm2, %v1068_v6, %v1070_v52  ;;  %v1069_v41 = vsel %vm613_vm2, %v1066_v63, %v1068_v6  ;;  %v1129_v52 = vrot.slane %v6457_v5, 3  ;;  %v1109_v63 = vshll.u32 %v4436_v40, 16 }
 0x108   : > { %v4479_v42 = vpop.permute.xlu2 %863  ;;  %v1062_v20 = vpack.c.b16 %v1054_v23, %v4486_v58  ;;  %v1106_v23 = vshrl.u32 %v4436_v40, 16 }
 0x109   : > { %6451 = vst [vmem:[#allocation21_spill] sm:$0xff] %v4479_v42  ;;  %1078 = vrot.lane.b32.xlu1 %v1065_v10, %s3860_s25  ;;  %v6397_v42 = vshrl.u32 %v4442_v2, 16 }
 0x10a   : > { %1047 = vrot.lane.b32.xlu0 %v1031_v14, %s3859_s17  ;;  %v1120_v14 = vrot.slane %v6455_v56, 3  ;;  %v1076_v6 = vrot.slane %v1062_v20, 2  ;;  %v1101_v56 = vshll.u32 %v4450_v50, 16  ;;  %v1108_v20 = vrot.slane %v1106_v23, 2  ;;  %v411_v23 = vld [vmem:[%s4292_s30 + $0x40] sm:$0x7] }
 0x10b   : > { %v4488_v60 = vpop.permute.xlu1 %789  ;;  %v1117_v10 = vrot.slane %v6397_v42, 2  ;;  %v1074_v42 = vrot.slane %v4498_v28, 2  ;;  %s3861_s17 = smov 104  }
 0x10c   : > { %v4491_v61 = vpop.permute.xlu0 %787  ;;  %v1103_v27 = vrot.slane %v1101_v56, 3 }
 0x10d   : > { %6452 = vst [vmem:[#allocation22_spill] sm:$0xff] %v4491_v61  ;;  %v1121_v57 = vor.u32 %v1120_v14, %v1117_v10  ;;  %v1111_v61 = vrot.slane %v1109_v63, 3  ;;  %v6405_v10 = vshll.u32 %v4467_v25, 16  ;;  %v6403_v14 = vshrl.u32 %v4498_v28, 16 }
 0x10e   : > { %1086 = vrot.lane.b32.xlu2 %v1073_v46, %s3860_s25  ;;  %v1126_v46 = vrot.slane %v6456_v45, 2  ;;  %v1254_v45 = vsel %vm1240_vm5, %v3979_v35, %v4235_v49  ;;  %v6400_v35 = vshrl.u32 %v4467_v25, 16  ;;  %v1075_v49 = vsel %vm613_vm2, %v1072_v53, %v1074_v42  ;;  %v3800_v25 = vld [vmem:[%s3939_s7] sm:$0xff]  }
 0x110   : > { %v4504_v29 = vpop.permute.xlu2 %869 }
 0x111   : > { %6454 = vst [vmem:[#allocation24_spill] sm:$0xff] %v4504_v29  ;;  %1084 = vrot.lane.b32.xlu1 %v1071_v11, %s3860_s25  ;;  %v1098_v29 = vshrl.u32 %v4450_v50, 16  ;;  %v1077_v50 = vsel %vm613_vm2, %v1074_v42, %v1076_v6  ;;  %v1112_v42 = vor.u32 %v1111_v61, %v1108_v20  ;;  %v1147_v61 = vrot.slane %v6405_v10, 3  ;;  %v3802_v10 = vld [vmem:[%s3939_s7 + $0x28] sm:$0xff]  }
 0x112   : > { %1082 = vrot.lane.b32.xlu0 %v1069_v41, %s3860_s25  ;;  %v4529_v41 = vor.u32 %v1129_v52, %v1126_v46  ;;  %v6404_v46 = vshll.u32 %v4498_v28, 16  ;;  %v1153_v20 = vrot.slane %v6403_v14, 2  ;;  %v1242_v14 = vsel %vm1240_vm5, %v3800_v25, %v4179_v22  ;;  %v3803_v28 = vld [vmem:[%s3939_s7 + $0x10] sm:$0xff]  }
 0x113   : > { %v4522_v11 = vpop.permute.xlu1 %831  ;;  %v1100_v62 = vrot.slane %v1098_v29, 2  ;;  %v1272_v29 = vsel %vm1258_vm6, %v1254_v45, %v4193_v30 }
 0x114   : > { %v4527_v5 = vpop.permute.xlu0 %829  ;;  %v1131_v53 = vsel %vm648_vm3, %v1121_v57, %v4529_v41  ;;  %v1289_v30 = vsel %vm1275_vm7, %v1272_v29, %v4310_v34  ;;  %v1122_v34 = vsel %vm648_vm3, %v1112_v42, %v1121_v57  ;;  %v6459_v29 = vshrl.u32 %v4464_v26, 16 }
 0x115   : > { %v1104_v63 = vor.u32 %v1103_v27, %v1100_v62  ;;  %v412_v27 = vld [vmem:[%s4292_s30 + $0x4] sm:$0x8]  ;;  %v1095_v62 = vunpack.c.l.b16 %v411_v23 }
 0x116   : > { %1092 = vrot.lane.b32.xlu2 %v1076_v6, %s3860_s25  ;;  %v1144_v6 = vrot.slane %v6400_v35, 2  ;;  %v1135_v22 = vrot.slane %v6459_v29, 2  ;;  %v1252_v29 = vsel %vm1240_vm5, %v3802_v10, %v4161_v12 }
 0x118   : > { %v4542_v52 = vpop.permute.xlu2 %875 }
 0x119   : > { %1090 = vrot.lane.b32.xlu1 %v1077_v50, %s3860_s25  ;;  %v1156_v50 = vrot.slane %v6404_v46, 3  ;;  %v480_v46 = vpack.c.b16 %v3984_v37, %v3984_v37  ;;  %v6460_v37 = vshll.u32 %v4464_v26, 16 }
 0x11a   : > { %1088 = vrot.lane.b32.xlu0 %v1075_v49, %s3860_s25  ;;  %v3799_v49 = vld [vmem:[%s3939_s7 + $0x8] sm:$0xff]   ;;  %s4620_s25 = sadd.s32 %s3738_s29, %s3933_s26  ;;  %s3862_s29 = smov 112  }
 0x11b   : > { %v4559_v45 = vpop.permute.xlu1 %837  ;;  %v1244_v35 = vsel %vm1240_vm5, %v3799_v49, %v4210_v39  ;;  %v1306_v39 = vsel %vm1292_vm8, %v1289_v30, %v4388_v19  ;;  %v1138_v25 = vrot.slane %v6460_v37, 3  ;;  %v1185_v49 = vunpack.c.l.b16 %v412_v27  ;;  %s3413_s26 = sshll.u32 %s4620_s25, 2 }
 0x11c   : > { %v4573_v56 = vpop.permute.xlu0 %835  ;;  %v1262_v23 = vsel %vm1258_vm6, %v1244_v35, %v4252_v0  ;;  %v1113_v0 = vsel %vm648_vm3, %v1104_v63, %v1112_v42  ;;  %v1148_v35 = vor.u32 %v1147_v61, %v1144_v6  ;;  %v4592_v19 = vor.u32 %v1156_v50, %v1153_v20  ;;  %v416_v6 = vld [vmem:[%s4292_s30 + $0xc] sm:$0xe]  ;;  %v3804_v61 = vld [vmem:[%s3939_s7 + $0x18] sm:$0xff]   ;;  %s4653_s28 = scalar_lea.vmem %s6391_s2, %s3413_s26 }
 0x11d   : > { %v4595_v30 = vpack.c.b16 %v1095_v62, %v4486_v58  ;;  %v1246_v27 = vsel %vm1240_vm5, %v3803_v28, %v4175_v18  ;;  %v1260_v42 = vsel %vm1258_vm6, %v1242_v14, %v4146_v59  ;;  %v1248_v20 = vsel %vm1240_vm5, %v3804_v61, %v4202_v31 }
 0x11e   : > { %1172 = vrot.lane.b32.xlu2 %v1131_v53, %s3861_s17  ;;  %v3801_v53 = vld [vmem:[%s3939_s7 + $0x20] sm:$0xff]   ;;  %v1279_v12 = vsel %vm1275_vm7, %v1262_v23, %v4220_v44  ;;  %v1323_v59 = vsel %vm1309_vm9, %v1306_v39, %v4356_v17  ;;  %v1139_v18 = vor.u32 %v1138_v25, %v1135_v22  ;;  %v6462_v31 = vunpack.c.l.b16 %v4299_v48 }
 0x11f   : > { %6461 = vst [vmem:[#allocation25_spill] sm:$0xff] %v4595_v30  ;;  %v1250_v57 = vsel %vm1240_vm5, %v3801_v53, %v4155_v7  ;;  %v1257_v7 = vsel %vm1240_vm5, %v480_v46, %v4228_v1  ;;  %v1158_v44 = vsel %vm648_vm3, %v1148_v35, %v4592_v19  ;;  %v1160_v10 = vshrl.u32 %v4595_v30, 16 }
 0x120   : > { %v4608_v63 = vpop.permute.xlu2 %919  ;;  %v1186_v28 = vpack.c.b16 %v6462_v31, %v1185_v49  ;;  %v1163_v14 = vshll.u32 %v4595_v30, 16  ;;  %v1508_v46 = vunpack.c.l.b16 %v416_v6  ;;  %v1268_v50 = vsel %vm1258_vm6, %v1250_v57, %v4266_v21  ;;  %v3674_v57 = vld [vmem:[%s4653_s28] sm:$0xf0]  ;;  %v3675_v6 = vld [vmem:[%s4653_s28] sm:$0xe] }
 0x121   : > { %1170 = vrot.lane.b32.xlu1 %v1122_v34, %s3861_s17  ;;  %v1296_v17 = vsel %vm1292_vm8, %v1279_v12, %v4341_v51  ;;  %v1340_v48 = vsel %vm1326_vm10, %v1323_v59, %v4488_v60  ;;  %v1274_v23 = vsel %vm1258_vm6, %v1257_v7, %v4282_v36  ;;  %v1149_v21 = vsel %vm648_vm3, %v1139_v18, %v1148_v35 }
 0x122   : > { %1168 = vrot.lane.b32.xlu0 %v1113_v0, %s3861_s17  ;;  %v1313_v39 = vsel %vm1309_vm9, %v1296_v17, %v4404_v8  ;;  %v1140_v51 = vsel %vm648_vm3, %v4529_v41, %v1139_v18  ;;  %v1187_v60 = vrot.slane %v1186_v28, 3  ;;  %v1188_v22 = vrot.slane %v4436_v40, 3  ;;  %v6465_v18 = vld [vmem:[#allocation10_spill] sm:$0xff]  ;;  %v6466_v28 = vld [vmem:[#allocation11_spill] sm:$0xff] }
 0x123   : > { %v4627_v1 = vpop.permute.xlu1 %843  ;;  %v1162_v37 = vrot.slane %v1160_v10, 2  ;;  %v1165_v25 = vrot.slane %v1163_v14, 3  ;;  %v6463_v36 = vunpack.c.l.b16 %v4326_v43  ;;  %v1264_v41 = vsel %vm1258_vm6, %v1246_v27, %v4248_v55  ;;  %v4717_v14 = vld [vmem:[%s4653_s28 + $0x8] sm:$0xff]  }
 0x124   : > { %v842_v62 = vpop.permute.xlu0 %841  ;;  %v1270_v0 = vsel %vm1258_vm6, %v1252_v29, %v4263_v16  ;;  %v1266_v35 = vsel %vm1258_vm6, %v1248_v20, %v4169_v15  ;;  %v1285_v43 = vsel %vm1275_vm7, %v1268_v50, %v4243_v9  ;;  %v1291_v16 = vsel %vm1275_vm7, %v1274_v23, %v4258_v13  ;;  %v6469_v50 = vld [vmem:[#allocation20_spill] sm:$0xff] }
 0x125   : > { %v1357_v34 = vsel %vm1343_vm11, %v1340_v48, %v842_v62  ;;  %v4657_v8 = vpack.c.b16 %v6463_v36, %v1508_v46  ;;  %v1283_v55 = vsel %vm1275_vm7, %v1266_v35, %v4296_v32  ;;  %v1287_v27 = vsel %vm1275_vm7, %v1270_v0, %v4318_v47  ;;  %v4694_v32 = vld [vmem:[%s4653_s28] sm:$0xff]   ;;  %v4730_v62 = vld [vmem:[%s4653_s28 + $0x10] sm:$0xff]   ;;  %v6472_v36 = vld [vmem:[#allocation3_spill] sm:$0xff] }
 0x126   : > { %1178 = vrot.lane.b32.xlu2 %v1158_v44, %s3861_s17  ;;  %v4661_v49 = vsel %vm1360_vm12, %v1357_v34, %v4542_v52  ;;  %v1277_v52 = vsel %vm1275_vm7, %v1260_v42, %v4279_v38  ;;  %v1281_v15 = vsel %vm1275_vm7, %v1264_v41, %v4301_v33  ;;  %v1330_v9 = vsel %vm1326_vm10, %v1313_v39, %v4376_v3  ;;  %v6473_v0 = vld [vmem:[#allocation7_spill] sm:$0xff] }
 0x127   : > { %v6464_v38 = vshll.u32 %v4442_v2, 16  ;;  %v1189_v13 = vsel %vm6431_vm4, %v1187_v60, %v1188_v22  ;;  %v1166_v33 = vor.u32 %v1165_v25, %v1162_v37  ;;  %v1513_v42 = vshll.u32 %v4657_v8, 16  ;;  %v434_v60 = vld [vmem:[%s4653_s28 + $0x4] sm:$0xc] }
 0x128   : > { %v4671_v53 = vpop.permute.xlu2 %925  ;;  %v3676_v3 = vor.u32 %v3675_v6, %v3674_v57  ;;  %v1294_v61 = vsel %vm1292_vm8, %v1277_v52, %v4345_v54  ;;  %v1302_v20 = vsel %vm1292_vm8, %v1285_v43, %v4365_v24  ;;  %v1304_v7 = vsel %vm1292_vm8, %v1287_v27, %v4287_v4  ;;  %v6467_v24 = vld [vmem:[#allocation22_spill] sm:$0xff]  ;;  %v6474_v52 = vld [vmem:[#allocation15_spill] sm:$0xff] }
 0x129   : > { %1176 = vrot.lane.b32.xlu1 %v1149_v21, %s3861_s17  ;;  %v4691_v29 = vrot.slane %v6464_v38, 1  ;;  %v1347_v12 = vsel %vm1343_vm11, %v1330_v9, %v4522_v11  ;;  %v1321_v31 = vsel %vm1309_vm9, %v1304_v7, %v6465_v18  ;;  %v1319_v44 = vsel %vm1309_vm9, %v1302_v20, %v6466_v28  ;;  %v6471_v37 = vld [vmem:[#allocation2_spill] sm:$0xff]  ;;  %v6475_v7 = vld [vmem:[#allocation5_spill] sm:$0xff] }
 0x12a   : > { %1174 = vrot.lane.b32.xlu0 %v1140_v51, %s3861_s17  ;;  %v1604_v54 = vshrl.u32 %v4694_v32, 16  ;;  %v1338_v4 = vsel %vm1326_vm10, %v1321_v31, %v6467_v24  ;;  %v6468_v11 = vshrl.u32 %v4442_v2, 16  ;;  %v6470_v17 = vshll.u32 %v6469_v50, 16 }
 0x12b   : > { %v4696_v47 = vpop.permute.xlu1 %867  ;;  %v1167_v39 = vsel %vm648_vm3, %v4592_v19, %v1166_v33  ;;  %v1511_v34 = vshrl.u32 %v4657_v8, 16  ;;  %v1515_v21 = vrot.slane %v1513_v42, 1  ;;  %v1707_v51 = vshll.u32 %v3676_v3, 16 }
 0x12c   : > { %v866_v59 = vpop.permute.xlu0 %865  ;;  %v1519_v46 = vor.u32 %v4691_v29, %v6468_v11  ;;  %v4727_v48 = vrot.slane %v6470_v17, 1  ;;  %v1298_v25 = vsel %vm1292_vm8, %v1281_v15, %v6471_v37  ;;  %v1311_v41 = vsel %vm1309_vm9, %v1294_v61, %v6472_v36  ;;  %v6478_v11 = vld [vmem:[#allocation14_spill] sm:$0xff]  ;;  %v6480_v36 = vld [vmem:[#allocation4_spill] sm:$0xff] }
 0x12d   : > { %v1364_v10 = vsel %vm1360_vm12, %v1347_v12, %v866_v59  ;;  %v1336_v35 = vsel %vm1326_vm10, %v1319_v44, %v6473_v0  ;;  %v1606_v19 = vrot.slane %v1604_v54, 7  ;;  %v1607_v8 = vshll.u32 %v4694_v32, 16  ;;  %v438_v44 = vld [vmem:[%s4653_s28 + $0x4] sm:$0x8] }
 0x12e   : > { %1202 = vrot.lane.b32.xlu2 %v1189_v13, %s3862_s29  ;;  %v4734_v23 = vsel %vm6408_vm13, %v1364_v10, %v4608_v63  ;;  %v1611_v63 = vshrl.u32 %v4717_v14, 16  ;;  %v3575_v57 = vunpack.c.h.b16 %v4717_v14  ;;  %v3578_v6 = vunpack.c.l.b16 %v4730_v62  ;;  %v6476_v10 = vld [vmem:[#allocation6_spill] sm:$0xff] }
 0x12f   : > { %v1355_v27 = vsel %vm1343_vm11, %v1338_v4, %v6474_v52  ;;  %v1521_v15 = vsel %vm484_vm1, %v1519_v46, %v4727_v48  ;;  %v3574_v9 = vunpack.c.l.b16 %v4717_v14  ;;  %v1756_v38 = vunpack.c.l.b16 %v434_v60  ;;  %v6479_v60 = vld [vmem:[#allocation8_spill] sm:$0xff] }
 0x130   : > { %v4746_v43 = vpop.permute.xlu2 %931  ;;  %v1614_v42 = vshll.u32 %v4717_v14, 16  ;;  %v1705_v61 = vshrl.u32 %v3676_v3, 16  ;;  %v1709_v20 = vrot.slane %v1707_v51, 1  ;;  %v1300_v12 = vsel %vm1292_vm8, %v1283_v55, %v6475_v7  ;;  %v6477_v55 = vld [vmem:[#allocation13_spill] sm:$0xff] }
 0x131   : > { %1182 = vrot.lane.b32.xlu1 %v1166_v33, %s3861_s17  ;;  %v1516_v33 = vor.u32 %v1515_v21, %v1511_v34  ;;  %v1353_v59 = vsel %vm1343_vm11, %v1336_v35, %v4559_v45  ;;  %v4767_v28 = vrot.slane %v1611_v63, 7  ;;  %v1308_v54 = vsel %vm1292_vm8, %v1291_v16, %v6476_v10 }
 0x132   : > { %1180 = vrot.lane.b32.xlu0 %v1167_v39, %s3861_s17  ;;  %v1609_v3 = vor.u32 %v1607_v8, %v1606_v19  ;;  %v4775_v4 = vpack.c.b16 %v3578_v6, %v3575_v57  ;;  %v1328_v45 = vsel %vm1326_vm10, %v1311_v41, %v6477_v55  ;;  %v1325_v46 = vsel %vm1309_vm9, %v1308_v54, %v6478_v11  ;;  %v4834_v11 = vld [vmem:[%s4653_s28 + $0x14] sm:$0xff]   ;;  %s3863_s17 = smov 120  }
 0x133   : > { %v874_v13 = vpop.permute.xlu1 %873  ;;  %v4782_v17 = vpack.c.b16 %v3574_v9, %v1756_v38  ;;  %v1518_v39 = vsel %vm484_vm1, %v1516_v33, %v4691_v29  ;;  %v1710_v34 = vor.u32 %v1709_v20, %v1705_v61  ;;  %v1711_v21 = vrot.slane %v1614_v42, 1  ;;  %v6484_v61 = vld [vmem:[#allocation21_spill] sm:$0xff] }
 0x134   : > { %v4765_v18 = vsel %vm1360_vm12, %v1355_v27, %v874_v13  ;;  %v872_v31 = vpop.permute.xlu0 %871  ;;  %v1890_v51 = vunpack.c.l.b16 %v438_v44  ;;  %v1315_v37 = vsel %vm1309_vm9, %v1298_v25, %v6479_v60  ;;  %v1317_v41 = vsel %vm1309_vm9, %v1300_v12, %v6480_v36  ;;  %v6482_v25 = vld [vmem:[#allocation16_spill] sm:$0xff]  ;;  %v6483_v13 = vld [vmem:[#allocation19_spill] sm:$0xff] }
 0x135   : > { %v1370_v24 = vsel %vm1360_vm12, %v1353_v59, %v872_v31  ;;  %v1345_v0 = vsel %vm1343_vm11, %v1328_v45, %v4527_v5  ;;  %v1616_v8 = vor.u32 %v1614_v42, %v4767_v28  ;;  %v1622_v29 = vshll.u32 %v4730_v62, 16 }
 0x136   : > { %1550 = vrot.lane.b32.xlu2 %v1521_v15, %s3850_s9  ;;  %v4786_v16 = vsel %vm6408_vm13, %v1370_v24, %v4671_v53  ;;  %v6481_v53 = vld [vmem:[#allocation9_spill] sm:$0xff]  ;;  %v4802_v52 = vshrl.u32 %v4775_v4, 16  ;;  %v1334_v27 = vsel %vm1326_vm10, %v1317_v41, %v6482_v25  ;;  %v1769_v5 = vshrl.u32 %v4782_v17, 16 }
 0x137   : > { %v1342_v57 = vsel %vm1326_vm10, %v1325_v46, %v6481_v53  ;;  %v1772_v15 = vshll.u32 %v4782_v17, 16  ;;  %v4810_v38 = vshll.u32 %v4775_v4, 16  ;;  %v1332_v33 = vsel %vm1326_vm10, %v1315_v37, %v6483_v13  ;;  %v442_v13 = vld [vmem:[%s4653_s28 + $0xc] sm:$0xe] }
 0x138   : > { %v1004_v35 = vpop.permute.xlu2 %1003  ;;  %v1362_v20 = vsel %vm1360_vm12, %v1345_v0, %v6484_v61  ;;  %v1712_v7 = vsel %vm484_vm1, %v1710_v34, %v1711_v21  ;;  %v1891_v12 = vpack.c.b16 %v3574_v9, %v1890_v51  ;;  %v1351_v59 = vsel %vm1343_vm11, %v1334_v27, %v4573_v56  ;;  %v6486_v51 = vld [vmem:[#allocation24_spill] sm:$0xff] }
 0x139   : > { %1666 = vrot.lane.b32.xlu1 %v1609_v3, %s3849_s8  ;;  %v1359_v31 = vsel %vm1343_vm11, %v1342_v57, %v4627_v1  ;;  %v1617_v54 = vsel %vm1602_vm14, %v1606_v19, %v1616_v8  ;;  %v1713_v3 = vor.u32 %v1711_v21, %v1611_v63  ;;  %v4828_v55 = vrot.slane %v1622_v29, 1 }
 0x13a   : > { %1548 = vrot.lane.b32.xlu0 %v1518_v39, %s3850_s9  ;;  %v1779_v9 = vrot.slane %v4802_v52, 1  ;;  %v1771_v56 = vrot.slane %v1769_v5, 1  ;;  %v1774_v45 = vrot.slane %v1772_v15, 2  ;;  %v1782_v1 = vrot.slane %v4810_v38, 2  ;;  %v6485_v39 = vld [vmem:[#allocation12_spill] sm:$0xff] }
 0x13b   : > { %v918_v42 = vpop.permute.xlu1 %917  ;;  %v1893_v46 = vshrl.u32 %v1891_v12, 16  ;;  %v1896_v63 = vshll.u32 %v1891_v12, 16  ;;  %v1349_v34 = vsel %vm1343_vm11, %v1332_v33, %v6485_v39  ;;  %v1368_v60 = vsel %vm1360_vm12, %v1351_v59, %v6486_v51 }
 0x13c   : > { %v4822_v44 = vsel %vm6408_vm13, %v1362_v20, %v918_v42  ;;  %v878_v10 = vpop.permute.xlu0 %877  ;;  %v1715_v37 = vsel %vm484_vm1, %v1713_v3, %v4828_v55  ;;  %v1783_v36 = vor.u32 %v1782_v1, %v1779_v9  ;;  %v4850_v41 = vshrl.u32 %v4834_v11, 16 }
 0x13d   : > { %v1376_v24 = vsel %vm1360_vm12, %v1359_v31, %v878_v10  ;;  %v4853_v0 = vshll.u32 %v4834_v11, 16  ;;  %v1895_v53 = vrot.slane %v1893_v46, 2  ;;  %v1898_v57 = vrot.slane %v1896_v63, 3 }
 0x13e   : > { %1737 = vrot.lane.b32.xlu2 %v1712_v7, %s3852_s11  ;;  %v4838_v19 = vsel %vm6408_vm13, %v1376_v24, %v4746_v43  ;;  %v1775_v43 = vor.u32 %v1774_v45, %v1771_v56  ;;  %v1900_v25 = vrot.slane %v4802_v52, 2  ;;  %v1901_v27 = vrot.slane %v4810_v38, 3 }
 0x13f   : > { %v1366_v5 = vsel %vm1360_vm12, %v1349_v34, %v4696_v47  ;;  %v1788_v61 = vrot.slane %v4850_v41, 1  ;;  %v1791_v20 = vrot.slane %v4853_v0, 2  ;;  %v1899_v12 = vor.u32 %v1898_v57, %v1895_v53 }
 0x140   : > { %v1010_v21 = vpop.permute.xlu2 %1009  ;;  %v1784_v42 = vsel %vm1767_vm15, %v1775_v43, %v1783_v36  ;;  %v1902_v59 = vor.u32 %v1901_v27, %v1900_v25  ;;  %v2024_v47 = vunpack.c.l.b16 %v442_v13  ;;  %v1859_v24 = vrot.slane %v4775_v4, 2 }
 0x141   : > { %1668 = vrot.lane.b32.xlu1 %v1617_v54, %s3849_s8  ;;  %v4872_v10 = vor.u32 %v1791_v20, %v1788_v61  ;;  %v1858_v54 = vrot.slane %v4782_v17, 2  ;;  %v1905_v56 = vrot.slane %v4853_v0, 3  ;;  %v1957_v57 = vrot.slane %v4850_v41, 7 }
 0x142   : > { %1685 = vrot.lane.b32.xlu0 %v4694_v32, %s3851_s10  ;;  %v1903_v9 = vsel %vm648_vm3, %v1899_v12, %v1902_v59  ;;  %v2025_v45 = vpack.c.b16 %v3578_v6, %v2024_v47  ;;  %v6487_v47 = vshrl.u32 %v6469_v50, 16 }
 0x143   : > { %v924_v8 = vpop.permute.xlu1 %923  ;;  %v1793_v17 = vsel %vm1767_vm15, %v1783_v36, %v4872_v10  ;;  %v1860_v39 = vsel %vm613_vm2, %v1858_v54, %v1859_v24  ;;  %v6488_v54 = vshll.u32 %v4464_v26, 16 }
 0x144   : > { %v1385_v32 = vsel %vm6408_vm13, %v1368_v60, %v924_v8  ;;  %v922_v15 = vpop.permute.xlu0 %921  ;;  %v2029_v6 = vshll.u32 %v2025_v45, 16 }
 0x145   : > { %v1383_v33 = vsel %vm6408_vm13, %v1366_v5, %v922_v15  ;;  %v2033_v5 = vrot.slane %v4853_v0, 1 }
 0x146   : > { %1739 = vrot.lane.b32.xlu2 %v1715_v37, %s3852_s11  ;;  %v4867_v7 = vsel %vm6409_vm0, %v1383_v33, %v1004_v35  ;;  %v1904_v35 = vrot.slane %v4850_v41, 2  ;;  %v1861_v37 = vrot.slane %v4834_v11, 2  ;;  %v2031_v43 = vrot.slane %v2029_v6, 1 }
 0x148   : > { %v1034_v31 = vpop.permute.xlu2 %1033  ;;  %v4892_v34 = vor.u32 %v1905_v56, %v1904_v35  ;;  %v1862_v25 = vsel %vm613_vm2, %v1859_v24, %v1861_v37 }
 0x149   : > { %1839 = vrot.lane.b32.xlu1 %v1784_v42, %s3853_s12 }
 0x14a   : > { %1687 = vrot.lane.b32.xlu0 %v4717_v14, %s3851_s10  ;;  %v1907_v60 = vsel %vm648_vm3, %v1902_v59, %v4892_v34 }
 0x14b   : > { %v930_v3 = vpop.permute.xlu1 %929 }
 0x14c   : > { %v1391_v1 = vsel %vm6408_vm13, %v4661_v49, %v930_v3  ;;  %v928_v14 = vpop.permute.xlu0 %927  ;;  %v1955_v49 = vrot.slane %v4802_v52, 7  ;;  %v2035_v3 = vor.u32 %v2033_v5, %v4850_v41  ;;  %v6490_v41 = vld [vmem:[#allocation18_spill] sm:$0xff] }
 0x14d   : > { %v1389_v46 = vsel %vm6408_vm13, %v4765_v18, %v928_v14  ;;  %vm6410_vm13 = vcmask 719872  }
 0x14e   : > { %1933 = vrot.lane.b32.xlu2 %v1903_v9, %s3855_s14  ;;  %v4889_v63 = vsel %vm6409_vm0, %v1389_v46, %v1010_v21  ;;  %v2027_v21 = vshrl.u32 %v2025_v45, 16  ;;  %v1956_v52 = vor.u32 %v1955_v49, %v4810_v38  ;;  %v1958_v38 = vor.u32 %v1957_v57, %v4853_v0 }
 0x150   : > { %v1040_v51 = vpop.permute.xlu2 %1039  ;;  %v2032_v27 = vor.u32 %v2031_v43, %v2027_v21  ;;  %v1959_v12 = vsel %vm1602_vm14, %v1955_v49, %v1958_v38 }
 0x151   : > { %1841 = vrot.lane.b32.xlu1 %v1793_v17, %s3853_s12 }
 0x152   : > { %1873 = vrot.lane.b32.xlu0 %v1860_v39, %s3854_s13  ;;  %v2034_v33 = vsel %vm484_vm1, %v2032_v27, %v2033_v5 }
 0x153   : > { %v1002_v18 = vpop.permute.xlu1 %1001 }
 0x154   : > { %v1398_v36 = vsel %vm6409_vm0, %v4734_v23, %v1002_v18  ;;  %v1000_v8 = vpop.permute.xlu0 %999 }
 0x155   : > { %v1396_v53 = vsel %vm6409_vm0, %v4822_v44, %v1000_v8  ;;  %v4920_v44 = vld [vmem:[%s4653_s28 + $0x1c] sm:$0xff]  }
 0x156   : > { %1935 = vrot.lane.b32.xlu2 %v1907_v60, %s3855_s14  ;;  %v4912_v23 = vsel %vm6410_vm13, %v1396_v53, %v1034_v31  ;;  %v4929_v59 = vshll.u32 %v4920_v44, 16  ;;  %v1522_v31 = vor.u32 %v4727_v48, %v6487_v47  ;;  %v1619_v48 = vshrl.u32 %v4730_v62, 16 }
 0x157   : > { %v4967_v49 = vshrl.u32 %v4920_v44, 16 }
 0x158   : > { %v1046_v15 = vpop.permute.xlu2 %1045  ;;  %v2036_v9 = vrot.slane %v4929_v59, 1  ;;  %v1716_v39 = vor.u32 %v4828_v55, %v1619_v48  ;;  %v1909_v21 = vrot.slane %v4929_v59, 3 }
 0x159   : > { %1988 = vrot.lane.b32.xlu1 %v1956_v52, %s3856_s16  ;;  %v1908_v60 = vrot.slane %v4967_v49, 2  ;;  %v1797_v52 = vrot.slane %v4967_v49, 1 }
 0x15a   : > { %1875 = vrot.lane.b32.xlu0 %v1862_v25, %s3854_s13  ;;  %v1800_v25 = vrot.slane %v4929_v59, 2 }
 0x15b   : > { %v1008_v13 = vpop.permute.xlu1 %1007  ;;  %v4989_v5 = vor.u32 %v1909_v21, %v1908_v60 }
 0x15c   : > { %v1404_v42 = vsel %vm6409_vm0, %v4786_v16, %v1008_v13  ;;  %v1006_v61 = vpop.permute.xlu0 %1005  ;;  %v4939_v16 = vrot.slane %v6488_v54, 1  ;;  %v1801_v38 = vor.u32 %v1800_v25, %v1797_v52 }
 0x15d   : > { %v1402_v20 = vsel %vm6409_vm0, %v1385_v32, %v1006_v61  ;;  %v4942_v32 = vld [vmem:[%s4653_s28 + $0x18] sm:$0xff]  }
 0x15e   : > { %2059 = vrot.lane.b32.xlu2 %v2034_v33, %s3858_s15  ;;  %v4932_v0 = vsel %vm6410_vm13, %v1402_v20, %v1040_v51  ;;  %v1524_v50 = vsel %vm484_vm1, %v1522_v31, %v4939_v16  ;;  %v1630_v56 = vshll.u32 %v4942_v32, 16  ;;  %v1621_v51 = vrot.slane %v1619_v48, 7 }
 0x15f   : > { %v1911_v33 = vsel %vm648_vm3, %v4892_v34, %v4989_v5  ;;  %v1802_v34 = vsel %vm1767_vm15, %v4872_v10, %v1801_v38  ;;  %v2038_v31 = vor.u32 %v2036_v9, %v4967_v49  ;;  %v1627_v54 = vshrl.u32 %v4942_v32, 16 }
 0x160   : > { %v1081_v24 = vpop.permute.xlu2 %1080  ;;  %v4964_v6 = vrot.slane %v1630_v56, 1  ;;  %v1624_v18 = vor.u32 %v1622_v29, %v1621_v51 }
 0x161   : > { %1990 = vrot.lane.b32.xlu1 %v1959_v12, %s3856_s16 }
 0x162   : > { %2007 = vrot.lane.b32.xlu0 %v4775_v4, %s3857_s6  ;;  %v2037_v4 = vsel %vm484_vm1, %v2035_v3, %v2036_v9  ;;  %v1718_v55 = vsel %vm484_vm1, %v1716_v39, %v4964_v6  ;;  %v1625_v29 = vsel %vm1602_vm14, %v4767_v28, %v1624_v18  ;;  %v5028_v3 = vrot.slane %v1627_v54, 7 }
 0x163   : > { %v1014_v35 = vpop.permute.xlu1 %1013  ;;  %v6491_v39 = vshll.u32 %v6490_v41, 16 }
 0x164   : > { %v1410_v45 = vsel %vm6409_vm0, %v4838_v19, %v1014_v35  ;;  %v1012_v14 = vpop.permute.xlu0 %1011 }
 0x165   : > { %v1408_v46 = vsel %vm6409_vm0, %v1391_v1, %v1012_v14  ;;  %vm6411_vm0 = vcmask 785408  }
 0x166   : > { %1552 = vrot.lane.b32.xlu2 %v1524_v50, %s3850_s9  ;;  %v4959_v17 = vsel %vm6410_vm13, %v1408_v46, %v1046_v15  ;;  %v4992_v15 = vld [vmem:[%s4653_s28 + $0x24] sm:$0xff]  }
 0x167   : > { %v5002_v28 = vshll.u32 %v4992_v15, 16  ;;  %v5044_v46 = vshrl.u32 %v4992_v15, 16 }
 0x168   : > { %v1087_v19 = vpop.permute.xlu2 %1086 }
 0x169   : > { %2061 = vrot.lane.b32.xlu1 %v2037_v4, %s3858_s15 }
 0x16a   : > { %2009 = vrot.lane.b32.xlu0 %v4834_v11, %s3857_s6 }
 0x16b   : > { %v1038_v1 = vpop.permute.xlu1 %1037 }
 0x16c   : > { %v1417_v43 = vsel %vm6410_vm13, %v4867_v7, %v1038_v1  ;;  %v1036_v8 = vpop.permute.xlu0 %1035  ;;  %v1809_v1 = vrot.slane %v5002_v28, 2 }
 0x16d   : > { %v1415_v53 = vsel %vm6410_vm13, %v1398_v36, %v1036_v8  ;;  %v1863_v36 = vrot.slane %v4920_v44, 2 }
 0x16e   : > { %1741 = vrot.lane.b32.xlu2 %v1718_v55, %s3852_s11  ;;  %v4985_v27 = vsel %vm6411_vm0, %v1415_v53, %v1081_v24  ;;  %v5060_v55 = vld [vmem:[%s4653_s28 + $0x20] sm:$0xff]  }
 0x16f   : > { %v6509_v30 = vshll.u32 %v5060_v55, 16 }
 0x170   : > { %v1093_v7 = vpop.permute.xlu2 %1092 }
 0x171   : > { %1689 = vrot.lane.b32.xlu1 %v4730_v62, %s3851_s10  ;;  %v1864_v62 = vsel %vm613_vm2, %v1861_v37, %v1863_v36 }
 0x172   : > { %1670 = vrot.lane.b32.xlu0 %v1625_v29, %s3849_s8 }
 0x173   : > { %v1044_v13 = vpop.permute.xlu1 %1043 }
 0x174   : > { %v1423_v61 = vsel %vm6410_vm13, %v4889_v63, %v1044_v13  ;;  %v1042_v20 = vpop.permute.xlu0 %1041  ;;  %v2039_v63 = vrot.slane %v5002_v28, 1 }
 0x175   : > { %v1421_v12 = vsel %vm6410_vm13, %v1404_v42, %v1042_v20  ;;  %v1960_v42 = vrot.slane %v4967_v49, 7 }
 0x176   : > { %1937 = vrot.lane.b32.xlu2 %v1911_v33, %s3855_s14  ;;  %v5016_v47 = vsel %vm6411_vm0, %v1421_v12, %v1087_v19  ;;  %v2040_v10 = vsel %vm484_vm1, %v2038_v31, %v2039_v63  ;;  %v1806_v19 = vrot.slane %v5044_v46, 1  ;;  %v1912_v12 = vrot.slane %v5044_v46, 2  ;;  %v5109_v31 = vld [vmem:[%s4653_s28 + $0x2c] sm:$0xff]  }
 0x177   : > { %v1961_v37 = vor.u32 %v1960_v42, %v4929_v59  ;;  %v1632_v59 = vor.u32 %v1630_v56, %v5028_v3 }
 0x178   : > { %v1173_v24 = vpop.permute.xlu2 %1172  ;;  %v5072_v53 = vor.u32 %v1809_v1, %v1806_v19  ;;  %v6498_v1 = vld [vmem:[#allocation23_spill] sm:$0xff] }
 0x179   : > { %1877 = vrot.lane.b32.xlu1 %v1864_v62, %s3854_s13  ;;  %v1962_v14 = vsel %vm1602_vm14, %v1957_v57, %v1961_v37  ;;  %v5054_v57 = vrot.slane %v6491_v39, 1  ;;  %v1633_v56 = vsel %vm1602_vm14, %v1621_v51, %v1632_v59  ;;  %v6419_v51 = vshll.u32 %v5060_v55, 16 }
 0x17a   : > { %1843 = vrot.lane.b32.xlu0 %v1802_v34, %s3853_s12  ;;  %v1811_v29 = vsel %vm1767_vm15, %v1801_v38, %v5072_v53  ;;  %v1913_v62 = vrot.slane %v5002_v28, 3  ;;  %v5124_v59 = vshll.u32 %v5109_v31, 16 }
 0x17b   : > { %v1079_v11 = vpop.permute.xlu1 %1078 }
 0x17c   : > { %v1430_v9 = vsel %vm6411_vm0, %v4912_v23, %v1079_v11  ;;  %v1048_v35 = vpop.permute.xlu0 %1047 }
 0x17d   : > { %v1427_v50 = vsel %vm6410_vm13, %v1410_v45, %v1048_v35  ;;  %v6489_v45 = vshrl.u32 %v4464_v26, 16  ;;  %vm1445_vm13 = vcmask 850944  }
 0x17e   : > { %2063 = vrot.lane.b32.xlu2 %v2040_v10, %s3858_s15  ;;  %v5035_v48 = vsel %vm6411_vm0, %v1427_v50, %v1093_v7  ;;  %v6415_v7 = vrot.slane %v5044_v46, 7  ;;  %v6417_v10 = vrot.slane %v4992_v15, 2 }
 0x17f   : > { %v1525_v4 = vor.u32 %v4939_v16, %v6489_v45  ;;  %v415_v45 = vld [vmem:[%s4292_s30 + $0x48] sm:$0x1] }
 0x180   : > { %v1179_v23 = vpop.permute.xlu2 %1178  ;;  %v1964_v38 = vor.u32 %v6415_v7, %v5002_v28 }
 0x181   : > { %2011 = vrot.lane.b32.xlu1 %v4920_v44, %s3857_s6  ;;  %v1527_v21 = vsel %vm484_vm1, %v1525_v4, %v5054_v57  ;;  %v2041_v4 = vor.u32 %v2039_v63, %v5044_v46  ;;  %v6416_v44 = vrot.slane %v5124_v59, 1 }
 0x182   : > { %1992 = vrot.lane.b32.xlu0 %v1962_v14, %s3856_s16  ;;  %v1965_v11 = vsel %vm1602_vm14, %v1960_v42, %v1964_v38 }
 0x183   : > { %v1085_v49 = vpop.permute.xlu1 %1084  ;;  %v2043_v63 = vsel %vm484_vm1, %v2041_v4, %v6416_v44  ;;  %v3626_v4 = vld [vmem:[%s4653_s28 + $0x38] sm:$0xff]  }
 0x184   : > { %v1436_v18 = vsel %vm6411_vm0, %v4932_v0, %v1085_v49  ;;  %v1083_v60 = vpop.permute.xlu0 %1082  ;;  %v1719_v0 = vor.u32 %v4964_v6, %v1627_v54  ;;  %v3619_v54 = vld [vmem:[%s4292_s30 + $0x40] sm:$0xff]  }
 0x185   : > { %v1434_v16 = vsel %vm6411_vm0, %v1417_v43, %v1083_v60  ;;  %v5080_v43 = vrot.slane %v6419_v51, 1  ;;  %v5152_v49 = vunpack.c.h.b16 %v3619_v54  ;;  %v6499_v60 = vshll.u32 %v6498_v1, 16  ;;  %v3493_v51 = vld [vmem:[%s6392_s3 + $0x58] sm:$0xff] }
 0x186   : > { %1672 = vrot.lane.b32.xlu2 %v1633_v56, %s3849_s8  ;;  %v5070_v8 = vsel %vm1445_vm13, %v1434_v16, %v1173_v24 }
 0x187   : > { %6492 = vst [vmem:[#allocation10_spill] sm:$0xff] %v5070_v8  ;;  %v1721_v6 = vsel %vm484_vm1, %v1719_v0, %v5080_v43 }
 0x188   : > { %v1203_v52 = vpop.permute.xlu2 %1202  ;;  %6495 = vst [vmem:[#allocation20_spill] sm:$0xff] %v5152_v49 }
 0x189   : > { %1554 = vrot.lane.b32.xlu1 %v1527_v21, %s3850_s9 }
 0x18a   : > { %1224 = vrot.lane.b32.xlu0 %v4436_v40, %s3863_s17 }
 0x18b   : > { %v1091_v25 = vpop.permute.xlu1 %1090 }
 0x18c   : > { %v5087_v13 = vsel %vm6411_vm0, %v4959_v17, %v1091_v25  ;;  %v1089_v33 = vpop.permute.xlu0 %1088 }
 0x18d   : > { %v1440_v20 = vsel %vm6411_vm0, %v1423_v61, %v1089_v33  ;;  %v5106_v61 = vor.u32 %v1913_v62, %v1912_v12  ;;  %vm6430_vm0 = vcmask 916480  }
 0x18e   : > { %1845 = vrot.lane.b32.xlu2 %v1811_v29, %s3853_s12  ;;  %v5099_v34 = vsel %vm1445_vm13, %v1440_v20, %v1179_v23  ;;  %v6412_v20 = vrot.slane %v4464_v26, 3 }
 0x18f   : > { %6493 = vst [vmem:[#allocation11_spill] sm:$0xff] %v5099_v34  ;;  %v1915_v14 = vsel %vm648_vm3, %v4989_v5, %v5106_v61 }
 0x190   : > { %v5101_v17 = vpop.permute.xlu2 %1550 }
 0x191   : > { %1743 = vrot.lane.b32.xlu1 %v1721_v6, %s3852_s11  ;;  %v6414_v6 = vrot.slane %v6490_v41, 3 }
 0x192   : > { %1691 = vrot.lane.b32.xlu0 %v4942_v32, %s3851_s10  ;;  %v3566_v32 = vunpack.c.l.b16 %v3619_v54 }
 0x193   : > { %v1171_v24 = vpop.permute.xlu1 %1170 }
 0x194   : > { %v5116_v37 = vsel %vm1445_vm13, %v4985_v27, %v1171_v24  ;;  %v1169_v35 = vpop.permute.xlu0 %1168  ;;  %v1866_v27 = vsel %vm613_vm2, %v1863_v36, %v6417_v10  ;;  %v5140_v5 = vpack.c.b16 %v3566_v32, %v4486_v58  ;;  %v1505_v58 = vunpack.c.l.b16 %v415_v45 }
 0x195   : > { %v1447_v50 = vsel %vm1445_vm13, %v1430_v9, %v1169_v35  ;;  %v6413_v9 = vrot.slane %v4442_v2, 3  ;;  %v5199_v35 = vld [vmem:[%s4292_s30 + $0x14] sm:$0xff]  }
 0x196   : > { %1994 = vrot.lane.b32.xlu2 %v1965_v11, %s3856_s16  ;;  %v5127_v42 = vsel %vm6430_vm0, %v1447_v50, %v1203_v52  ;;  %6494 = vst [vmem:[#allocation22_spill] sm:$0xff] %v5140_v5  ;;  %v1533_v16 = vshll.u32 %v5140_v5, 16  ;;  %v5171_v21 = vpack.c.b16 %v1505_v58, %v5152_v49  ;;  %v6500_v52 = vshrl.u32 %v6498_v1, 16  ;;  %v3491_v49 = vld [vmem:[%s6392_s3 + $0x48] sm:$0xff] }
 0x197   : > { %v1191_v39 = vsel %vm6431_vm4, %v1188_v22, %v6413_v9  ;;  %v5167_v22 = vrot.slane %v6499_v60, 1  ;;  %v1537_v12 = vshrl.u32 %v5140_v5, 16  ;;  %v6418_v11 = vshrl.u32 %v5060_v55, 16 }
 0x198   : > { %v5135_v23 = vpop.permute.xlu2 %1737  ;;  %v1535_v25 = vrot.slane %v1533_v16, 1  ;;  %v1541_v62 = vshll.u32 %v5171_v21, 16  ;;  %vm6511_vm0 = vcmask 654336  }
 0x199   : > { %1939 = vrot.lane.b32.xlu1 %v1915_v14, %s3855_s14  ;;  %v1531_v0 = vor.u32 %v5167_v22, %v6500_v52  ;;  %v5222_v58 = vrot.slane %v6418_v11, 7  ;;  %v5229_v52 = vunpack.c.l.b16 %v3626_v4 }
 0x19a   : > { %1879 = vrot.lane.b32.xlu0 %v1866_v27, %s3854_s13  ;;  %v5206_v27 = vld [vmem:[%s4653_s28 + $0x30] sm:$0xff]   ;;  %v5213_v45 = vrot.slane %v1541_v62, 1 }
 0x19b   : > { %v1177_v36 = vpop.permute.xlu1 %1176  ;;  %v1536_v50 = vsel %vm484_vm1, %v1531_v0, %v1535_v25  ;;  %v3595_v60 = vunpack.c.h.b16 %v5206_v27  ;;  %v1640_v26 = vor.u32 %v6509_v30, %v5222_v58 }
 0x19c   : > { %v5156_v56 = vsel %vm1445_vm13, %v5016_v47, %v1177_v36  ;;  %v1175_v19 = vpop.permute.xlu0 %1174  ;;  %v5174_v47 = vld [vmem:[%s4653_s28 + $0x28] sm:$0xff]  }
 0x19d   : > { %6496 = vst [vmem:[#allocation2_spill] sm:$0xff] %v5156_v56  ;;  %v5159_v28 = vsel %vm1445_vm13, %v1436_v18, %v1175_v19  ;;  %v1643_v29 = vshrl.u32 %v5174_v47, 16  ;;  %v1646_v14 = vshll.u32 %v5174_v47, 16  ;;  %v1651_v19 = vshrl.u32 %v5206_v27, 16 }
 0x19e   : > { %6497 = vst [vmem:[#allocation3_spill] sm:$0xff] %v5159_v28  ;;  %1204 = vrot.lane.b32.xlu2 %v1191_v39, %s3862_s29  ;;  %v432_v39 = vld [vmem:[%s4653_s28 + $0x3c] sm:$0x1] }
 0x19f   : > { %v1645_v32 = vrot.slane %v1643_v29, 7  ;;  %v5227_v16 = vrot.slane %v1646_v14, 1 }
 0x1a0   : > { %v5176_v18 = vpop.permute.xlu2 %1739 }
 0x1a1   : > { %2065 = vrot.lane.b32.xlu1 %v2043_v63, %s3858_s15  ;;  %v1648_v63 = vor.u32 %v1646_v14, %v1645_v32  ;;  %v3495_v14 = vld [vmem:[%s6392_s3 + $0x68] sm:$0xff] }
 0x1a2   : > { %2013 = vrot.lane.b32.xlu0 %v4992_v15, %s3857_s6  ;;  %2485 = vmatpush.bf16.msra.mxu1 %v3495_v14 }
 0x1a3   : > { %v1183_v33 = vpop.permute.xlu1 %1182  ;;  %3729 = vmatpush.bf16.msra.mxu3 %v3495_v14 }
 0x1a4   : > { %v5191_v38 = vsel %vm1445_vm13, %v5035_v48, %v1183_v33  ;;  %v1181_v54 = vpop.permute.xlu0 %1180  ;;  %v1197_v48 = vsel %vm6431_vm4, %v6412_v20, %v6414_v6  ;;  %v1654_v33 = vshll.u32 %v5206_v27, 16  ;;  %v5249_v20 = vpack.c.b16 %v5229_v52, %v3595_v60 }
 0x1a5   : > { %6501 = vst [vmem:[#allocation7_spill] sm:$0xff] %v5191_v38  ;;  %v5195_v24 = vsel %vm1445_vm13, %v5087_v13, %v1181_v54  ;;  %v1539_v13 = vor.u32 %v1537_v12, %v1535_v25  ;;  %v1683_v12 = vunpack.c.l.b16 %v432_v39  ;;  %v436_v54 = vld [vmem:[%s4653_s28 + $0x40] sm:$0x3]  ;;  %v5254_v6 = vunpack.c.h.b16 %v3626_v4 }
 0x1a6   : > { %6502 = vst [vmem:[#allocation15_spill] sm:$0xff] %v5195_v24  ;;  %1226 = vrot.lane.b32.xlu2 %v5199_v35, %s3863_s17  ;;  %v1726_v39 = vrot.slane %v1654_v33, 1  ;;  %v1758_v7 = vunpack.c.l.b16 %v436_v54  ;;  %v5269_v4 = vshrl.u32 %v5109_v31, 16  ;;  %v5272_v60 = vshrl.u32 %v5249_v20, 16 }
 0x1a7   : > { %v1544_v25 = vsel %vm484_vm1, %v1539_v13, %v5213_v45  ;;  %v1725_v13 = vor.u32 %v5227_v16, %v1643_v29  ;;  %v5252_v9 = vpack.c.b16 %v1683_v12, %v5229_v52  ;;  %v5275_v12 = vshll.u32 %v5249_v20, 16 }
 0x1a8   : > { %v5216_v36 = vpop.permute.xlu2 %1933  ;;  %v1815_v38 = vrot.slane %v5269_v4, 1  ;;  %v1824_v24 = vrot.slane %v5272_v60, 1  ;;  %v1728_v28 = vor.u32 %v1726_v39, %v1651_v19  ;;  %vm6510_vm13 = vcmask 588800  }
 0x1a9   : > { %1558 = vrot.lane.b32.xlu1 %v1536_v50, %s3850_s9  ;;  %v5239_v50 = vrot.slane %v1651_v19, 7  ;;  %v1727_v14 = vsel %vm484_vm1, %v1725_v13, %v1726_v39  ;;  %v1818_v13 = vrot.slane %v5124_v59, 2  ;;  %vm6512_vm4 = vcmask 719872  }
 0x1aa   : > { %1210 = vrot.lane.b32.xlu0 %v1197_v48, %s3862_s29  ;;  %v1649_v48 = vsel %vm1602_vm14, %v5222_v58, %v1648_v63  ;;  %v5264_v63 = vld [vmem:[%s4292_s30 + $0x2c] sm:$0xff]   ;;  %v1641_v58 = vsel %vm1602_vm14, %v5028_v3, %v1640_v26  ;;  %v2078_v26 = vsel %vm1240_vm5, %v5199_v35, %v5101_v17 }
 0x1ab   : > { %v5231_v0 = vpop.permute.xlu1 %1666  ;;  %v1656_v29 = vor.u32 %v1654_v33, %v5239_v50  ;;  %6503 = vst [vmem:[#allocation5_spill] sm:$0xff] %v5264_v63  ;;  %v1730_v33 = vshll.u32 %v5252_v9, 16  ;;  %v5303_v8 = vor.u32 %v1818_v13, %v1815_v38  ;;  %v3490_v13 = vld [vmem:[%s6392_s3 + $0x40] sm:$0xff] }
 0x1ac   : > { %v5236_v62 = vpop.permute.xlu0 %1548 }
 0x1ad   : > { %v1657_v11 = vsel %vm1602_vm14, %v1645_v32, %v1656_v29 }
 0x1ae   : > { %1560 = vrot.lane.b32.xlu2 %v1544_v25, %s3850_s9  ;;  %v3494_v25 = vld [vmem:[%s6392_s3 + $0x60] sm:$0xff] }
 0x1af   : > { %2486 = vmatpush.bf16.msra.mxu1 %v3494_v25  ;;  %3730 = vmatpush.bf16.msra.mxu3 %v3494_v25  ;;  %v5293_v25 = vrot.slane %v1730_v33, 1 }
 0x1b0   : > { %v5259_v44 = vpop.permute.xlu2 %1935 }
 0x1b1   : > { %1676 = vrot.lane.b32.xlu1 %v1649_v48, %s3849_s8  ;;  %v1766_v48 = vpack.c.b16 %v1758_v7, %v5254_v6  ;;  %v1827_v7 = vrot.slane %v5275_v12, 2  ;;  %6504 = vst [vmem:[#allocation6_spill] sm:$0xff] %v5293_v25  ;;  %v1733_v33 = vsel %vm484_vm1, %v1728_v28, %v5293_v25 }
 0x1b2   : > { %1232 = vrot.lane.b32.xlu0 %v5264_v63, %s3863_s17  ;;  %v437_v63 = vld [vmem:[%s4653_s28 + $0x40] sm:$0x7] }
 0x1b3   : > { %v5277_v54 = vpop.permute.xlu1 %1668  ;;  %v1831_v34 = vshrl.u32 %v1766_v48, 16  ;;  %v1834_v32 = vshll.u32 %v1766_v48, 16  ;;  %2487 = vmatpush.bf16.msra.mxu1 %v3493_v51  ;;  %3731 = vmatpush.bf16.msra.mxu3 %v3493_v51  ;;  %v1828_v19 = vor.u32 %v1827_v7, %v1824_v24  ;;  %v1856_v38 = vunpack.c.l.b16 %v437_v63 }
 0x1b4   : > { %v5282_v10 = vpop.permute.xlu0 %1685  ;;  %v6506_v63 = vshrl.u32 %v6490_v41, 16  ;;  %v2094_v3 = vsel %vm1258_vm6, %v2078_v26, %v5277_v54  ;;  %v441_v26 = vld [vmem:[%s4653_s28 + $0x48] sm:$0x1] }
 0x1b5   : > { %v1833_v51 = vrot.slane %v1831_v34, 1  ;;  %v1836_v48 = vrot.slane %v1834_v32, 2  ;;  %v3489_v34 = vld [vmem:[%s6392_s3 + $0x38] sm:$0xff]  ;;  %v6422_v32 = vrot.slane %v5109_v31, 2 }
 0x1b6   : > { %1747 = vrot.lane.b32.xlu2 %v1727_v14, %s3852_s11  ;;  %v3492_v14 = vld [vmem:[%s6392_s3 + $0x50] sm:$0xff]  ;;  %2435 = vmatpush.bf16.msra.mxu0 %v3489_v34  ;;  %v1528_v7 = vor.u32 %v5054_v57, %v6506_v63 }
 0x1b7   : > { %2488 = vmatpush.bf16.msra.mxu1 %v3492_v14  ;;  %3732 = vmatpush.bf16.msra.mxu3 %v3492_v14  ;;  %v5321_v28 = vor.u32 %v1836_v48, %v1833_v51  ;;  %v1869_v14 = vrot.slane %v5249_v20, 2 }
 0x1b8   : > { %v5295_v29 = vpop.permute.xlu2 %2059  ;;  %3721 = vmatpush.bf16.msra.mxu2 %v3489_v34 }
 0x1b9   : > { %1678 = vrot.lane.b32.xlu1 %v1657_v11, %s3849_s8  ;;  %6505 = vst [vmem:[#allocation13_spill] sm:$0xff] %v5321_v28  ;;  %v1838_v48 = vsel %vm1767_vm15, %v1828_v19, %v5321_v28  ;;  %v1870_v34 = vsel %vm613_vm2, %v6422_v32, %v1869_v14 }
 0x1ba   : > { %1695 = vrot.lane.b32.xlu0 %v5174_v47, %s3851_s10  ;;  %v1829_v47 = vsel %vm1767_vm15, %v5303_v8, %v1828_v19 }
 0x1bb   : > { %v5305_v39 = vpop.permute.xlu1 %1839  ;;  %2489 = vmatpush.bf16.msra.mxu1 %v3491_v49  ;;  %3733 = vmatpush.bf16.msra.mxu3 %v3491_v49  ;;  %v5337_v49 = vpack.c.b16 %v1856_v38, %v5254_v6  ;;  %v1530_v38 = vsel %vm484_vm1, %v1528_v7, %v5167_v22  ;;  %v1917_v22 = vrot.slane %v5124_v59, 3  ;;  %v1921_v7 = vrot.slane %v5275_v12, 3 }
 0x1bc   : > { %v5310_v11 = vpop.permute.xlu0 %1687 }
 0x1bd   : > { %6507 = vst [vmem:[#allocation14_spill] sm:$0xff] %v5337_v49  ;;  %v1925_v63 = vshrl.u32 %v5337_v49, 16  ;;  %v6508_v5 = vrot.slane %v5337_v49, 2  ;;  %v2110_v17 = vsel %vm1275_vm7, %v2094_v3, %v5310_v11 }
 0x1be   : > { %1749 = vrot.lane.b32.xlu2 %v1733_v33, %s3852_s11  ;;  %v3488_v33 = vld [vmem:[%s6392_s3 + $0x30] sm:$0xff]  ;;  %v2126_v11 = vsel %vm1292_vm8, %v2110_v17, %v5176_v18 }
 0x1bf   : > { %2490 = vmatpush.bf16.msra.mxu1 %v3490_v13  ;;  %3734 = vmatpush.bf16.msra.mxu3 %v3490_v13  ;;  %v1916_v13 = vrot.slane %v5269_v4, 2  ;;  %v1872_v56 = vsel %vm613_vm2, %v1869_v14, %v6508_v5  ;;  %v1927_v28 = vrot.slane %v1925_v63, 2 }
 0x1c0   : > { %v5323_v24 = vpop.permute.xlu2 %1552  ;;  %2436 = vmatpush.bf16.msra.mxu0 %v3488_v33  ;;  %3722 = vmatpush.bf16.msra.mxu2 %v3488_v33  ;;  %v1928_v33 = vshll.u32 %v5337_v49, 16 }
 0x1c1   : > { %1849 = vrot.lane.b32.xlu1 %v1829_v47, %s3853_s12  ;;  %v5347_v47 = vld [vmem:[%s4653_s28 + $0x40] sm:$0xff]  }
 0x1c2   : > { %1697 = vrot.lane.b32.xlu0 %v5206_v27, %s3851_s10  ;;  %v2076_v27 = vsel %vm1240_vm5, %v4436_v40, %v5236_v62  ;;  %v3487_v40 = vld [vmem:[%s6392_s3 + $0x28] sm:$0xff]  ;;  %v1920_v62 = vrot.slane %v5272_v60, 2  ;;  %v1930_v25 = vrot.slane %v1928_v33, 3 }
 0x1c3   : > { %v5342_v51 = vpop.permute.xlu1 %1841  ;;  %v2092_v19 = vsel %vm1258_vm6, %v2076_v27, %v5231_v0 }
 0x1c4   : > { %v1874_v57 = vpop.permute.xlu0 %1873  ;;  %2437 = vmatpush.bf16.msra.mxu0 %v3487_v40  ;;  %3723 = vmatpush.bf16.msra.mxu2 %v3487_v40  ;;  %v3486_v40 = vld [vmem:[%s6392_s3 + $0x20] sm:$0xff]  ;;  %v2108_v0 = vsel %vm1275_vm7, %v2092_v19, %v5282_v10  ;;  %v5396_v14 = vor.u32 %v1930_v25, %v1927_v28  ;;  %v1969_v10 = vrot.slane %v5272_v60, 7 }
 0x1c5   : > { %v2124_v30 = vsel %vm1292_vm8, %v2108_v0, %v5135_v23  ;;  %v2142_v0 = vsel %vm1309_vm9, %v2126_v11, %v5342_v51  ;;  %v6513_v51 = vshrl.u32 %v5060_v55, 16 }
 0x1c6   : > { %1851 = vrot.lane.b32.xlu2 %v1838_v48, %s3853_s12  ;;  %v3602_v48 = vunpack.c.l.b16 %v5347_v47  ;;  %v2140_v19 = vsel %vm1309_vm9, %v2124_v30, %v5305_v39  ;;  %v1966_v39 = vrot.slane %v5269_v4, 7  ;;  %v1970_v28 = vor.u32 %v1969_v10, %v5275_v12 }
 0x1c8   : > { %v5369_v32 = vpop.permute.xlu2 %1741  ;;  %v5389_v49 = vpack.c.b16 %v3602_v48, %v5254_v6  ;;  %2438 = vmatpush.bf16.msra.mxu0 %v3486_v40  ;;  %3724 = vmatpush.bf16.msra.mxu2 %v3486_v40  ;;  %v3485_v6 = vld [vmem:[%s6392_s3 + $0x18] sm:$0xff]  ;;  %v3483_v40 = vld [vmem:[%s6392_s3 + $0x8] sm:$0xff] }
 0x1c9   : > { %1556 = vrot.lane.b32.xlu1 %v1530_v38, %s3850_s9  ;;  %v5386_v38 = vor.u32 %v1917_v22, %v1916_v13 }
 0x1ca   : > { %1883 = vrot.lane.b32.xlu0 %v1870_v34, %s3854_s13  ;;  %v1922_v34 = vor.u32 %v1921_v7, %v1920_v62  ;;  %v1973_v23 = vshrl.u32 %v5389_v49, 16  ;;  %v1976_v22 = vshll.u32 %v5389_v49, 16 }
 0x1cb   : > { %v1989_v27 = vpop.permute.xlu1 %1988 }
 0x1cc   : > { %v1876_v5 = vpop.permute.xlu0 %1875  ;;  %v1923_v13 = vsel %vm648_vm3, %v5386_v38, %v1922_v34  ;;  %2439 = vmatpush.bf16.msra.mxu0 %v3485_v6  ;;  %3725 = vmatpush.bf16.msra.mxu2 %v3485_v6  ;;  %v1932_v25 = vsel %vm648_vm3, %v1922_v34, %v5396_v14  ;;  %v5430_v33 = vrot.slane %v1973_v23, 7  ;;  %v1971_v34 = vsel %vm1602_vm14, %v1966_v39, %v1970_v28 }
 0x1ce   : > { %1885 = vrot.lane.b32.xlu2 %v1872_v56, %s3854_s13  ;;  %v2156_v56 = vsel %vm1326_vm10, %v2140_v19, %v1874_v57  ;;  %v3484_v57 = vld [vmem:[%s6392_s3 + $0x10] sm:$0xff]  ;;  %v1978_v18 = vor.u32 %v1976_v22, %v5430_v33  ;;  %v3482_v19 = vld [vmem:[%s6392_s3] sm:$0xff] }
 0x1cf   : > { %v2172_v35 = vsel %vm1343_vm11, %v2156_v56, %v5216_v36 }
 0x1d0   : > { %v5408_v63 = vpop.permute.xlu2 %1937  ;;  %v2188_v62 = vsel %vm1360_vm12, %v2172_v35, %v1989_v27  ;;  %2440 = vmatpush.bf16.msra.mxu0 %v3484_v57  ;;  %3726 = vmatpush.bf16.msra.mxu2 %v3484_v57  ;;  %v1979_v56 = vsel %vm1602_vm14, %v1969_v10, %v1978_v18  ;;  %v2005_v10 = vunpack.c.l.b16 %v441_v26  ;;  %v2045_v35 = vrot.slane %v5275_v12, 1 }
 0x1d1   : > { %1674 = vrot.lane.b32.xlu1 %v1641_v58, %s3849_s8  ;;  %v1722_v58 = vor.u32 %v5080_v43, %v6513_v51 }
 0x1d2   : > { %1943 = vrot.lane.b32.xlu0 %v1923_v13, %s3855_s14 }
 0x1d3   : > { %v1991_v54 = vpop.permute.xlu1 %1990  ;;  %v1724_v43 = vsel %vm484_vm1, %v1722_v58, %v5227_v16 }
 0x1d4   : > { %v2008_v7 = vpop.permute.xlu0 %2007  ;;  %2441 = vmatpush.bf16.msra.mxu0 %v3483_v40  ;;  %3727 = vmatpush.bf16.msra.mxu2 %v3483_v40  ;;  %v2048_v40 = vrot.slane %v1976_v22, 1 }
 0x1d5   : > { %v2204_v48 = vsel %vm6510_vm13, %v2188_v62, %v2008_v7 }
 0x1d6   : > { %v2220_v36 = vsel %vm6511_vm0, %v2204_v48, %v5295_v29  ;;  %1945 = vrot.lane.b32.xlu2 %v1932_v25, %s3855_s14  ;;  %v2158_v29 = vsel %vm1326_vm10, %v2142_v0, %v1876_v5 }
 0x1d7   : > { %v2236_v27 = vsel %vm6512_vm4, %v2220_v36, 0  ;;  %v2174_v5 = vsel %vm1343_vm11, %v2158_v29, %v5259_v44  ;;  %vm6514_vm4 = vmmov %vm6510_vm13  ;;  %v5473_v44 = vunpack.c.h.b16 %v5347_v47  ;;  %vm6515_vm13 = vcmask 719872  }
 0x1d8   : > { %v5451_v30 = vpop.permute.xlu2 %2063  ;;  %v2246_v6 = vshll.u32 %v2236_v27, 16  ;;  %v2190_v3 = vsel %vm1360_vm12, %v2174_v5, %v1991_v54  ;;  %2442 = vmatpush.bf16.msra.mxu0 %v3482_v19  ;;  %3728 = vmatpush.bf16.msra.mxu2 %v3482_v19  ;;  %v2244_v54 = vshrl.u32 %v2236_v27, 16  ;;  %v2047_v36 = vor.u32 %v2045_v35, %v5272_v60  ;;  %v5492_v27 = vld [vmem:[%s4292_s30 + $0x1c] sm:$0xff]  }
 0x1d9   : > { %1693 = vrot.lane.b32.xlu1 %v5060_v55, %s3851_s10  ;;  %v5486_v48 = vpack.c.b16 %v2005_v10, %v5473_v44 }
 0x1da   : > { %1998 = vrot.lane.b32.xlu0 %v1971_v34, %s3856_s16  ;;  %v2248_v28 = vrot.slane %v2246_v6, 1  ;;  %v1820_v34 = vsel %vm1767_vm15, %v5072_v53, %v5303_v8  ;;  %v2049_v18 = vsel %vm484_vm1, %v2047_v36, %v2048_v40  ;;  %v1919_v53 = vsel %vm648_vm3, %v5106_v61, %v5386_v38  ;;  %vm6521_vm3 = vmmov %vm6511_vm0 }
 0x1db   : > { %v2062_v13 = vpop.permute.xlu1 %2061  ;;  %v2052_v60 = vshll.u32 %v5486_v48, 16  ;;  %v6519_v61 = vrot.slane %v5124_v59, 1  ;;  %vm6523_vm15 = vmmov %vm6515_vm13  ;;  %v1192_v36 = vrot.slane %v5492_v27, 3 }
 0x1dc   : > { %v2010_v25 = vpop.permute.xlu0 %2009  ;;  %v2249_v16 = vor.u32 %v2248_v28, %v2244_v54  ;;  %v1601_v28 = vpack.c.b16 %v5229_v52, %v5229_v52  ;;  %v6522_v54 = vrot.slane %v5044_v46, 7 }
 0x1dd   : > { %v2206_v55 = vsel %vm6514_vm4, %v2190_v3, %v2010_v25  ;;  %vm6516_vm4 = vcmask 785408   ;;  %v5512_v58 = vrot.slane %v2052_v60, 1  ;;  %v2044_v38 = vor.u32 %v6519_v61, %v5269_v4 }
 0x1de   : > { %v2222_v57 = vsel %vm6511_vm0, %v2206_v55, %v2062_v13  ;;  %2000 = vrot.lane.b32.xlu2 %v1979_v56, %s3856_s16  ;;  %vm1479_vm0 = vcmask 982016  }
 0x1df   : > { %v5476_v17 = vsel %vm6515_vm13, %v2222_v57, 0  ;;  %v2046_v25 = vsel %vm484_vm1, %v2044_v38, %v2045_v35  ;;  %vm6524_vm13 = vmmov %vm6516_vm4 }
 0x1e0   : > { %v2250_v62 = vshll.u32 %v5476_v17, 16  ;;  %v5480_v7 = vpop.permute.xlu2 %1672  ;;  %v2254_v52 = vshrl.u32 %v5476_v17, 16  ;;  %v1662_v17 = vshll.u32 %v1601_v28, 16 }
 0x1e1   : > { %1745 = vrot.lane.b32.xlu1 %v1724_v43, %s3852_s11 }
 0x1e2   : > { %2017 = vrot.lane.b32.xlu0 %v5249_v20, %s3857_s6  ;;  %v2252_v47 = vrot.slane %v2250_v62, 1  ;;  %v2080_v20 = vsel %vm1240_vm5, %v5492_v27, %v5323_v24  ;;  %v2050_v24 = vor.u32 %v2048_v40, %v1973_v23  ;;  %v6518_v23 = vrot.slane %v4992_v15, 2 }
 0x1e3   : > { %v1690_v11 = vpop.permute.xlu1 %1689  ;;  %v1967_v15 = vor.u32 %v1966_v39, %v5124_v59  ;;  %v1659_v39 = vshrl.u32 %v1601_v28, 16 }
 0x1e4   : > { %v1671_v12 = vpop.permute.xlu0 %1670  ;;  %v2253_v0 = vsel %vm484_vm1, %v2249_v16, %v2252_v47  ;;  %v2055_v13 = vsel %vm484_vm1, %v2050_v24, %v5512_v58  ;;  %v2256_v16 = vor.u32 %v2254_v52, %v2252_v47  ;;  %v6525_v47 = vrot.slane %v6490_v41, 3  ;;  %v5585_v41 = vld [vmem:[%s4292_s30 + $0x24] sm:$0xff]  }
 0x1e5   : > { %3472 = vmatmul.msk.bf16.vlgmr.msra.gmra.mxu1 %vm6516_vm4, %v2253_v0  ;;  %v2096_v22 = vsel %vm1258_vm6, %v2080_v20, %v1671_v12  ;;  %v1968_v59 = vsel %vm1602_vm14, %v6522_v54, %v1967_v15  ;;  %v1661_v12 = vrot.slane %v1659_v39, 7  ;;  %vm6526_vm4 = vcmask 1044480  }
 0x1e6   : > { %2019 = vrot.lane.b32.xlu2 %v5389_v49, %s3857_s6  ;;  %v2112_v51 = vsel %vm1275_vm7, %v2096_v22, %v1690_v11  ;;  %v6517_v49 = vrot.slane %v5109_v31, 2 }
 0x1e7   : > { %v2128_v19 = vsel %vm1292_vm8, %v2112_v51, %v5369_v32  ;;  %v1664_v22 = vor.u32 %v1662_v17, %v1661_v12 }
 0x1e8   : > { %v5505_v29 = vpop.permute.xlu2 %1845  ;;  %v1868_v56 = vsel %vm613_vm2, %v6518_v23, %v6517_v49  ;;  %vm6520_vm2 = vcmask 588800   ;;  %v1734_v23 = vshrl.u32 %v5252_v9, 16 }
 0x1e9   : > { %1847 = vrot.lane.b32.xlu1 %v1820_v34, %s3853_s12  ;;  %v6527_v34 = vrot.slane %v4442_v2, 3  ;;  %v1665_v2 = vsel %vm1602_vm14, %v5239_v50, %v1664_v22 }
 0x1ea   : > { %2069 = vrot.lane.b32.xlu0 %v2049_v18, %s3858_s15  ;;  %v1545_v18 = vshrl.u32 %v5171_v21, 16 }
 0x1eb   : > { %v1878_v8 = vpop.permute.xlu1 %1877 }
 0x1ec   : > { %v1844_v6 = vpop.permute.xlu0 %1843 }
 0x1ed   : > { %v2144_v5 = vsel %vm1309_vm9, %v2128_v19, %v1844_v6  ;;  %v1547_v6 = vor.u32 %v1545_v18, %v5213_v45 }
 0x1ee   : > { %1941 = vrot.lane.b32.xlu2 %v1919_v53, %s3855_s14  ;;  %v2160_v32 = vsel %vm1326_vm10, %v2144_v5, %v1878_v8  ;;  %v1954_v53 = vpack.c.b16 %v5473_v44, %v5473_v44 }
 0x1ef   : > { %v2176_v55 = vsel %vm1343_vm11, %v2160_v32, %v5408_v63 }
 0x1f0   : > { %v5531_v26 = vpop.permute.xlu2 %1994  ;;  %v1981_v49 = vshrl.u32 %v1954_v53, 16  ;;  %v1984_v61 = vshll.u32 %v1954_v53, 16 }
 0x1f1   : > { %2071 = vrot.lane.b32.xlu1 %v2055_v13, %s3858_s15 }
 0x1f2   : > { %1881 = vrot.lane.b32.xlu0 %v1868_v56, %s3854_s13  ;;  %v1983_v56 = vrot.slane %v1981_v49, 7  ;;  %v2531_v49 = vlaneseq }
 0x1f3   : > { %v2012_v3 = vpop.permute.xlu1 %2011 }
 0x1f4   : > { %v1993_v43 = vpop.permute.xlu0 %1992  ;;  %v1986_v28 = vor.u32 %v1984_v61, %v1983_v56 }
 0x1f5   : > { %v2192_v57 = vsel %vm1360_vm12, %v2176_v55, %v1993_v43  ;;  %v6531_v55 = vld [vmem:[#allocation13_spill] sm:$0xff] }
 0x1f6   : > { %v2208_v10 = vsel %vm6520_vm2, %v2192_v57, %v2012_v3  ;;  %2067 = vrot.lane.b32.xlu2 %v2046_v25, %s3858_s15  ;;  %vm6528_vm2 = vmmov %vm6526_vm4  ;;  %v6530_v3 = vld [vmem:[#allocation6_spill] sm:$0xff] }
 0x1f7   : > { %v2224_v35 = vsel %vm6521_vm3, %v2208_v10, %v5451_v30  ;;  %v1198_v30 = vrot.slane %v6498_v1, 3  ;;  %vm6529_vm3 = vcmask 916480   ;;  %v1736_v25 = vor.u32 %v1734_v23, %v6530_v3 }
 0x1f8   : > { %v5553_v4 = vsel %vm6523_vm15, %v2224_v35, 0  ;;  %v1205_v63 = vpop.permute.xlu2 %1204  ;;  %v1987_v35 = vsel %vm1602_vm14, %v5430_v33, %v1986_v28  ;;  %vm6532_vm15 = vcmask 588800   ;;  %v6535_v33 = vld [vmem:[#allocation14_spill] sm:$0xff]  ;;  %vm6539_vm14 = vmmov %vm6528_vm2 }
 0x1f9   : > { %2015 = vrot.lane.b32.xlu1 %v5109_v31, %s3857_s6  ;;  %v2257_v62 = vshll.u32 %v5553_v4, 16  ;;  %v1199_v20 = vsel %vm6526_vm4, %v6525_v47, %v1198_v30  ;;  %v1466_v44 = vsel %vm6529_vm3, %v5116_v37, %v1205_v63  ;;  %vm6534_vm4 = vcmask 719872  }
 0x1fa   : > { %1996 = vrot.lane.b32.xlu0 %v1968_v59, %s3856_s16  ;;  %v2261_v52 = vshrl.u32 %v5553_v4, 16  ;;  %v6537_v4 = vld [vmem:[#allocation17_spill] sm:$0xff] }
 0x1fb   : > { %v1555_v46 = vpop.permute.xlu1 %1554  ;;  %v5561_v11 = vrot.slane %v2257_v62, 1 }
 0x1fc   : > { %v1225_v40 = vpop.permute.xlu0 %1224  ;;  %v2082_v51 = vsel %vm1240_vm5, %v5585_v41, %v1555_v46  ;;  %v6536_v46 = vrot.slane %v6535_v33, 2 }
 0x1fd   : > { %v1481_v31 = vsel %vm1479_vm0, %v5127_v42, %v1225_v40  ;;  %v2260_v0 = vsel %vm484_vm1, %v2256_v16, %v5561_v11  ;;  %v1193_v42 = vsel %vm6528_vm2, %v6527_v34, %v1192_v36  ;;  %v2098_v19 = vsel %vm1258_vm6, %v2082_v51, %v5480_v7  ;;  %v6541_v34 = vld [vmem:[#allocation25_spill] sm:$0xff]  ;;  %v6544_v51 = vld [vmem:[#allocation22_spill] sm:$0xff] }
 0x1fe   : > { %2443 = vmatmul.bf16.vlgmr.msra.gmra.mxu0 %v1481_v31  ;;  %3473 = vmatmul.msk.bf16.gmra.mxu1 %vm6524_vm13, %v2260_v0  ;;  %vm6533_vm13 = vcmask 654336   ;;  %v2263_v16 = vor.u32 %v2261_v52, %v5561_v11  ;;  %v6538_v0 = vrot.slane %v6537_v4, 3  ;;  %vm6540_vm2 = vcmask 785408  }
 0x1ff   : > { %1228 = vrot.lane.b32.xlu2 %v5492_v27, %s3863_s17 }
 0x200   : > { %v1227_v60 = vpop.permute.xlu2 %1226 }
 0x201   : > { %1212 = vrot.lane.b32.xlu1 %v1199_v20, %s3862_s29  ;;  %v1484_v32 = vsel %vm1479_vm0, %v1466_v44, %v1227_v60  ;;  %v6542_v60 = vld [vmem:[#allocation2_spill] sm:$0xff] }
 0x202   : > { %1206 = vrot.lane.b32.xlu0 %v1193_v42, %s3862_s29  ;;  %v1200_v42 = vrot.slane %v6541_v34, 3 }
 0x203   : > { %v1744_v24 = vpop.permute.xlu1 %1743 }
 0x204   : > { %v1692_v8 = vpop.permute.xlu0 %1691 }
 0x205   : > { %v2114_v5 = vsel %vm1275_vm7, %v2098_v19, %v1692_v8  ;;  %v6545_v8 = vld [vmem:[#allocation20_spill] sm:$0xff] }
 0x206   : > { %v2130_v50 = vsel %vm1292_vm8, %v2114_v5, %v1744_v24 }
 0x207   : > { %1680 = vrot.lane.b32.xlu2 %v1665_v2, %s3849_s8  ;;  %v2146_v38 = vsel %vm1309_vm9, %v2130_v50, %v5505_v29  ;;  %v1223_v2 = vpack.c.b16 %v6545_v8, %v6545_v8  ;;  %s3739_s8 = smul.u32 15, %s6637_s18 }
 0x208   : > { %v5598_v13 = vpop.permute.xlu2 %1560 }
 0x209   : > { %1562 = vrot.lane.b32.xlu1 %v1547_v6, %s3850_s9  ;;  %s3740_s9 = smul.u32 150, %s6631_s19 }
 0x20a   : > { %1234 = vrot.lane.b32.xlu0 %v6498_v1, %s3863_s17 }
 0x20b   : > { %v1940_v45 = vpop.permute.xlu1 %1939 }
 0x20c   : > { %v1880_v7 = vpop.permute.xlu0 %1879 }
 0x20d   : > { %v2162_v15 = vsel %vm1326_vm10, %v2146_v38, %v1880_v7 }
 0x20e   : > { %2448 = vmatmul.bf16.gmra.mxu0 %v1484_v32  ;;  %v2178_v37 = vsel %vm1343_vm11, %v2162_v15, %v1940_v45  ;;  %v5680_v45 = vshrl.u32 %v2531_v49, 7 }
 0x20f   : > { %1853 = vrot.lane.b32.xlu2 %v6531_v55, %s3853_s12  ;;  %v2194_v57 = vsel %vm1360_vm12, %v2178_v37, %v5531_v26  ;;  %v2088_v37 = vsel %vm1240_vm5, %v6544_v51, %v5598_v13 }
 0x210   : > { %v5614_v43 = vpop.permute.xlu2 %1747  ;;  %v2550_v7 = vand.u32 65535, %v5680_v45  ;;  %v2551_v56 = vshrl.u32 %v5680_v45, 16 }
 0x211   : > { %1751 = vrot.lane.b32.xlu1 %v1736_v25, %s3852_s11  ;;  %v5691_v25 = vadd.s32 8, %v5680_v45 }
 0x212   : > { %1699 = vrot.lane.b32.xlu0 %v5252_v9, %s3851_s10  ;;  %v2056_v9 = vshrl.u32 %v5486_v48, 16  ;;  %v5684_v61 = vmul.u32 43690, %v2550_v7  ;;  %v2553_v15 = vmul.u32 43691, %v2550_v7  ;;  %v5693_v55 = vmul.u32 43691, %v2551_v56  ;;  %s353_s10 = sadd.s32 %s3740_s9, %s3739_s8 }
 0x213   : > { %v2066_v29 = vpop.permute.xlu1 %2065  ;;  %s3414_s11 = sshll.u32 %s353_s10, 3 }
 0x214   : > { %v2014_v10 = vpop.permute.xlu0 %2013  ;;  %v2058_v20 = vor.u32 %v2056_v9, %v5512_v58  ;;  %v2557_v28 = vshll.u32 %v5684_v61, 16 }
 0x215   : > { %v2210_v54 = vsel %vm6532_vm15, %v2194_v57, %v2014_v10  ;;  %vm6543_vm15 = vmmov %vm6539_vm14 }
 0x216   : > { %v2226_v59 = vsel %vm6533_vm13, %v2210_v54, %v2066_v29  ;;  %v1201_v58 = vsel %vm6543_vm15, %v1198_v30, %v1200_v42  ;;  %v2579_v29 = vand.u32 65535, %v5691_v25  ;;  %vm2561_vm13 = vc.u32 %v2553_v15, %v2557_v28 }
 0x217   : > { %v2239_v63 = vsel %vm6534_vm4, %v2226_v59, 0  ;;  %2002 = vrot.lane.b32.xlu2 %v1987_v35, %s3856_s16  ;;  %v2580_v35 = vshrl.u32 %v5691_v25, 16  ;;  %v2563_v52 = vadd.s32 %v2557_v28, %v2553_v15  ;;  %vm6547_vm15 = vcmask 654336   ;;  %s3741_s16 = smul.u32 10, %s6631_s19 }
 0x218   : > { %v2264_v39 = vshll.u32 %v2239_v63, 16  ;;  %v2268_v26 = vshrl.u32 %v2239_v63, 16  ;;  %v5632_v62 = vpop.permute.xlu2 %1749  ;;  %v5706_v63 = vmul.u32 43690, %v2579_v29  ;;  %v2582_v9 = vmul.u32 43691, %v2579_v29 }
 0x219   : > { %1947 = vrot.lane.b32.xlu1 %v5396_v14, %s3855_s14  ;;  %v1195_v14 = vsel %vm6539_vm14, %v1192_v36, %v6538_v0  ;;  %v2560_v15 = vshrl.u32 %v5693_v55, 16  ;;  %s5831_s14 = scalar_lea.vmem %s6393_s4, %s3414_s11  ;;  %s6299_s19 = sadd.s32 %s3741_s16, %s6637_s18 }
 0x21a   : > { %1887 = vrot.lane.b32.xlu0 %v6536_v46, %s3854_s13  ;;  %v2266_v40 = vrot.slane %v2264_v39, 1  ;;  %v2559_v39 = vshll.u32 %v5693_v55, 16  ;;  %v2556_v46 = vmul.u32 43690, %v2551_v56  ;;  %s3415_s18 = sshll.u32 %s6299_s19, 3 }
 0x21b   : > { %v1559_v12 = vpop.permute.xlu1 %1558 }
 0x21c   : > { %v1211_v17 = vpop.permute.xlu0 %1210  ;;  %v2267_v31 = vsel %vm484_vm1, %v2263_v16, %v2266_v40  ;;  %v5644_v47 = vor.u32 %v2268_v26, %v2266_v40  ;;  %v2086_v57 = vsel %vm1240_vm5, %v6498_v1, %v1559_v12  ;;  %v5710_v26 = vmul.u32 43691, %v2580_v35 }
 0x21d   : > { %3474 = vmatmul.msk.bf16.gmra.mxu1 %vm6540_vm2, %v2267_v31  ;;  %v1472_v27 = vsel %vm6529_vm3, %v6542_v60, %v1211_v17  ;;  %v2586_v1 = vshll.u32 %v5706_v63, 16  ;;  %v5716_v16 = vadd.s32 16, %v5680_v45  ;;  %v3864_v17 = vmov 0  }
 0x21e   : > { %v2562_v31 = vsel %vm2561_vm13, 1, %v3864_v17  ;;  %vm2565_vm4 = vc.u32 %v2563_v52, %v2559_v39  ;;  %vm6546_vm3 = vcmask 588800   ;;  %vm6548_vm13 = vcmask 719872   ;;  %v6549_v39 = vld [vmem:[#allocation5_spill] sm:$0xff] }
 0x21f   : > { %1208 = vrot.lane.b32.xlu2 %v1195_v14, %s3862_s29  ;;  %v2608_v0 = vand.u32 65535, %v5716_v16  ;;  %vm2590_vm14 = vc.u32 %v2582_v9, %v2586_v1  ;;  %v2592_v34 = vadd.s32 %v2586_v1, %v2582_v9  ;;  %v2609_v60 = vshrl.u32 %v5716_v16, 16 }
 0x220   : > { %v5655_v36 = vpop.permute.xlu2 %1851 }
 0x221   : > { %2073 = vrot.lane.b32.xlu1 %v2058_v20, %s3858_s15  ;;  %v2614_v52 = vmul.u32 43690, %v2609_v60  ;;  %s6339_s15 = scalar_lea.vmem %s6394_s5, %s3415_s18 }
 0x222   : > { %2021 = vrot.lane.b32.xlu0 %v5486_v48, %s3857_s6 }
 0x223   : > { %v1677_v11 = vpop.permute.xlu1 %1676 }
 0x224   : > { %v1233_v22 = vpop.permute.xlu0 %1232  ;;  %v2102_v54 = vsel %vm1258_vm6, %v2086_v57, %v1677_v11  ;;  %v2588_v11 = vshll.u32 %v5710_v26, 16 }
 0x225   : > { %v1493_v18 = vsel %vm1479_vm0, %v1472_v27, %v1233_v22  ;;  %v5731_v27 = vmul.u32 43690, %v2608_v0  ;;  %v2566_v22 = vsel %vm2565_vm4, 1, %v3864_v17 }
 0x226   : > { %2463 = vmatmul.bf16.vlgmr.msra.gmra.mxu2 %v1493_v18  ;;  %v2585_v18 = vmul.u32 43690, %v2580_v35  ;;  %vm2594_vm2 = vc.u32 %v2592_v34, %v2588_v11  ;;  %v2587_v35 = vshrl.u32 %v5706_v63, 16 }
 0x227   : > { %1236 = vrot.lane.b32.xlu2 %v6544_v51, %s3863_s17  ;;  %v2591_v51 = vsel %vm2590_vm14, 1, %v3864_v17  ;;  %vm6550_vm14 = vmmov %vm6546_vm3 }
 0x228   : > { %v5668_v53 = vpop.permute.xlu2 %1885  ;;  %v2593_v7 = vadd.s32 %v2591_v51, %v2585_v18 }
 0x229   : > { %1230 = vrot.lane.b32.xlu1 %v5585_v41, %s3863_s17 }
 0x22a   : > { %1214 = vrot.lane.b32.xlu0 %v1201_v58, %s3862_s29 }
 0x22b   : > { %v1679_v48 = vpop.permute.xlu1 %1678 }
 0x22c   : > { %v1696_v24 = vpop.permute.xlu0 %1695  ;;  %v2104_v10 = vsel %vm1258_vm6, %v2088_v37, %v1679_v48 }
 0x22d   : > { %v2118_v13 = vsel %vm1275_vm7, %v2102_v54, %v1696_v24 }
 0x22e   : > { %v2134_v4 = vsel %vm1292_vm8, %v2118_v13, %v5614_v43 }
 0x230   : > { %v5672_v19 = vpop.permute.xlu2 %1945 }
 0x231   : > { %1238 = vrot.lane.b32.xlu1 %v1223_v2, %s3863_s17 }
 0x232   : > { %1216 = vrot.lane.b32.xlu0 %v1200_v42, %s3862_s29  ;;  %v2564_v42 = vadd.s32 %v2562_v31, %v2556_v46 }
 0x233   : > { %v1850_v30 = vpop.permute.xlu1 %1849 }
 0x234   : > { %v1698_v6 = vpop.permute.xlu0 %1697  ;;  %v2150_v14 = vsel %vm1309_vm9, %v2134_v4, %v1850_v30  ;;  %v2568_v2 = vadd.s32 %v2566_v22, %v2564_v42  ;;  %v2611_v30 = vmul.u32 43691, %v2608_v0 }
 0x235   : > { %v2120_v59 = vsel %vm1275_vm7, %v2104_v10, %v1698_v6  ;;  %v5741_v6 = vmul.u32 43691, %v2609_v60 }
 0x236   : > { %v2136_v40 = vsel %vm1292_vm8, %v2120_v59, %v5632_v62  ;;  %v5754_v59 = vadd.s32 24, %v5680_v45 }
 0x237   : > { %v2152_v62 = vsel %vm1309_vm9, %v2136_v40, %v5655_v36  ;;  %v2558_v36 = vshrl.u32 %v5684_v61, 16  ;;  %v2617_v37 = vshll.u32 %v5741_v6, 16 }
 0x238   : > { %v5676_v23 = vpop.permute.xlu2 %2000  ;;  %v2168_v48 = vsel %vm1326_vm10, %v2152_v62, %v5668_v53  ;;  %v2595_v53 = vsel %vm2594_vm2, 1, %v3864_v17  ;;  %v2637_v1 = vand.u32 65535, %v5754_v59 }
 0x239   : > { %v2569_v28 = vadd.s32 %v2568_v2, %v2558_v36  ;;  %v2597_v54 = vadd.s32 %v2595_v53, %v2593_v7  ;;  %v2616_v36 = vshrl.u32 %v5731_v27, 16 }
 0x23a   : > { %v5772_v0 = vmul.u32 43690, %v2637_v1  ;;  %v2640_v42 = vmul.u32 43691, %v2637_v1 }
 0x23b   : > { %v5674_v5 = vpop.permute.xlu1 %1556  ;;  %v2570_v40 = vadd.s32 %v2569_v28, %v2560_v15  ;;  %v2618_v28 = vshrl.u32 %v5741_v6, 16 }
 0x23c   : > { %v1884_v41 = vpop.permute.xlu0 %1883  ;;  %v2084_v55 = vsel %vm1240_vm5, %v6549_v39, %v5674_v5  ;;  %v2644_v18 = vshll.u32 %v5772_v0, 16 }
 0x23d   : > { %v2166_v43 = vsel %vm1326_vm10, %v2150_v14, %v1884_v41  ;;  %v2615_v41 = vshll.u32 %v5731_v27, 16 }
 0x23f   : > { %vm2619_vm4 = vc.u32 %v2611_v30, %v2615_v41  ;;  %v2621_v29 = vadd.s32 %v2615_v41, %v2611_v30 }
 0x240   : > { %v5688_v32 = vpop.permute.xlu2 %2019  ;;  %v2620_v63 = vsel %vm2619_vm4, 1, %v3864_v17  ;;  %vm6553_vm4 = vcmask 785408  }
 0x241   : > { %vm2623_vm2 = vc.u32 %v2621_v29, %v2617_v37  ;;  %v2622_v11 = vadd.s32 %v2620_v63, %v2614_v52  ;;  %v2645_v52 = vshrl.u32 %v5772_v0, 16 }
 0x242   : > { %v2624_v62 = vsel %vm2623_vm2, 1, %v3864_v17  ;;  %vm6554_vm2 = vcmask 588800  }
 0x243   : > { %v5678_v50 = vpop.permute.xlu1 %1674 }
 0x244   : > { %v1944_v44 = vpop.permute.xlu0 %1943  ;;  %v2100_v9 = vsel %vm1258_vm6, %v2084_v55, %v5678_v50 }
 0x245   : > { %v2182_v58 = vsel %vm1343_vm11, %v2166_v43, %v1944_v44  ;;  %v2571_v43 = vshrl.u32 %v2570_v40, 3 }
 0x247   : > { %v2572_v27 = vmul.u32 12, %v2571_v43 }
 0x248   : > { %v5725_v20 = vpop.permute.xlu2 %1941 }
 0x24b   : > { %v5686_v38 = vpop.permute.xlu1 %1693 }
 0x24c   : > { %v1999_v3 = vpop.permute.xlu0 %1998  ;;  %v2116_v50 = vsel %vm1275_vm7, %v2100_v9, %v5686_v38 }
 0x24d   : > { %v2198_v24 = vsel %vm1360_vm12, %v2182_v58, %v1999_v3  ;;  %v2184_v3 = vsel %vm1343_vm11, %v2168_v48, %v5672_v19 }
 0x24e   : > { %v2200_v19 = vsel %vm1360_vm12, %v2184_v3, %v5676_v23  ;;  %v2638_v23 = vshrl.u32 %v5754_v59, 16 }
 0x24f   : > { %v2216_v13 = vsel %vm6550_vm14, %v2200_v19, %v5688_v32  ;;  %v2598_v32 = vadd.s32 %v2597_v54, %v2587_v35  ;;  %v2573_v54 = vsub.s32 %v5680_v45, %v2572_v27 }
 0x250   : > { %v2068_v57 = vpop.permute.xlu2 %2067  ;;  %v5783_v22 = vmul.u32 43691, %v2638_v23 }
 0x252   : > { %v2646_v2 = vshll.u32 %v5783_v22, 16 }
 0x253   : > { %v5713_v33 = vpop.permute.xlu1 %1745 }
 0x254   : > { %v2018_v12 = vpop.permute.xlu0 %2017  ;;  %v2132_v60 = vsel %vm1292_vm8, %v2116_v50, %v5713_v33  ;;  %v2626_v33 = vadd.s32 %v2624_v62, %v2622_v11  ;;  %v3027_v50 = vadd.s32 12, %v2573_v54 }
 0x255   : > { %v2214_v49 = vsel %vm6546_vm3, %v2198_v24, %v2018_v12  ;;  %v2589_v12 = vshrl.u32 %v5710_v26, 16  ;;  %vm6551_vm3 = vmmov %vm6547_vm15 }
 0x256   : > { %v2627_v37 = vadd.s32 %v2626_v33, %v2616_v36 }
 0x257   : > { %v2599_v48 = vadd.s32 %v2598_v32, %v2589_v12 }
 0x258   : > { %v2628_v55 = vadd.s32 %v2627_v37, %v2618_v28 }
 0x259   : > { %v1229_v30 = vpop.permute.xlu2 %1228 }
 0x25b   : > { %v1848_v8 = vpop.permute.xlu1 %1847 }
 0x25c   : > { %v2070_v44 = vpop.permute.xlu0 %2069  ;;  %v2148_v38 = vsel %vm1309_vm9, %v2132_v60, %v1848_v8  ;;  %v2643_v8 = vmul.u32 43690, %v2638_v23 }
 0x25d   : > { %v2230_v56 = vsel %vm6547_vm15, %v2214_v49, %v2070_v44  ;;  %vm6552_vm15 = vmmov %vm6548_vm13  ;;  %v2650_v49 = vadd.s32 %v2644_v18, %v2640_v42 }
 0x25e   : > { %v2241_v61 = vsel %vm6548_vm13, %v2230_v56, 0  ;;  %vm2648_vm13 = vc.u32 %v2640_v42, %v2644_v18 }
 0x25f   : > { %v2278_v10 = vshll.u32 %v2241_v61, 16  ;;  %v2282_v26 = vshrl.u32 %v2241_v61, 16  ;;  %v2649_v7 = vsel %vm2648_vm13, 1, %v3864_v17  ;;  %vm2652_vm14 = vc.u32 %v2650_v49, %v2646_v2 }
 0x260   : > { %v2600_v61 = vshrl.u32 %v2599_v48, 3  ;;  %v2651_v29 = vadd.s32 %v2649_v7, %v2643_v8  ;;  %vm2982_vm13 = vcmp.ne.s32.totalorder %v2573_v54, 0 }
 0x261   : > { %v5769_v31 = vrot.slane %v2278_v10, 1  ;;  %v1681_v63 = vpop.permute.xlu2 %1680 }
 0x262   : > { %v2601_v39 = vmul.u32 12, %v2600_v61  ;;  %v2492_v0 = vpop.f32.mrf.mxu1 }
 0x263   : > { %v2072_v46 = vpop.permute.xlu1 %2071  ;;  %v2284_v58 = vor.u32 %v2282_v26, %v5769_v31 }
 0x264   : > { %v2232_v5 = vsel %vm6551_vm3, %v2216_v13, %v2072_v46  ;;  %v1882_v4 = vpop.permute.xlu0 %1881  ;;  %v2602_v12 = vsub.s32 %v5691_v25, %v2601_v39 }
 0x265   : > { %v5777_v14 = vsel %vm6552_vm15, %v2232_v5, 0  ;;  %v2164_v24 = vsel %vm1326_vm10, %v2148_v38, %v1882_v4  ;;  %v2629_v5 = vshrl.u32 %v2628_v55, 3  ;;  %v2647_v4 = vshrl.u32 %v5783_v22, 16 }
 0x266   : > { %v2285_v34 = vshll.u32 %v5777_v14, 16  ;;  %v2180_v56 = vsel %vm1343_vm11, %v2164_v24, %v5725_v20  ;;  %v2653_v20 = vsel %vm2652_vm14, 1, %v3864_v17  ;;  %vm2997_vm14 = vcmp.lt.s32.totalorder %v2573_v54, 0 }
 0x267   : > { %v2655_v13 = vadd.s32 %v2653_v20, %v2651_v29  ;;  %v3028_v18 = vadd.s32 12, %v2602_v12 }
 0x268   : > { %v5788_v51 = vrot.slane %v2285_v34, 1  ;;  %v6560_v34 = vld [vmem:[#allocation11_spill] sm:$0xff] }
 0x269   : > { %v2656_v32 = vadd.s32 %v2655_v13, %v2645_v52  ;;  %v1854_v48 = vpop.permute.xlu2 %1853 }
 0x26a   : > { %v2288_v41 = vsel %vm484_vm1, %v2284_v58, %v5788_v51 }
 0x26b   : > { %v2016_v44 = vpop.permute.xlu1 %2015  ;;  %3477 = vmatmul.msk.bf16.vlgmr.msra.gmra.mxu3 %vm6553_vm4, %v2288_v41  ;;  %vm6556_vm4 = vcmask 916480   ;;  %v2657_v25 = vadd.s32 %v2656_v32, %v2647_v4 }
 0x26c   : > { %v1997_v53 = vpop.permute.xlu0 %1996 }
 0x26d   : > { %v2196_v3 = vsel %vm1360_vm12, %v2180_v56, %v1997_v53  ;;  %v2658_v36 = vshrl.u32 %v2657_v25, 3 }
 0x26e   : > { %v2212_v15 = vsel %vm6554_vm2, %v2196_v3, %v2016_v44  ;;  %vm6557_vm2 = vcmask 785408  }
 0x26f   : > { %v2228_v10 = vsel %vm6551_vm3, %v2212_v15, %v2068_v57  ;;  %v6555_v57 = vld [vmem:[#allocation10_spill] sm:$0xff]  ;;  %vm5824_vm3 = vmand %vm2997_vm14, %vm2982_vm13  ;;  %v2659_v49 = vmul.u32 12, %v2658_v36 }
 0x270   : > { %v2240_v35 = vsel %vm6552_vm15, %v2228_v10, 0  ;;  %vm2983_vm15 = vcmp.ne.s32.totalorder %v2602_v12, 0  ;;  %v3042_v60 = vsel %vm5824_vm3, %v3027_v50, %v2573_v54 }
 0x271   : > { %v2271_v19 = vshll.u32 %v2240_v35, 16  ;;  %vm3057_vm14 = vcmp.lt.s32.totalorder %v3042_v60, 10  ;;  %v2275_v33 = vshrl.u32 %v2240_v35, 16  ;;  %v2003_v35 = vpop.permute.xlu2 %2002 }
 0x273   : > { %v1213_v9 = vpop.permute.xlu1 %1212  ;;  %v2273_v6 = vrot.slane %v2271_v19, 1 }
 0x274   : > { %v1207_v1 = vpop.permute.xlu0 %1206 }
 0x275   : > { %v1468_v46 = vsel %vm6556_vm4, %v6555_v57, %v1207_v1  ;;  %v2274_v40 = vsel %vm484_vm1, %v5644_v47, %v2273_v6  ;;  %vm2998_vm4 = vcmp.lt.s32.totalorder %v2602_v12, 0  ;;  %v2630_v47 = vmul.u32 12, %v2629_v5 }
 0x276   : > { %3475 = vmatmul.msk.bf16.gmra.mxu1 %vm6557_vm2, %v2274_v40  ;;  %v1487_v23 = vsel %vm1479_vm0, %v1468_v46, %v1229_v30  ;;  %vm6561_vm2 = vcmask 916480   ;;  %vm5838_vm13 = vmand %vm2998_vm4, %vm2983_vm15  ;;  %v2494_v30 = vpop.f32.mrf.mxu1  ;;  %v2277_v41 = vor.u32 %v2275_v33, %v2273_v6 }
 0x277   : > { %2453 = vmatmul.bf16.gmra.mxu0 %v1487_v23  ;;  %v1474_v62 = vsel %vm6561_vm2, %v6560_v34, %v1213_v9  ;;  %v2631_v24 = vsub.s32 %v5716_v16, %v2630_v47  ;;  %v3043_v2 = vsel %vm5838_vm13, %v3028_v18, %v2602_v12  ;;  %vm6566_vm13 = vcmask 785408  }
 0x278   : > { %vm3058_vm4 = vcmp.lt.s32.totalorder %v3043_v2, 10  ;;  %v2281_v61 = vsel %vm484_vm1, %v2277_v41, %v5769_v31 }
 0x279   : > { %vm2984_vm3 = vcmp.ne.s32.totalorder %v2631_v24, 0  ;;  %vm2999_vm15 = vcmp.lt.s32.totalorder %v2631_v24, 0  ;;  %v3029_v27 = vadd.s32 12, %v2631_v24  ;;  %v1209_v11 = vpop.permute.xlu2 %1208 }
 0x27a   : > { %vm5851_vm2 = vmand %vm2999_vm15, %vm2984_vm3 }
 0x27b   : > { %v2444_v26 = vpop.f32.mrf.mxu0  ;;  %v1563_v43 = vpop.permute.xlu1 %1562  ;;  %v3044_v19 = vsel %vm5851_vm2, %v3029_v27, %v2631_v24  ;;  %v2289_v24 = vshrl.u32 %v5777_v14, 16  ;;  %v6572_v27 = vld [vmem:[#allocation15_spill] sm:$0xff] }
 0x27c   : > { %v2493_v42 = vadd.f32 %v2492_v0, %v2444_v26  ;;  %v1235_v22 = vpop.permute.xlu0 %1234  ;;  %v2090_v44 = vsel %vm1240_vm5, %v5171_v21, %v1563_v43  ;;  %v2660_v21 = vsub.s32 %v5754_v59, %v2659_v49  ;;  %vm3059_vm3 = vcmp.lt.s32.totalorder %v3044_v19, 10 }
 0x27d   : > { %v1496_v38 = vsel %vm1479_vm0, %v1474_v62, %v1235_v22  ;;  %v2106_v37 = vsel %vm1258_vm6, %v2090_v44, %v1681_v63  ;;  %v6570_v44 = vld [vmem:[#allocation3_spill] sm:$0xff]  ;;  %v5907_v19 = vadd.s32 40, %v5680_v45 }
 0x27e   : > { %3207 = vst.msk [vmem:[%s5831_s14] sm:$0xff] %vm1240_vm5, %v2493_v42  ;;  %2468 = vmatmul.bf16.gmra.mxu2 %v1496_v38  ;;  %v3102_v8 = vsel %vm3057_vm14, %v2493_v42, 0.0  ;;  %v2497_v55 = vpop.f32.mrf.mxu1  ;;  %vm2985_vm6 = vcmp.ne.s32.totalorder %v2660_v21, 0  ;;  %vm3000_vm14 = vcmp.lt.s32.totalorder %v2660_v21, 0  ;;  %v3030_v57 = vadd.s32 12, %v2660_v21 }
 0x27f   : > { %v3154_v3 = vmul.f32 %v3102_v8, %v3102_v8  ;;  %v3117_v29 = vsel %vm1240_vm5, %v3102_v8, 0.0 }
 0x281   : > { %v3169_v39 = vsel %vm1240_vm5, %v3154_v3, 0.0  ;;  %v1237_v49 = vpop.permute.xlu2 %1236 }
 0x283   : > { %v2446_v7 = vpop.f32.mrf.mxu0  ;;  %v1752_v16 = vpop.permute.xlu1 %1751 }
 0x284   : > { %v2495_v56 = vadd.f32 %v2494_v30, %v2446_v7  ;;  %v1700_v53 = vpop.permute.xlu0 %1699  ;;  %v2291_v30 = vor.u32 %v2289_v24, %v5788_v51 }
 0x285   : > { %v2122_v31 = vsel %vm1275_vm7, %v2106_v37, %v1700_v53  ;;  %vm3015_vm7 = vmand %vm3000_vm14, %vm2985_vm6 }
 0x286   : > { %v3103_v28 = vsel %vm3058_vm4, %v2495_v56, 0.0  ;;  %3208 = vst.msk [vmem:[%s5831_s14 + $0x8] sm:$0xff] %vm1240_vm5, %v2495_v56  ;;  %3476 = vmatmul.msk.bf16.gmra.mxu1 %vm6566_vm13, %v2281_v61  ;;  %v2138_v59 = vsel %vm1292_vm8, %v2122_v31, %v1752_v16  ;;  %v3045_v32 = vsel %vm3015_vm7, %v3030_v57, %v2660_v21  ;;  %v2499_v25 = vpop.f32.mrf.mxu1  ;;  %vm6574_vm4 = vmmov %vm6566_vm13  ;;  %v2696_v57 = vshrl.u32 %v5907_v19, 16 }
 0x287   : > { %v3118_v10 = vsel %vm1240_vm5, %v3103_v28, 0.0  ;;  %v3155_v20 = vmul.f32 %v3103_v28, %v3103_v28  ;;  %v2154_v46 = vsel %vm1309_vm9, %v2138_v59, %v1854_v48  ;;  %vm3060_vm8 = vcmp.lt.s32.totalorder %v3045_v32, 10  ;;  %v6575_v28 = vld [vmem:[#allocation7_spill] sm:$0xff]  ;;  %vm6577_vm13 = vmmov %vm6574_vm4 }
 0x288   : > { %v3119_v54 = vadd.f32 %v3118_v10, %v3117_v29  ;;  %vm6567_vm9 = vcmask 588800   ;;  %v5920_v32 = vmul.u32 43691, %v2696_v57 }
 0x289   : > { %v3170_v52 = vsel %vm1240_vm5, %v3155_v20, 0.0  ;;  %v5902_v20 = vadd.s32 32, %v5680_v45 }
 0x28a   : > { %v3171_v13 = vadd.f32 %v3170_v52, %v3169_v39 }
 0x28b   : > { %v2449_v9 = vpop.f32.mrf.mxu0  ;;  %v1948_v63 = vpop.permute.xlu1 %1947  ;;  %v2666_v31 = vand.u32 65535, %v5902_v20 }
 0x28c   : > { %v2498_v6 = vadd.f32 %v2497_v55, %v2449_v9  ;;  %v1888_v1 = vpop.permute.xlu0 %1887 }
 0x28d   : > { %v2170_v12 = vsel %vm1326_vm10, %v2154_v46, %v1888_v1  ;;  %vm6568_vm10 = vcmask 654336   ;;  %v2669_v39 = vmul.u32 43691, %v2666_v31 }
 0x28e   : > { %v3104_v40 = vsel %vm3059_vm3, %v2498_v6, 0.0  ;;  %3209 = vst.msk [vmem:[%s5831_s14 + $0x10] sm:$0xff] %vm1240_vm5, %v2498_v6  ;;  %v2186_v50 = vsel %vm1343_vm11, %v2170_v12, %v1948_v63  ;;  %vm6569_vm11 = vcmask 719872   ;;  %v5911_v6 = vadd.s32 80, %v5680_v45 }
 0x28f   : > { %v3120_v23 = vsel %vm1240_vm5, %v3104_v40, 0.0  ;;  %v3156_v5 = vmul.f32 %v3104_v40, %v3104_v40  ;;  %v2202_v42 = vsel %vm1360_vm12, %v2186_v50, %v2003_v35  ;;  %vm6571_vm12 = vcmask 916480  }
 0x290   : > { %v3121_v4 = vadd.f32 %v3120_v23, %v3119_v54  ;;  %v1470_v7 = vsel %vm6571_vm12, %v6570_v44, %v1209_v11  ;;  %vm6573_vm15 = vmmov %vm6571_vm12  ;;  %v2667_v35 = vshrl.u32 %v5902_v20, 16  ;;  %v2670_v54 = vmul.u32 43690, %v2666_v31 }
 0x291   : > { %v3172_v0 = vsel %vm1240_vm5, %v3156_v5, 0.0  ;;  %vm6576_vm2 = vmmov %vm6571_vm12  ;;  %v2840_v40 = vand.u32 65535, %v5911_v6  ;;  %v5917_v12 = vadd.s32 64, %v5680_v45  ;;  %v2841_v50 = vshrl.u32 %v5911_v6, 16 }
 0x292   : > { %v3173_v47 = vadd.f32 %v3172_v0, %v3171_v13  ;;  %v2671_v55 = vmul.u32 43691, %v2667_v35  ;;  %v2673_v52 = vshll.u32 %v2670_v54, 16  ;;  %v2695_v13 = vand.u32 65535, %v5907_v19 }
 0x293   : > { %v2451_v26 = vpop.f32.mrf.mxu0  ;;  %v2074_v62 = vpop.permute.xlu1 %2073  ;;  %v2672_v63 = vmul.u32 43690, %v2667_v35  ;;  %v5923_v11 = vmul.u32 43690, %v2840_v40  ;;  %v5939_v44 = vadd.s32 88, %v5680_v45 }
 0x294   : > { %v2500_v34 = vadd.f32 %v2499_v25, %v2451_v26  ;;  %v2022_v60 = vpop.permute.xlu0 %2021  ;;  %v2675_v59 = vshll.u32 %v2671_v55, 16  ;;  %v2679_v9 = vadd.s32 %v2673_v52, %v2669_v39  ;;  %v2699_v46 = vmul.u32 43690, %v2695_v13 }
 0x295   : > { %v2218_v43 = vsel %vm6567_vm9, %v2202_v42, %v2022_v60  ;;  %v2674_v25 = vshrl.u32 %v2670_v54, 16  ;;  %v2843_v42 = vmul.u32 43691, %v2840_v40  ;;  %v5927_v60 = vmul.u32 43691, %v2841_v50 }
 0x296   : > { %v3105_v22 = vsel %vm3060_vm8, %v2500_v34, 0.0  ;;  %3210 = vst.msk [vmem:[%s5831_s14 + $0x18] sm:$0xff] %vm1240_vm5, %v2500_v34  ;;  %v2234_v18 = vsel %vm6568_vm10, %v2218_v43, %v2074_v62  ;;  %v2702_v0 = vshll.u32 %v2699_v46, 16  ;;  %v2704_v34 = vshll.u32 %v5920_v32, 16 }
 0x297   : > { %v3122_v38 = vsel %vm1240_vm5, %v3105_v22, 0.0  ;;  %v3157_v58 = vmul.f32 %v3105_v22, %v3105_v22  ;;  %v2243_v48 = vsel %vm6569_vm11, %v2234_v18, 0  ;;  %v2847_v43 = vshll.u32 %v5923_v11, 16 }
 0x298   : > { %v5883_v36 = vadd.f32 %v3122_v38, %v3121_v4  ;;  %v2292_v33 = vshll.u32 %v2243_v48, 16  ;;  %v2296_v15 = vshrl.u32 %v2243_v48, 16  ;;  %v2698_v4 = vmul.u32 43691, %v2695_v13 }
 0x299   : > { %v3174_v2 = vsel %vm1240_vm5, %v3157_v58, 0.0  ;;  %v2783_v22 = vshrl.u32 %v5917_v12, 16  ;;  %v2676_v38 = vshrl.u32 %v2671_v55, 16  ;;  %v2701_v48 = vmul.u32 43690, %v2696_v57 }
 0x29a   : > { %v5887_v41 = vadd.f32 %v3174_v2, %v3173_v47  ;;  %v2294_v8 = vrot.slane %v2292_v33, 1  ;;  %v2782_v47 = vand.u32 65535, %v5917_v12  ;;  %vm2706_vm6 = vc.u32 %v2698_v4, %v2702_v0 }
 0x29b   : > { %v1231_v56 = vpop.permute.xlu1 %1230  ;;  %v2708_v62 = vadd.s32 %v2702_v0, %v2698_v4  ;;  %v2707_v24 = vsel %vm2706_vm6, 1, %v3864_v17  ;;  %v2849_v33 = vshll.u32 %v5927_v60, 16  ;;  %vm2851_vm3 = vc.u32 %v2843_v42, %v2847_v43 }
 0x29c   : > { %v1215_v16 = vpop.permute.xlu0 %1214  ;;  %v2295_v53 = vsel %vm484_vm1, %v2291_v30, %v2294_v8  ;;  %v1490_v3 = vsel %vm1479_vm0, %v1470_v7, %v1231_v56  ;;  %v2298_v29 = vor.u32 %v2296_v15, %v2294_v8  ;;  %vm2677_vm1 = vc.u32 %v2669_v39, %v2673_v52 }
 0x29d   : > { %v1476_v14 = vsel %vm6573_vm15, %v6572_v27, %v1215_v16  ;;  %3478 = vmatmul.msk.bf16.gmra.mxu3 %vm6574_vm4, %v2295_v53  ;;  %2458 = vmatmul.bf16.gmra.mxu0 %v1490_v3  ;;  %v2678_v1 = vsel %vm2677_vm1, 1, %v3864_v17  ;;  %v5931_v18 = vmul.u32 43690, %v2782_v47  ;;  %vm2710_vm14 = vc.u32 %v2708_v62, %v2704_v34 }
 0x29e   : > { %v1499_v51 = vsel %vm1479_vm0, %v1476_v14, %v1237_v49  ;;  %v2680_v23 = vadd.s32 %v2678_v1, %v2672_v63  ;;  %v2853_v2 = vadd.s32 %v2847_v43, %v2843_v42  ;;  %v2785_v30 = vmul.u32 43691, %v2782_v47 }
 0x29f   : > { %2473 = vmatmul.bf16.gmra.mxu2 %v1499_v51  ;;  %v5935_v8 = vmul.u32 43691, %v2783_v22  ;;  %v2789_v49 = vshll.u32 %v5931_v18, 16  ;;  %v2709_v56 = vadd.s32 %v2707_v24, %v2701_v48  ;;  %v2711_v16 = vsel %vm2710_vm14, 1, %v3864_v17 }
 0x2a0   : > { %v2846_v53 = vmul.u32 43690, %v2841_v50  ;;  %v2852_v27 = vsel %vm2851_vm3, 1, %v3864_v17  ;;  %vm2855_vm7 = vc.u32 %v2853_v2, %v2849_v33  ;;  %v2869_v51 = vand.u32 65535, %v5939_v44 }
 0x2a1   : > { %v2791_v14 = vshll.u32 %v5935_v8, 16  ;;  %vm2793_vm8 = vc.u32 %v2785_v30, %v2789_v49  ;;  %v2795_v3 = vadd.s32 %v2789_v49, %v2785_v30  ;;  %v2856_v31 = vsel %vm2855_vm7, 1, %v3864_v17 }
 0x2a2   : > { %v2794_v35 = vsel %vm2793_vm8, 1, %v3864_v17  ;;  %v2870_v54 = vshrl.u32 %v5939_v44, 16  ;;  %v5953_v39 = vmul.u32 43690, %v2869_v51  ;;  %v2705_v52 = vshrl.u32 %v5920_v32, 16 }
 0x2a3   : > { %v1239_v21 = vpop.permute.xlu1 %1238  ;;  %vm2797_vm9 = vc.u32 %v2795_v3, %v2791_v14  ;;  %v2872_v40 = vmul.u32 43691, %v2869_v51  ;;  %v5969_v50 = vadd.s32 48, %v5680_v45  ;;  %v5979_v43 = vadd.s32 96, %v5680_v45 }
 0x2a4   : > { %v1217_v61 = vpop.permute.xlu0 %1216  ;;  %v2798_v57 = vsel %vm2797_vm9, 1, %v3864_v17  ;;  %v2792_v49 = vshrl.u32 %v5935_v8, 16 }
 0x2a5   : > { %v1478_v37 = vsel %vm6576_vm2, %v6575_v28, %v1217_v61  ;;  %v5945_v61 = vpop.f32.mrf.mxu1  ;;  %v2703_v28 = vshrl.u32 %v2699_v46, 16  ;;  %v5959_v46 = vmul.u32 43691, %v2870_v54  ;;  %v2724_v42 = vand.u32 65535, %v5969_v50 }
 0x2a6   : > { %v1502_v10 = vsel %vm1479_vm0, %v1478_v37, %v1239_v21  ;;  %vm2681_vm0 = vc.u32 %v2679_v9, %v2675_v59  ;;  %v2713_v37 = vadd.s32 %v2711_v16, %v2709_v56  ;;  %v5948_v21 = vadd.s32 72, %v5680_v45 }
 0x2a7   : > { %v2682_v5 = vsel %vm2681_vm0, 1, %v3864_v17  ;;  %v2848_v9 = vshrl.u32 %v5923_v11, 16  ;;  %v2850_v11 = vshrl.u32 %v5927_v60, 16  ;;  %v2878_v62 = vshll.u32 %v5959_v46, 16 }
 0x2a8   : > { %v2684_v26 = vadd.s32 %v2682_v5, %v2680_v23  ;;  %v2714_v13 = vadd.s32 %v2713_v37, %v2703_v28  ;;  %v2811_v59 = vand.u32 65535, %v5948_v21  ;;  %v2876_v23 = vshll.u32 %v5953_v39, 16 }
 0x2a9   : > { %v2812_v5 = vshrl.u32 %v5948_v21, 16  ;;  %v2727_v48 = vmul.u32 43691, %v2724_v42  ;;  %v5988_v24 = vmul.u32 43690, %v2724_v42  ;;  %v5994_v56 = vpop.f32.mrf.mxu2 }
 0x2aa   : > { %v2685_v58 = vadd.s32 %v2684_v26, %v2674_v25  ;;  %v2715_v32 = vadd.s32 %v2714_v13, %v2705_v52  ;;  %v5966_v0 = vmul.u32 43690, %v2811_v59  ;;  %v2790_v25 = vshrl.u32 %v5931_v18, 16 }
 0x2ab   : > { %vm5981_vm10 = vc.u32 %v2872_v40, %v2876_v23  ;;  %v2882_v60 = vadd.s32 %v2876_v23, %v2872_v40  ;;  %v2817_v13 = vmul.u32 43690, %v2812_v5 }
 0x2ac   : > { %v2686_v7 = vadd.s32 %v2685_v58, %v2676_v38  ;;  %v2814_v38 = vmul.u32 43691, %v2811_v59  ;;  %v5985_v58 = vmul.u32 43691, %v2812_v5  ;;  %v2818_v18 = vshll.u32 %v5966_v0, 16 }
 0x2ad   : > { %3479 = vmatmul.msk.bf16.gmra.mxu3 %vm6577_vm13, %v2298_v29  ;;  %v2854_v29 = vadd.s32 %v2852_v27, %v2846_v53  ;;  %v5973_v34 = vpop.f32.mrf.mxu1  ;;  %v2716_v2 = vshrl.u32 %v2715_v32, 3  ;;  %v2875_v53 = vmul.u32 43690, %v2870_v54  ;;  %v2731_v27 = vshll.u32 %v5988_v24, 16 }
 0x2ae   : > { %v2687_v15 = vshrl.u32 %v2686_v7, 3  ;;  %v2898_v7 = vand.u32 65535, %v5979_v43  ;;  %v2881_v3 = vsel %vm5981_vm10, 1, %v3864_v17  ;;  %vm6001_vm11 = vc.u32 %v2882_v60, %v2878_v62 }
 0x2af   : > { %2478 = vmatmul.bf16.gmra.mxu2 %v1502_v10  ;;  %v2788_v10 = vmul.u32 43690, %v2783_v22  ;;  %v2858_v63 = vadd.s32 %v2856_v31, %v2854_v29  ;;  %v2820_v8 = vshll.u32 %v5985_v58, 16  ;;  %vm6006_vm12 = vc.u32 %v2814_v38, %v2818_v18 }
 0x2b0   : > { %v2688_v55 = vmul.u32 12, %v2687_v15  ;;  %v2824_v37 = vadd.s32 %v2818_v18, %v2814_v38  ;;  %vm2735_vm15 = vc.u32 %v2727_v48, %v2731_v27  ;;  %v2737_v29 = vadd.s32 %v2731_v27, %v2727_v48 }
 0x2b1   : > { %v2796_v1 = vadd.s32 %v2794_v35, %v2788_v10  ;;  %v2859_v47 = vadd.s32 %v2858_v63, %v2848_v9  ;;  %v2717_v10 = vmul.u32 12, %v2716_v2  ;;  %v2899_v31 = vshrl.u32 %v5979_v43, 16  ;;  %v6045_v48 = vpop.f32.mrf.mxu2 }
 0x2b2   : > { %v5964_v4 = vsub.s32 %v5902_v20, %v2688_v55  ;;  %v2725_v20 = vshrl.u32 %v5969_v50, 16  ;;  %v6011_v35 = vmul.u32 43690, %v2898_v7  ;;  %v6014_v54 = vadd.s32 56, %v5680_v45 }
 0x2b3   : > { %v2800_v26 = vadd.s32 %v2798_v57, %v2796_v1  ;;  %v2860_v30 = vadd.s32 %v2859_v47, %v2850_v11  ;;  %v2883_v52 = vadd.s32 %v2881_v3, %v2875_v53  ;;  %v2736_v59 = vsel %vm2735_vm15, 1, %v3864_v17 }
 0x2b4   : > { %v5990_v33 = vmul.u32 43691, %v2725_v20  ;;  %v2730_v15 = vmul.u32 43690, %v2725_v20  ;;  %v2885_v1 = vsel %vm6001_vm11, 1, %v3864_v17  ;;  %v2823_v57 = vsel %vm6006_vm12, 1, %v3864_v17 }
 0x2b5   : > { %v2801_v16 = vadd.s32 %v2800_v26, %v2790_v25  ;;  %v2861_v63 = vshrl.u32 %v2860_v30, 3  ;;  %vm2826_vm2 = vc.u32 %v2824_v37, %v2820_v8  ;;  %v2901_v11 = vmul.u32 43691, %v2898_v7 }
 0x2b6   : > { %v2733_v14 = vshll.u32 %v5990_v33, 16  ;;  %v2738_v40 = vadd.s32 %v2736_v59, %v2730_v15  ;;  %v6029_v47 = vmul.u32 43691, %v2899_v31  ;;  %v2905_v25 = vshll.u32 %v6011_v35, 16 }
 0x2b7   : > { %v2802_v32 = vadd.s32 %v2801_v16, %v2792_v49  ;;  %v2753_v26 = vand.u32 65535, %v6014_v54  ;;  %vm2986_vm13 = vcmp.ne.s32.totalorder %v5964_v4, 0  ;;  %vm3001_vm1 = vcmp.lt.s32.totalorder %v5964_v4, 0 }
 0x2b8   : > { %vm2739_vm4 = vc.u32 %v2737_v29, %v2733_v14  ;;  %v6036_v62 = vadd.s32 12, %v5964_v4  ;;  %v2887_v42 = vadd.s32 %v2885_v1, %v2883_v52  ;;  %v2825_v20 = vadd.s32 %v2823_v57, %v2817_v13  ;;  %vm6077_vm8 = vmand %vm3001_vm1, %vm2986_vm13 }
 0x2b9   : > { %v2740_v5 = vsel %vm2739_vm4, 1, %v3864_v17  ;;  %v2827_v22 = vsel %vm2826_vm2, 1, %v3864_v17  ;;  %v2732_v60 = vshrl.u32 %v5988_v24, 16  ;;  %v2754_v18 = vshrl.u32 %v6014_v54, 16 }
 0x2ba   : > { %v2742_v38 = vadd.s32 %v2740_v5, %v2738_v40  ;;  %v6048_v2 = vsub.s32 %v5907_v19, %v2717_v10  ;;  %v2862_v30 = vmul.u32 12, %v2861_v63  ;;  %v2803_v49 = vshrl.u32 %v2802_v32, 3 }
 0x2bb   : > { %v2879_v7 = vshrl.u32 %v5959_v46, 16  ;;  %vm2909_vm0 = vc.u32 %v2901_v11, %v2905_v25  ;;  %v2911_v16 = vadd.s32 %v2905_v25, %v2901_v11  ;;  %v2757_v53 = vmul.u32 43690, %v2753_v26 }
 0x2bc   : > { %v2819_v14 = vshrl.u32 %v5966_v0, 16  ;;  %v2829_v3 = vadd.s32 %v2827_v22, %v2825_v20  ;;  %v2756_v51 = vmul.u32 43691, %v2753_v26  ;;  %v2734_v19 = vshrl.u32 %v5990_v33, 16 }
 0x2bd   : > { %v2743_v15 = vadd.s32 %v2742_v38, %v2732_v60  ;;  %v2904_v28 = vmul.u32 43690, %v2899_v31  ;;  %v6056_v37 = vmul.u32 43691, %v2754_v18  ;;  %v2910_v29 = vsel %vm2909_vm0, 1, %v3864_v17 }
 0x2be   : > { %v2759_v10 = vmul.u32 43690, %v2754_v18  ;;  %v2760_v52 = vshll.u32 %v2757_v53, 16  ;;  %v2804_v13 = vmul.u32 12, %v2803_v49  ;;  %v2821_v0 = vshrl.u32 %v5985_v58, 16 }
 0x2bf   : > { %v2762_v59 = vshll.u32 %v6056_v37, 16  ;;  %v2830_v31 = vadd.s32 %v2829_v3, %v2819_v14  ;;  %vm2987_vm3 = vcmp.ne.s32.totalorder %v6048_v2, 0  ;;  %v2912_v1 = vadd.s32 %v2910_v29, %v2904_v28 }
 0x2c0   : > { %vm2764_vm14 = vc.u32 %v2756_v51, %v2760_v52  ;;  %v2766_v63 = vadd.s32 %v2760_v52, %v2756_v51  ;;  %v6071_v5 = vadd.s32 104, %v5680_v45  ;;  %v6084_v26 = vsub.s32 %v5911_v6, %v2862_v30 }
 0x2c1   : > { %v2765_v57 = vsel %vm2764_vm14, 1, %v3864_v17  ;;  %vm3002_vm9 = vcmp.lt.s32.totalorder %v6048_v2, 0  ;;  %v6089_v22 = vsub.s32 %v5917_v12, %v2804_v13  ;;  %v2831_v38 = vadd.s32 %v2830_v31, %v2821_v0 }
 0x2c2   : > { %v2767_v32 = vadd.s32 %v2765_v57, %v2759_v10  ;;  %vm2768_vm7 = vc.u32 %v2766_v63, %v2762_v59  ;;  %v2906_v6 = vshrl.u32 %v6011_v35, 16  ;;  %v2927_v12 = vand.u32 65535, %v6071_v5  ;;  %vm6113_vm11 = vmand %vm3002_vm9, %vm2987_vm3 }
 0x2c3   : > { %vm2992_vm10 = vcmp.ne.s32.totalorder %v6084_v26, 0  ;;  %vm3007_vm12 = vcmp.lt.s32.totalorder %v6084_v26, 0  ;;  %vm2990_vm15 = vcmp.ne.s32.totalorder %v6089_v22, 0  ;;  %vm3005_vm4 = vcmp.lt.s32.totalorder %v6089_v22, 0 }
 0x2c4   : > { %v2908_v14 = vshrl.u32 %v6029_v47, 16  ;;  %v2931_v28 = vmul.u32 43690, %v2927_v12  ;;  %v3037_v10 = vadd.s32 12, %v6084_v26  ;;  %vm6132_vm2 = vmand %vm3007_vm12, %vm2992_vm10  ;;  %v6137_v0 = vadd.s32 12, %v6089_v22 }
 0x2c5   : > { %vm6146_vm13 = vmand %vm3005_vm4, %vm2990_vm15 }
 0x2f3   : > { %v6016_v55 = vpop.f32.mrf.mxu1 }
 0x2f4   : > { %v2454_v9 = vpop.f32.mrf.mxu0 }
 0x2f5   : > { %v6026_v23 = vadd.f32 %v5945_v61, %v2454_v9  ;;  %v2877_v61 = vshrl.u32 %v5953_v39, 16  ;;  %v2907_v39 = vshll.u32 %v6029_v47, 16  ;;  %v2517_v9 = vpop.f32.mrf.mxu3 }
 0x2f7   : > { %3211 = vst.msk [vmem:[%s5831_s14 + $0x20] sm:$0xff] %vm1240_vm5, %v6026_v23  ;;  %v2888_v24 = vadd.s32 %v2887_v42, %v2877_v61  ;;  %vm2913_vm6 = vc.u32 %v2911_v16, %v2907_v39  ;;  %v2761_v61 = vshrl.u32 %v2757_v53, 16  ;;  %v2769_v42 = vsel %vm2768_vm7, 1, %v3864_v17 }
 0x2f8   : > { %v2914_v58 = vsel %vm2913_vm6, 1, %v3864_v17  ;;  %v2771_v49 = vadd.s32 %v2769_v42, %v2767_v32  ;;  %v3032_v16 = vadd.s32 12, %v6048_v2  ;;  %v3052_v42 = vsel %vm6132_vm2, %v3037_v10, %v6084_v26 }
 0x2f9   : > { %v2889_v33 = vadd.s32 %v2888_v24, %v2879_v7  ;;  %v2916_v30 = vadd.s32 %v2914_v58, %v2912_v1  ;;  %v3046_v7 = vsel %vm6077_vm8, %v6036_v62, %v5964_v4  ;;  %v2928_v62 = vshrl.u32 %v6071_v5, 16 }
 0x2fa   : > { %v2772_v35 = vadd.s32 %v2771_v49, %v2761_v61  ;;  %v2832_v24 = vshrl.u32 %v2831_v38, 3  ;;  %v3047_v29 = vsel %vm6113_vm11, %v3032_v16, %v6048_v2  ;;  %vm6156_vm1 = vcmp.lt.s32.totalorder %v3046_v7, 10 }
 0x2fb   : > { %v6052_v27 = vpop.f32.mrf.mxu1  ;;  %v2890_v60 = vshrl.u32 %v2889_v33, 3  ;;  %v2917_v3 = vadd.s32 %v2916_v30, %v2906_v6  ;;  %v2934_v33 = vshll.u32 %v2931_v28, 16  ;;  %vm6161_vm6 = vcmp.lt.s32.totalorder %v3047_v29, 10 }
 0x2fc   : > { %v2456_v8 = vpop.f32.mrf.mxu0  ;;  %v6170_v61 = vadd.s32 112, %v5680_v45  ;;  %v2935_v6 = vshrl.u32 %v2931_v28, 16  ;;  %vm6200_vm12 = vcmp.lt.s32.totalorder %v3052_v42, 10 }
 0x2fd   : > { %v6059_v46 = vadd.f32 %v5973_v34, %v2456_v8  ;;  %v2744_v34 = vadd.s32 %v2743_v15, %v2734_v19  ;;  %v2891_v4 = vmul.u32 12, %v2890_v60  ;;  %v2519_v51 = vpop.f32.mrf.mxu3  ;;  %v2930_v15 = vmul.u32 43691, %v2927_v12 }
 0x2fe   : > { %v2956_v30 = vand.u32 65535, %v6170_v61  ;;  %v2957_v26 = vshrl.u32 %v6170_v61, 16  ;;  %v3106_v12 = vsel %vm6156_vm1, %v6026_v23, 0.0 }
 0x2ff   : > { %3212 = vst.msk [vmem:[%s5831_s14 + $0x28] sm:$0xff] %vm1240_vm5, %v6059_v46  ;;  %v2745_v39 = vshrl.u32 %v2744_v34, 3  ;;  %v6140_v59 = vsub.s32 %v5939_v44, %v2891_v4  ;;  %v2833_v34 = vmul.u32 12, %v2832_v24  ;;  %v2918_v44 = vadd.s32 %v2917_v3, %v2908_v14 }
 0x300   : > { %vm2938_vm0 = vc.u32 %v2930_v15, %v2934_v33  ;;  %v2940_v58 = vadd.s32 %v2934_v33, %v2930_v15  ;;  %v2960_v16 = vmul.u32 43690, %v2956_v30  ;;  %v2962_v14 = vmul.u32 43690, %v2957_v26 }
 0x301   : > { %v2469_v40 = vpop.f32.mrf.mxu2  ;;  %v2746_v19 = vmul.u32 12, %v2745_v39  ;;  %v2939_v11 = vsel %vm2938_vm0, 1, %v3864_v17  ;;  %vm2993_vm14 = vcmp.ne.s32.totalorder %v6140_v59, 0  ;;  %v6181_v60 = vsub.s32 %v5948_v21, %v2833_v34 }
 0x302   : > { %v6081_v25 = vadd.f32 %v2517_v9, %v2469_v40  ;;  %v2933_v9 = vmul.u32 43690, %v2928_v62  ;;  %v2919_v38 = vshrl.u32 %v2918_v44, 3  ;;  %v2959_v21 = vmul.u32 43691, %v2956_v30 }
 0x303   : > { %v2512_v20 = vpop.f32.mrf.mxu1  ;;  %v2747_v40 = vsub.s32 %v5969_v50, %v2746_v19  ;;  %v3050_v50 = vsel %vm6146_vm13, %v6137_v0, %v6089_v22  ;;  %vm3008_vm9 = vcmp.lt.s32.totalorder %v6140_v59, 0  ;;  %v2963_v3 = vshll.u32 %v2960_v16, 16 }
 0x304   : > { %3217 = vst.msk [vmem:[%s5831_s14 + $0x50] sm:$0xff] %vm1240_vm5, %v6081_v25  ;;  %v6095_v18 = vadd.f32 %v2512_v20, %v5994_v56  ;;  %v2763_v56 = vshrl.u32 %v6056_v37, 16  ;;  %v2932_v37 = vmul.u32 43691, %v2928_v62  ;;  %v2941_v20 = vadd.s32 %v2939_v11, %v2933_v9  ;;  %vm6213_vm2 = vmand %vm3008_vm9, %vm2993_vm14 }
 0x305   : > { %vm2988_vm7 = vcmp.ne.s32.totalorder %v2747_v40, 0  ;;  %vm3003_vm8 = vcmp.lt.s32.totalorder %v2747_v40, 0  ;;  %v3033_v53 = vadd.s32 12, %v2747_v40  ;;  %v2920_v24 = vmul.u32 12, %v2919_v38 }
 0x306   : > { %3215 = vst.msk [vmem:[%s5831_s14 + $0x40] sm:$0xff] %vm1240_vm5, %v6095_v18  ;;  %v2773_v13 = vadd.s32 %v2772_v35, %v2763_v56  ;;  %v2936_v1 = vshll.u32 %v2932_v37, 16  ;;  %v2937_v7 = vshrl.u32 %v2932_v37, 16  ;;  %v2961_v56 = vmul.u32 43691, %v2957_v26  ;;  %vm6192_vm10 = vmand %vm3003_vm8, %vm2988_vm7 }
 0x307   : > { %v3038_v35 = vadd.s32 12, %v6140_v59  ;;  %vm2991_vm11 = vcmp.ne.s32.totalorder %v6181_v60, 0  ;;  %vm3006_vm15 = vcmp.lt.s32.totalorder %v6181_v60, 0  ;;  %v3036_v28 = vadd.s32 12, %v6181_v60 }
 0x308   : > { %vm2942_vm3 = vc.u32 %v2940_v58, %v2936_v1  ;;  %vm2967_vm4 = vc.u32 %v2959_v21, %v2963_v3  ;;  %v2969_v37 = vadd.s32 %v2963_v3, %v2959_v21  ;;  %v3107_v29 = vsel %vm6161_vm6, %v6059_v46, 0.0  ;;  %vm6225_vm0 = vmand %vm3006_vm15, %vm2991_vm11 }
 0x309   : > { %v2471_v8 = vpop.f32.mrf.mxu2  ;;  %v2943_v45 = vsel %vm2942_vm3, 1, %v3864_v17  ;;  %v3048_v10 = vsel %vm6192_vm10, %v3033_v53, %v2747_v40  ;;  %v2968_v47 = vsel %vm2967_vm4, 1, %v3864_v17  ;;  %v2964_v9 = vshrl.u32 %v2960_v16, 16 }
 0x30a   : > { %v6126_v52 = vadd.f32 %v2519_v51, %v2471_v8  ;;  %v2945_v39 = vadd.s32 %v2943_v45, %v2941_v20  ;;  %v2965_v51 = vshll.u32 %v2961_v56, 16  ;;  %v3158_v8 = vmul.f32 %v3106_v12, %v3106_v12 }
 0x30b   : > { %v2514_v2 = vpop.f32.mrf.mxu1  ;;  %v2970_v33 = vadd.s32 %v2968_v47, %v2962_v14  ;;  %vm3063_vm3 = vcmp.lt.s32.totalorder %v3048_v10, 10  ;;  %v2966_v57 = vshrl.u32 %v2961_v56, 16  ;;  %v3124_v58 = vsel %vm1240_vm5, %v3106_v12, 0.0 }
 0x30c   : > { %3218 = vst.msk [vmem:[%s5831_s14 + $0x58] sm:$0xff] %vm1240_vm5, %v6126_v52  ;;  %v6154_v63 = vadd.f32 %v2514_v2, %v6045_v48  ;;  %v2774_v48 = vshrl.u32 %v2773_v13, 3  ;;  %v2946_v4 = vadd.s32 %v2945_v39, %v2935_v6  ;;  %v6221_v2 = vsub.s32 %v5979_v43, %v2920_v24 }
 0x30d   : > { %vm2971_vm1 = vc.u32 %v2969_v37, %v2965_v51  ;;  %v3053_v43 = vsel %vm6213_vm2, %v3038_v35, %v6140_v59  ;;  %v3176_v32 = vsel %vm1240_vm5, %v3158_v8, 0.0  ;;  %v3159_v42 = vmul.f32 %v3107_v29, %v3107_v29 }
 0x30e   : > { %3216 = vst.msk [vmem:[%s5831_s14 + $0x48] sm:$0xff] %vm1240_vm5, %v6154_v63  ;;  %v2775_v49 = vmul.u32 12, %v2774_v48  ;;  %v2947_v19 = vadd.s32 %v2946_v4, %v2937_v7  ;;  %v2972_v44 = vsel %vm2971_vm1, 1, %v3864_v17  ;;  %v3126_v17 = vsel %vm1240_vm5, %v3107_v29, 0.0 }
 0x30f   : > { %v2974_v40 = vadd.s32 %v2972_v44, %v2970_v33  ;;  %v3051_v59 = vsel %vm6225_vm0, %v3036_v28, %v6181_v60  ;;  %vm2994_vm8 = vcmp.ne.s32.totalorder %v6221_v2, 0  ;;  %vm3009_vm9 = vcmp.lt.s32.totalorder %v6221_v2, 0 }
 0x310   : > { %v6198_v23 = vsub.s32 %v6014_v54, %v2775_v49  ;;  %v2948_v13 = vshrl.u32 %v2947_v19, 3  ;;  %v3125_v60 = vadd.f32 %v3124_v58, %v5883_v36  ;;  %vm3065_vm10 = vcmp.lt.s32.totalorder %v3050_v50, 10  ;;  %vm6283_vm13 = vmand %vm3009_vm9, %vm2994_vm8 }
 0x311   : > { %v2975_v38 = vadd.s32 %v2974_v40, %v2964_v9  ;;  %vm6264_vm11 = vcmp.lt.s32.totalorder %v3053_v43, 10  ;;  %v3177_v26 = vadd.f32 %v3176_v32, %v5887_v41  ;;  %vm6270_vm15 = vcmp.lt.s32.totalorder %v3051_v59, 10 }
 0x312   : > { %vm2989_vm6 = vcmp.ne.s32.totalorder %v6198_v23, 0  ;;  %vm3004_vm14 = vcmp.lt.s32.totalorder %v6198_v23, 0  ;;  %v2949_v34 = vmul.u32 12, %v2948_v13  ;;  %v3034_v11 = vadd.s32 12, %v6198_v23 }
 0x313   : > { %vm6247_vm7 = vmand %vm3004_vm14, %vm2989_vm6  ;;  %v2976_v30 = vadd.s32 %v2975_v38, %v2966_v57  ;;  %v3039_v36 = vadd.s32 12, %v6221_v2  ;;  %v3127_v0 = vadd.f32 %v3126_v17, %v3125_v60  ;;  %v3178_v31 = vsel %vm1240_vm5, %v3159_v42, 0.0 }
 0x314   : > { %v3049_v22 = vsel %vm6247_vm7, %v3034_v11, %v6198_v23  ;;  %v3112_v39 = vsel %vm6200_vm12, %v6081_v25, 0.0  ;;  %v3110_v12 = vsel %vm3065_vm10, %v6095_v18, 0.0  ;;  %v3111_v18 = vsel %vm6270_vm15, %v6154_v63, 0.0 }
 0x315   : > { %v2977_v7 = vshrl.u32 %v2976_v30, 3  ;;  %vm6294_vm1 = vcmp.lt.s32.totalorder %v3049_v22, 10  ;;  %v3054_v4 = vsel %vm6283_vm13, %v3039_v36, %v6221_v2  ;;  %v3179_v14 = vadd.f32 %v3178_v31, %v3177_v26 }
 0x316   : > { %v3164_v3 = vmul.f32 %v3112_v39, %v3112_v39  ;;  %v3162_v23 = vmul.f32 %v3110_v12, %v3110_v12  ;;  %v3163_v28 = vmul.f32 %v3111_v18, %v3111_v18  ;;  %vm6327_vm0 = vcmp.lt.s32.totalorder %v3054_v4, 10 }
 0x317   : > { %v2978_v25 = vmul.u32 12, %v2977_v7  ;;  %vm3205_vm6 = vcmask 62464   ;;  %v3113_v33 = vsel %vm6264_vm11, %v6126_v52, 0.0  ;;  %v3865_v43 = vmov 0.0  }
 0x318   : > { %v3184_v9 = vsel %vm1240_vm5, %v3162_v23, 0.0  ;;  %3206 = vst.msk [vmem:[%s6339_s15 + $0x2] sm:$0x3f] %vm3205_vm6, %v3865_v43  ;;  %v3136_v11 = vsel %vm1240_vm5, %v3112_v39, 0.0  ;;  %v3165_v17 = vmul.f32 %v3113_v33, %v3113_v33  ;;  %v3186_v42 = vsel %vm1240_vm5, %v3163_v28, 0.0 }
 0x319   : > { %v2979_v8 = vsub.s32 %v6170_v61, %v2978_v25  ;;  %vm3152_vm10 = vcmask 57344  }
 0x31a   : > { %v2459_v1 = vpop.f32.mrf.mxu0 }
 0x31b   : > { %v2508_v48 = vadd.f32 %v6016_v55, %v2459_v1  ;;  %v6256_v55 = vsub.s32 %v6071_v5, %v2949_v34  ;;  %vm2996_vm14 = vcmp.ne.s32.totalorder %v2979_v8, 0  ;;  %v3134_v1 = vsel %vm1240_vm5, %v3111_v18, 0.0 }
 0x31c   : > { %v3041_v40 = vadd.s32 12, %v2979_v8 }
 0x31d   : > { %v3108_v6 = vsel %vm3063_vm3, %v2508_v48, 0.0  ;;  %3213 = vst.msk [vmem:[%s5831_s14 + $0x30] sm:$0xff] %vm1240_vm5, %v2508_v48  ;;  %vm2995_vm4 = vcmp.ne.s32.totalorder %v6256_v55, 0  ;;  %vm3010_vm2 = vcmp.lt.s32.totalorder %v6256_v55, 0  ;;  %v3040_v24 = vadd.s32 12, %v6256_v55 }
 0x31e   : > { %v3160_v50 = vmul.f32 %v3108_v6, %v3108_v6  ;;  %v3128_v16 = vsel %vm1240_vm5, %v3108_v6, 0.0  ;;  %vm6316_vm12 = vmand %vm3010_vm2, %vm2995_vm4  ;;  %vm3011_vm3 = vcmp.lt.s32.totalorder %v2979_v8, 0  ;;  %v3188_v6 = vsel %vm1240_vm5, %v3164_v3, 0.0 }
 0x31f   : > { %v3129_v19 = vadd.f32 %v3128_v16, %v3127_v0  ;;  %v3055_v47 = vsel %vm6316_vm12, %v3040_v24, %v6256_v55  ;;  %vm6351_vm8 = vmand %vm3011_vm3, %vm2996_vm14  ;;  %v3138_v55 = vsel %vm1240_vm5, %v3113_v33, 0.0 }
 0x320   : > { %v2522_v5 = vpop.f32.mrf.mxu3  ;;  %v3180_v51 = vsel %vm1240_vm5, %v3160_v50, 0.0  ;;  %vm3070_vm7 = vcmp.lt.s32.totalorder %v3055_v47, 10  ;;  %v3056_v45 = vsel %vm6351_vm8, %v3041_v40, %v2979_v8 }
 0x321   : > { %v3181_v10 = vadd.f32 %v3180_v51, %v3179_v14  ;;  %vm3071_vm9 = vcmp.lt.s32.totalorder %v3056_v45, 10 }
 0x322   : > { %v2474_v21 = vpop.f32.mrf.mxu2  ;;  %v2461_v35 = vpop.f32.mrf.mxu0 }
 0x323   : > { %v2523_v56 = vadd.f32 %v2522_v5, %v2474_v21  ;;  %v2510_v62 = vadd.f32 %v6052_v27, %v2461_v35  ;;  %v3132_v27 = vsel %vm1240_vm5, %v3110_v12, 0.0  ;;  %v3190_v5 = vsel %vm1240_vm5, %v3165_v17, 0.0 }
 0x325   : > { %3219 = vst.msk [vmem:[%s5831_s14 + $0x60] sm:$0xff] %vm1240_vm5, %v2523_v56  ;;  %v3109_v15 = vsel %vm6294_vm1, %v2510_v62, 0.0  ;;  %v3114_v58 = vsel %vm6327_vm0, %v2523_v56, 0.0 }
 0x326   : > { %3214 = vst.msk [vmem:[%s5831_s14 + $0x38] sm:$0xff] %vm1240_vm5, %v2510_v62  ;;  %v3130_v29 = vsel %vm1240_vm5, %v3109_v15, 0.0  ;;  %v3161_v54 = vmul.f32 %v3109_v15, %v3109_v15  ;;  %v3166_v60 = vmul.f32 %v3114_v58, %v3114_v58  ;;  %v3140_v36 = vsel %vm1240_vm5, %v3114_v58, 0.0 }
 0x327   : > { %v3131_v61 = vadd.f32 %v3130_v29, %v3129_v19 }
 0x328   : > { %v2524_v13 = vpop.f32.mrf.mxu3  ;;  %v3182_v2 = vsel %vm1240_vm5, %v3161_v54, 0.0  ;;  %v3192_v41 = vsel %vm1240_vm5, %v3166_v60, 0.0 }
 0x329   : > { %v3133_v46 = vadd.f32 %v3132_v27, %v3131_v61  ;;  %v3183_v34 = vadd.f32 %v3182_v2, %v3181_v10 }
 0x32a   : > { %v2476_v44 = vpop.f32.mrf.mxu2 }
 0x32b   : > { %v2525_v57 = vadd.f32 %v2524_v13, %v2476_v44  ;;  %v3135_v32 = vadd.f32 %v3134_v1, %v3133_v46  ;;  %v3185_v48 = vadd.f32 %v3184_v9, %v3183_v34 }
 0x32d   : > { %3220 = vst.msk [vmem:[%s5831_s14 + $0x68] sm:$0xff] %vm1240_vm5, %v2525_v57  ;;  %v3187_v59 = vadd.f32 %v3186_v42, %v3185_v48  ;;  %v3115_v20 = vsel %vm3070_vm7, %v2525_v57, 0.0  ;;  %v3137_v38 = vadd.f32 %v3136_v11, %v3135_v32 }
 0x32e   : > { %v3167_v22 = vmul.f32 %v3115_v20, %v3115_v20  ;;  %v3142_v7 = vsel %vm1240_vm5, %v3115_v20, 0.0 }
 0x32f   : > { %v3139_v30 = vadd.f32 %v3138_v55, %v3137_v38  ;;  %v3189_v26 = vadd.f32 %v3188_v6, %v3187_v59 }
 0x330   : > { %v2527_v49 = vpop.f32.mrf.mxu3  ;;  %v3194_v16 = vsel %vm1240_vm5, %v3167_v22, 0.0 }
 0x331   : > { %v3141_v0 = vadd.f32 %v3140_v36, %v3139_v30  ;;  %v3191_v31 = vadd.f32 %v3190_v5, %v3189_v26 }
 0x332   : > { %v2479_v50 = vpop.f32.mrf.mxu2 }
 0x333   : > { %v2528_v39 = vadd.f32 %v2527_v49, %v2479_v50  ;;  %v3143_v12 = vadd.f32 %v3142_v7, %v3141_v0  ;;  %v3193_v21 = vadd.f32 %v3192_v41, %v3191_v31 }
 0x335   : > { %v3116_v56 = vsel %vm3071_vm9, %v2528_v39, 0.0  ;;  %3221 = vst.msk [vmem:[%s5831_s14 + $0x70] sm:$0xff] %vm1240_vm5, %v2528_v39  ;;  %v3195_v35 = vadd.f32 %v3194_v16, %v3193_v21 }
 0x336   : > { %v3144_v53 = vsel %vm1240_vm5, %v3116_v56, 0.0  ;;  %v3168_v25 = vmul.f32 %v3116_v56, %v3116_v56 }
 0x337   : > { %v3145_v18 = vadd.f32 %v3144_v53, %v3143_v12 }
 0x338   : > { %v3196_v4 = vsel %vm1240_vm5, %v3168_v25, 0.0  ;;  %v2529_v62 = vpop.f32.mrf.mxu3 }
 0x339   : > { %v3146_v24 = vrot.slane %v3145_v18, 4  ;;  %v3197_v14 = vadd.f32 %v3196_v4, %v3195_v35 }
 0x33a   : > { %v2481_v3 = vpop.f32.mrf.mxu2 }
 0x33b   : > { %v3147_v51 = vadd.f32 %v3146_v24, %v3145_v18  ;;  %v3198_v63 = vrot.slane %v3197_v14, 4 }
 0x33d   : > { %v3148_v8 = vrot.slane %v3147_v51, 2  ;;  %v3199_v27 = vadd.f32 %v3198_v63, %v3197_v14 }
 0x33f   : > { %v3149_v23 = vadd.f32 %v3148_v8, %v3147_v51  ;;  %v3200_v19 = vrot.slane %v3199_v27, 2 }
 0x341   : > { %v3150_v15 = vrot.slane %v3149_v23, 1  ;;  %v3201_v28 = vadd.f32 %v3200_v19, %v3199_v27 }
 0x343   : > { %v3151_v37 = vadd.f32 %v3150_v15, %v3149_v23  ;;  %v3202_v29 = vrot.slane %v3201_v28, 1 }
 0x345   : > { %3153 = vst.msk [vmem:[%s6339_s15] sm:$0x1] %vm3152_vm10, %v3151_v37  ;;  %v3203_v54 = vadd.f32 %v3202_v29, %v3201_v28 }
 0x347   : > { %3204 = vst.msk [vmem:[%s6339_s15 + $0x1] sm:$0x1] %vm3152_vm10, %v3203_v54 }
 0x348 PF: > { %s16_s22 = sadd.s32 1, %s3847_s22   ;;  %s6620_s18 = smov %s3839_s20 }
 0x349   : > { %p13_p10 = scmp.ge.s32.totalorder %s16_s22, 22   ;;  %s6621_s19 = smov %s3843_s21 }
 0x34a   : > { %s6622_s20 = smov %s6625_s23  ;;  %s6623_s21 = smov %s6629_s24 }
 0x34b   :  { %15 = sbr.rel (!%p13_p10) target bundleno = 3 (0x3), region = 84 }

</bundles_post_ra>
